<compile_context>
chip_gen: v7x
topology: tpu7x:2x2x1
jax: 0.10.0
libtpu: 0.0.40
codegen_flags: <defaults>
</compile_context>

<pallas_src>
import functools

import jax
import jax.numpy as jnp
from jax.experimental import pallas as pl
from jax.experimental.pallas import tpu as pltpu


def _round_up(x, m):
    return ((x + m - 1) // m) * m


def _vmem_limit_bytes():
    # ~75% of physical VMEM (headroom for compiler scratch); safe fallback.
    try:
        cap = pltpu.get_tpu_info().vmem_capacity_bytes
    except Exception:
        cap = 64 * 1024 * 1024
    return int(cap * 3 // 4)


# ----------------------------------------------------------------------------
# Fused Group kernel:
#   conv_a (1x1 MFM) -> mask (exact zero spatial padding of h) ->
#   in-VMEM im2col -> ONE kxk-conv GEMM -> bias -> MFM
# ----------------------------------------------------------------------------
def group_kernel(x_ref, mask_ref, wa_ref, ba_ref, w_ref, b_ref, o_ref,
                 h_ref, h2_ref, *, cin, cout_p, k, wp, lout):
    # ---- conv_a: ONE (Lin, Cin) @ (Cin, 2*Cin) bf16 GEMM, f32 accumulate -----
    x = x_ref[0]                                               # (Lin, Cin) bf16
    ya = jnp.dot(x, wa_ref[...], preferred_element_type=jnp.float32) + ba_ref[...]
    # MFM over the two channel halves; the mask zeroes the spatial-padding ring
    # (and the flat-shift spill row), so the kxk conv below sees exact zero
    # padding of the conv_a activation.  VPU ops in f32, storage in bf16.
    h_ref[...] = (jnp.maximum(ya[:, :cin], ya[:, cin:]) * mask_ref[...]).astype(h_ref.dtype)

    # ---- in-VMEM im2col: k*k shifted contiguous row-slices of h --------------
    # (one copy pass; feature order per column block is (dy, dx) major, cin minor)
    for tap in range(k * k):
        dy, dx = tap // k, tap % k
        delta = dy * wp + dx
        h2_ref[:, tap * cin:(tap + 1) * cin] = h_ref[delta:delta + lout, :]

    # ---- kxk conv: ONE fused lane-dense GEMM + bias + MFM --------------------
    y = jnp.dot(h2_ref[...], w_ref[...], preferred_element_type=jnp.float32) + b_ref[...]
    o_ref[0] = jnp.maximum(y[:, :cout_p], y[:, cout_p:]).astype(o_ref.dtype)


# ----------------------------------------------------------------------------
# Group forward wrapper (NCHW in / NCHW out, PyTorch-compatible params)
# ----------------------------------------------------------------------------
@functools.partial(jax.jit, static_argnames=("out_channels", "kernel_size", "stride", "padding"))
def group_forward(x_nchw, params, out_channels, kernel_size, stride, padding):
    N, Cin, H, W = x_nchw.shape
    k, s, p = kernel_size, stride, padding
    Hp, Wp = H + 2 * p, W + 2 * p
    Ho_d, Wo_d = Hp - k + 1, Wp - k + 1          # dense (stride-1) output extent
    Lin = (Hp + 1) * Wp                          # +1 spill row: flat k*k shifts stay in-bounds
    Lout = Ho_d * Wp                             # dense rows over the full padded width
    Cout_p = _round_up(out_channels, 128)        # lane-dense output channels
    KC = k * k * Cin                             # im2col contraction depth

    # --- input: NCHW -> NHWC (bf16), zero spatial pad, flatten pixels -> rows --
    x_nhwc = jnp.transpose(x_nchw, (0, 2, 3, 1)).astype(jnp.bfloat16)
    xp = jnp.pad(x_nhwc, ((0, 0), (p, p + 1), (p, p), (0, 0)))
    xflat = xp.reshape(N, Lin, Cin)

    # validity mask over the flattened padded grid (1 inside the original HxW)
    r = jnp.arange(Lin, dtype=jnp.int32)
    row, col = r // Wp, r % Wp
    valid = (row >= p) & (row < p + H) & (col >= p) & (col < p + W)
    mask = valid.astype(jnp.float32).reshape(Lin, 1)

    # --- conv_a weights: (2*Cin, Cin, 1, 1) -> (Cin, 2*Cin) bf16 ---------------
    wa_mat = jnp.transpose(params["wa"].reshape(2 * Cin, Cin), (1, 0)).astype(jnp.bfloat16)
    ba_mat = params["ba"].reshape(1, 2 * Cin).astype(jnp.float32)

    # --- conv weights: (2*Cout, Cin, k, k) -> (k*k*Cin, 2*Cout_p) bf16 ---------
    # row order = (dy, dx, cin), matching the im2col slab column order.
    w = jnp.transpose(params["w"], (2, 3, 1, 0)).reshape(KC, 2 * out_channels)
    pad_c = Cout_p - out_channels
    w_mat = jnp.concatenate(
        [jnp.pad(w[:, :out_channels], ((0, 0), (0, pad_c))),
         jnp.pad(w[:, out_channels:], ((0, 0), (0, pad_c)))], axis=-1).astype(jnp.bfloat16)
    b = params["b"].astype(jnp.float32)
    b_mat = jnp.concatenate([jnp.pad(b[:out_channels], (0, pad_c)),
                             jnp.pad(b[out_channels:], (0, pad_c))]).reshape(1, 2 * Cout_p)

    kernel = functools.partial(group_kernel, cin=Cin, cout_p=Cout_p, k=k, wp=Wp, lout=Lout)

    out = pl.pallas_call(
        kernel,
        out_shape=jax.ShapeDtypeStruct((N, Lout, Cout_p), jnp.float32),
        grid_spec=pltpu.PrefetchScalarGridSpec(
            num_scalar_prefetch=0,
            grid=(N,),                            # per-image steps
            in_specs=[
                pl.BlockSpec((1, Lin, Cin), lambda i: (i, 0, 0)),
                pl.BlockSpec((Lin, 1), lambda i: (0, 0)),
                pl.BlockSpec((Cin, 2 * Cin), lambda i: (0, 0)),
                pl.BlockSpec((1, 2 * Cin), lambda i: (0, 0)),
                pl.BlockSpec((KC, 2 * Cout_p), lambda i: (0, 0)),
                pl.BlockSpec((1, 2 * Cout_p), lambda i: (0, 0)),
            ],
            out_specs=pl.BlockSpec((1, Lout, Cout_p), lambda i: (i, 0, 0)),
            scratch_shapes=[
                pltpu.VMEM((Lin, Cin), jnp.bfloat16),   # masked conv_a activation h
                pltpu.VMEM((Lout, KC), jnp.bfloat16),   # in-VMEM im2col slab
            ],
        ),
        compiler_params=pltpu.CompilerParams(
            dimension_semantics=("parallel",),
            vmem_limit_bytes=_vmem_limit_bytes(),
        ),
    )(xflat, mask, wa_mat, ba_mat, w_mat, b_mat)

    # dense -> strided output; drop padded-width columns and padded channels.
    y = out.reshape(N, Ho_d, Wp, Cout_p)[:, ::s, :Wo_d:s, :out_channels]
    # TODO(synk): chain Group layers in this flat NHWC form to avoid the final
    #             NCHW transpose HBM round-trip when the consumer allows it.
    return jnp.transpose(y, (0, 3, 1, 2))        # back to NCHW


# ----------------------------------------------------------------------------
# Pure-JAX reference (lax.conv) for validation
# ----------------------------------------------------------------------------
def group_reference(x_nchw, params, out_channels, kernel_size, stride, padding):
    def mfm_conv(x, Wt, b, oc, s, p):
        y = jax.lax.conv_general_dilated(
            x, Wt, (s, s), [(p, p), (p, p)],
            dimension_numbers=("NCHW", "OIHW", "NCHW"))
        y = y + b.reshape(1, -1, 1, 1)
        return jnp.maximum(y[:, :oc], y[:, oc:])

    in_ch = x_nchw.shape[1]
    h = mfm_conv(x_nchw, params["wa"], params["ba"], in_ch, 1, 0)
    return mfm_conv(h, params["w"], params["b"], out_channels, stride, padding)


if __name__ == "__main__":
    # Small shapes consistent with Group(in_channels=4, out_channels=8, k=3, s=1, p=1)
    N, Cin, H, W = 2, 4, 16, 16
    Cout, K, S, P = 8, 3, 1, 1

    key = jax.random.PRNGKey(0)
    k1, k2, k3, k4, k5 = jax.random.split(key, 5)

    x = jax.random.normal(k1, (N, Cin, H, W), dtype=jnp.float32)
    params = {
        # conv_a = MFM(Cin, Cin, kernel=1, stride=1, pad=0): Conv2d(Cin, 2*Cin, 1)
        "wa": jax.random.normal(k2, (2 * Cin, Cin, 1, 1), dtype=jnp.float32) * 0.1,
        "ba": jax.random.normal(k3, (2 * Cin,), dtype=jnp.float32) * 0.1,
        # conv = MFM(Cin, Cout, K, S, P): Conv2d(Cin, 2*Cout, K)
        "w": jax.random.normal(k4, (2 * Cout, Cin, K, K), dtype=jnp.float32) * 0.1,
        "b": jax.random.normal(k5, (2 * Cout,), dtype=jnp.float32) * 0.1,
    }

    out = group_forward(x, params, Cout, K, S, P)
    out = jax.block_until_ready(out)

    ref = group_reference(x, params, Cout, K, S, P)
    assert out.shape == ref.shape == (N, Cout, H, W), (out.shape, ref.shape)
    # bf16 MXU inputs with f32 accumulation -> slightly relaxed tolerance.
    assert jnp.allclose(out, ref, rtol=2e-2, atol=2e-2), "mismatch vs. reference conv"

    print("KERNEL_OK")
</pallas_src>

<mosaic_0001>
module attributes {stable_mosaic.version = 11 : i64} {
  func.func @group_kernel(%arg0: i32, %arg1: memref<1x342x4xbf16, #tpu.memory_space<vmem>>, %arg2: memref<342x1xf32, #tpu.memory_space<vmem>>, %arg3: memref<4x8xbf16, #tpu.memory_space<vmem>>, %arg4: memref<1x8xf32, #tpu.memory_space<vmem>>, %arg5: memref<36x256xbf16, #tpu.memory_space<vmem>>, %arg6: memref<1x256xf32, #tpu.memory_space<vmem>>, %arg7: memref<1x288x128xf32, #tpu.memory_space<vmem>>, %arg8: memref<342x4xbf16, #tpu.memory_space<vmem>>, %arg9: memref<288x36xbf16, #tpu.memory_space<vmem>>) attributes {dimension_semantics = [#tpu.dimension_semantics<parallel>], iteration_bounds = array<i64: 2>, scalar_prefetch = 0 : i64, scratch_operands = 2 : i64, tpu.core_type = #tpu.core_type<tc>, window_params = [{transform_indices = @transform_0, window_bounds = array<i64: 1, 342, 4>}, {pipeline_mode = #tpu.pipeline_mode<synchronous>, transform_indices = @transform_1, window_bounds = array<i64: 342, 1>}, {pipeline_mode = #tpu.pipeline_mode<synchronous>, transform_indices = @transform_2, window_bounds = array<i64: 4, 8>}, {pipeline_mode = #tpu.pipeline_mode<synchronous>, transform_indices = @transform_3, window_bounds = array<i64: 1, 8>}, {pipeline_mode = #tpu.pipeline_mode<synchronous>, transform_indices = @transform_4, window_bounds = array<i64: 36, 256>}, {pipeline_mode = #tpu.pipeline_mode<synchronous>, transform_indices = @transform_5, window_bounds = array<i64: 1, 256>}, {transform_indices = @transform_6, window_bounds = array<i64: 1, 288, 128>}]} {
    %c0 = arith.constant 0 : index
    %c0_0 = arith.constant 0 : index
    %c0_1 = arith.constant 0 : index
    %0 = vector.load %arg1[%c0, %c0_0, %c0_1] : memref<1x342x4xbf16, #tpu.memory_space<vmem>>, vector<1x342x4xbf16>
    %1 = vector.shape_cast %0 : vector<1x342x4xbf16> to vector<342x4xbf16>
    %c0_2 = arith.constant 0 : index
    %c0_3 = arith.constant 0 : index
    %2 = vector.load %arg3[%c0_2, %c0_3] : memref<4x8xbf16, #tpu.memory_space<vmem>>, vector<4x8xbf16>
    %cst = arith.constant dense<0.000000e+00> : vector<342x8xf32>
    %3 = tpu.matmul %1, %2, %cst {dimension_numbers = #tpu.dot_dimension_numbers<[1], [0], [0], [1], [0, 0, 1, 1], [], []>} : vector<342x4xbf16>, vector<4x8xbf16>, vector<342x8xf32> -> vector<342x8xf32>
    %c0_4 = arith.constant 0 : index
    %c0_5 = arith.constant 0 : index
    %4 = vector.load %arg4[%c0_4, %c0_5] : memref<1x8xf32, #tpu.memory_space<vmem>>, vector<1x8xf32>
    %5 = vector.broadcast %4 : vector<1x8xf32> to vector<342x8xf32>
    %6 = arith.addf %3, %5 : vector<342x8xf32>
    %7 = vector.extract_strided_slice %6 {offsets = [0, 0], sizes = [342, 4], strides = [1, 1]} : vector<342x8xf32> to vector<342x4xf32>
    %8 = vector.extract_strided_slice %6 {offsets = [0, 4], sizes = [342, 4], strides = [1, 1]} : vector<342x8xf32> to vector<342x4xf32>
    %9 = arith.maximumf %7, %8 : vector<342x4xf32>
    %c0_6 = arith.constant 0 : index
    %c0_7 = arith.constant 0 : index
    %10 = vector.load %arg2[%c0_6, %c0_7] : memref<342x1xf32, #tpu.memory_space<vmem>>, vector<342x1xf32>
    %11 = vector.broadcast %10 : vector<342x1xf32> to vector<342x4xf32>
    %12 = arith.mulf %9, %11 : vector<342x4xf32>
    %13 = arith.truncf %12 : vector<342x4xf32> to vector<342x4xbf16>
    %c0_8 = arith.constant 0 : index
    %c0_9 = arith.constant 0 : index
    %14 = vector.load %arg8[%c0_8, %c0_9] : memref<342x4xbf16, #tpu.memory_space<vmem>>, vector<342x4xbf16>
    tpu.vector_store %arg8[%c0_8, %c0_9], %13 {strides = array<i32>} : memref<342x4xbf16, #tpu.memory_space<vmem>>, vector<342x4xbf16>,
    %c0_10 = arith.constant 0 : index
    %c0_11 = arith.constant 0 : index
    %15 = vector.load %arg8[%c0_10, %c0_11] : memref<342x4xbf16, #tpu.memory_space<vmem>>, vector<288x4xbf16>
    %c0_12 = arith.constant 0 : index
    %c0_13 = arith.constant 0 : index
    %16 = vector.load %arg9[%c0_12, %c0_13] : memref<288x36xbf16, #tpu.memory_space<vmem>>, vector<288x4xbf16>
    tpu.vector_store %arg9[%c0_12, %c0_13], %15 {strides = array<i32>} : memref<288x36xbf16, #tpu.memory_space<vmem>>, vector<288x4xbf16>,
    %c1 = arith.constant 1 : index
    %c0_14 = arith.constant 0 : index
    %17 = vector.load %arg8[%c1, %c0_14] : memref<342x4xbf16, #tpu.memory_space<vmem>>, vector<288x4xbf16>
    %c0_15 = arith.constant 0 : index
    %c4 = arith.constant 4 : index
    %18 = vector.load %arg9[%c0_15, %c4] : memref<288x36xbf16, #tpu.memory_space<vmem>>, vector<288x4xbf16>
    tpu.vector_store %arg9[%c0_15, %c4], %17 {strides = array<i32>} : memref<288x36xbf16, #tpu.memory_space<vmem>>, vector<288x4xbf16>,
    %c2 = arith.constant 2 : index
    %c0_16 = arith.constant 0 : index
    %19 = vector.load %arg8[%c2, %c0_16] : memref<342x4xbf16, #tpu.memory_space<vmem>>, vector<288x4xbf16>
    %c0_17 = arith.constant 0 : index
    %c8 = arith.constant 8 : index
    %20 = vector.load %arg9[%c0_17, %c8] : memref<288x36xbf16, #tpu.memory_space<vmem>>, vector<288x4xbf16>
    tpu.vector_store %arg9[%c0_17, %c8], %19 {strides = array<i32>} : memref<288x36xbf16, #tpu.memory_space<vmem>>, vector<288x4xbf16>,
    %c18 = arith.constant 18 : index
    %c0_18 = arith.constant 0 : index
    %21 = vector.load %arg8[%c18, %c0_18] : memref<342x4xbf16, #tpu.memory_space<vmem>>, vector<288x4xbf16>
    %c0_19 = arith.constant 0 : index
    %c12 = arith.constant 12 : index
    %22 = vector.load %arg9[%c0_19, %c12] : memref<288x36xbf16, #tpu.memory_space<vmem>>, vector<288x4xbf16>
    tpu.vector_store %arg9[%c0_19, %c12], %21 {strides = array<i32>} : memref<288x36xbf16, #tpu.memory_space<vmem>>, vector<288x4xbf16>,
    %c19 = arith.constant 19 : index
    %c0_20 = arith.constant 0 : index
    %23 = vector.load %arg8[%c19, %c0_20] : memref<342x4xbf16, #tpu.memory_space<vmem>>, vector<288x4xbf16>
    %c0_21 = arith.constant 0 : index
    %c16 = arith.constant 16 : index
    %24 = vector.load %arg9[%c0_21, %c16] : memref<288x36xbf16, #tpu.memory_space<vmem>>, vector<288x4xbf16>
    tpu.vector_store %arg9[%c0_21, %c16], %23 {strides = array<i32>} : memref<288x36xbf16, #tpu.memory_space<vmem>>, vector<288x4xbf16>,
    %c20 = arith.constant 20 : index
    %c0_22 = arith.constant 0 : index
    %25 = vector.load %arg8[%c20, %c0_22] : memref<342x4xbf16, #tpu.memory_space<vmem>>, vector<288x4xbf16>
    %c0_23 = arith.constant 0 : index
    %c20_24 = arith.constant 20 : index
    %26 = vector.load %arg9[%c0_23, %c20_24] : memref<288x36xbf16, #tpu.memory_space<vmem>>, vector<288x4xbf16>
    tpu.vector_store %arg9[%c0_23, %c20_24], %25 {strides = array<i32>} : memref<288x36xbf16, #tpu.memory_space<vmem>>, vector<288x4xbf16>,
    %c36 = arith.constant 36 : index
    %c0_25 = arith.constant 0 : index
    %27 = vector.load %arg8[%c36, %c0_25] : memref<342x4xbf16, #tpu.memory_space<vmem>>, vector<288x4xbf16>
    %c0_26 = arith.constant 0 : index
    %c24 = arith.constant 24 : index
    %28 = vector.load %arg9[%c0_26, %c24] : memref<288x36xbf16, #tpu.memory_space<vmem>>, vector<288x4xbf16>
    tpu.vector_store %arg9[%c0_26, %c24], %27 {strides = array<i32>} : memref<288x36xbf16, #tpu.memory_space<vmem>>, vector<288x4xbf16>,
    %c37 = arith.constant 37 : index
    %c0_27 = arith.constant 0 : index
    %29 = vector.load %arg8[%c37, %c0_27] : memref<342x4xbf16, #tpu.memory_space<vmem>>, vector<288x4xbf16>
    %c0_28 = arith.constant 0 : index
    %c28 = arith.constant 28 : index
    %30 = vector.load %arg9[%c0_28, %c28] : memref<288x36xbf16, #tpu.memory_space<vmem>>, vector<288x4xbf16>
    tpu.vector_store %arg9[%c0_28, %c28], %29 {strides = array<i32>} : memref<288x36xbf16, #tpu.memory_space<vmem>>, vector<288x4xbf16>,
    %c38 = arith.constant 38 : index
    %c0_29 = arith.constant 0 : index
    %31 = vector.load %arg8[%c38, %c0_29] : memref<342x4xbf16, #tpu.memory_space<vmem>>, vector<288x4xbf16>
    %c0_30 = arith.constant 0 : index
    %c32 = arith.constant 32 : index
    %32 = vector.load %arg9[%c0_30, %c32] : memref<288x36xbf16, #tpu.memory_space<vmem>>, vector<288x4xbf16>
    tpu.vector_store %arg9[%c0_30, %c32], %31 {strides = array<i32>} : memref<288x36xbf16, #tpu.memory_space<vmem>>, vector<288x4xbf16>,
    %c0_31 = arith.constant 0 : index
    %c0_32 = arith.constant 0 : index
    %33 = vector.load %arg9[%c0_31, %c0_32] : memref<288x36xbf16, #tpu.memory_space<vmem>>, vector<288x36xbf16>
    %c0_33 = arith.constant 0 : index
    %c0_34 = arith.constant 0 : index
    %34 = vector.load %arg5[%c0_33, %c0_34] : memref<36x256xbf16, #tpu.memory_space<vmem>>, vector<36x256xbf16>
    %cst_35 = arith.constant dense<0.000000e+00> : vector<288x256xf32>
    %35 = tpu.matmul %33, %34, %cst_35 {dimension_numbers = #tpu.dot_dimension_numbers<[1], [0], [0], [1], [0, 0, 1, 1], [], []>} : vector<288x36xbf16>, vector<36x256xbf16>, vector<288x256xf32> -> vector<288x256xf32>
    %c0_36 = arith.constant 0 : index
    %c0_37 = arith.constant 0 : index
    %36 = vector.load %arg6[%c0_36, %c0_37] : memref<1x256xf32, #tpu.memory_space<vmem>>, vector<1x256xf32>
    %37 = vector.broadcast %36 : vector<1x256xf32> to vector<288x256xf32>
    %38 = arith.addf %35, %37 : vector<288x256xf32>
    %39 = vector.extract_strided_slice %38 {offsets = [0, 0], sizes = [288, 128], strides = [1, 1]} : vector<288x256xf32> to vector<288x128xf32>
    %40 = vector.extract_strided_slice %38 {offsets = [0, 128], sizes = [288, 128], strides = [1, 1]} : vector<288x256xf32> to vector<288x128xf32>
    %41 = arith.maximumf %39, %40 : vector<288x128xf32>
    %c0_38 = arith.constant 0 : index
    %c0_39 = arith.constant 0 : index
    %c0_40 = arith.constant 0 : index
    %42 = vector.load %arg7[%c0_38, %c0_39, %c0_40] : memref<1x288x128xf32, #tpu.memory_space<vmem>>, vector<1x288x128xf32>
    %43 = vector.shape_cast %42 : vector<1x288x128xf32> to vector<288x128xf32>
    %44 = vector.shape_cast %41 : vector<288x128xf32> to vector<1x288x128xf32>
    tpu.vector_store %arg7[%c0_38, %c0_39, %c0_40], %44 {strides = array<i32>} : memref<1x288x128xf32, #tpu.memory_space<vmem>>, vector<1x288x128xf32>,
    return
  }
  func.func @transform_0(%arg0: i32) -> (i32, i32, i32) {
    %c0_i32 = arith.constant 0 : i32
    %c0_i32_0 = arith.constant 0 : i32
    %c0_i32_1 = arith.constant 0 : i32
    return %arg0, %c0_i32, %c0_i32_0 : i32, i32, i32
  }
  func.func @transform_1(%arg0: i32) -> (i32, i32) {
    %c0_i32 = arith.constant 0 : i32
    %c0_i32_0 = arith.constant 0 : i32
    %c0_i32_1 = arith.constant 0 : i32
    return %c0_i32, %c0_i32_0 : i32, i32
  }
  func.func @transform_2(%arg0: i32) -> (i32, i32) {
    %c0_i32 = arith.constant 0 : i32
    %c0_i32_0 = arith.constant 0 : i32
    %c0_i32_1 = arith.constant 0 : i32
    return %c0_i32, %c0_i32_0 : i32, i32
  }
  func.func @transform_3(%arg0: i32) -> (i32, i32) {
    %c0_i32 = arith.constant 0 : i32
    %c0_i32_0 = arith.constant 0 : i32
    %c0_i32_1 = arith.constant 0 : i32
    return %c0_i32, %c0_i32_0 : i32, i32
  }
  func.func @transform_4(%arg0: i32) -> (i32, i32) {
    %c0_i32 = arith.constant 0 : i32
    %c0_i32_0 = arith.constant 0 : i32
    %c0_i32_1 = arith.constant 0 : i32
    return %c0_i32, %c0_i32_0 : i32, i32
  }
  func.func @transform_5(%arg0: i32) -> (i32, i32) {
    %c0_i32 = arith.constant 0 : i32
    %c0_i32_0 = arith.constant 0 : i32
    %c0_i32_1 = arith.constant 0 : i32
    return %c0_i32, %c0_i32_0 : i32, i32
  }
  func.func @transform_6(%arg0: i32) -> (i32, i32, i32) {
    %c0_i32 = arith.constant 0 : i32
    %c0_i32_0 = arith.constant 0 : i32
    %c0_i32_1 = arith.constant 0 : i32
    return %arg0, %c0_i32, %c0_i32_0 : i32, i32, i32
  }
}

</mosaic_0001>

<bundles_post_ra>
// kernel: group_forward.1
= control target key start
LH: loop header
LB: loop body
LE: loop exit
PB: predicated region body
PF: predicated region fallthrough
CT: control target
= control target key end

     0   :  { %s5039_s21 = smov 0   ;;  %s7067_s0 = inlined_call_operand.vmem [shape: bf16[2,342,4], index: 0, kind: input, shape index: {}]   ;;  %s7068_s1 = inlined_call_operand.vmem [shape: f32[342,1], index: 1, kind: input, shape index: {}]   ;;  %s7069_s2 = inlined_call_operand.vmem [shape: bf16[4,8], index: 2, kind: input, shape index: {}]   ;;  %s7070_s3 = inlined_call_operand.vmem [shape: f32[1,8], index: 3, kind: input, shape index: {}]   ;;  %s7071_s4 = inlined_call_operand.vmem [shape: bf16[36,256], index: 4, kind: input, shape index: {}]   ;;  %s7072_s5 = inlined_call_operand.vmem [shape: f32[1,256], index: 5, kind: input, shape index: {}]   ;;  %s7073_s6 = inlined_call_operand.vmem [shape: f32[2,288,128], index: 6, kind: output, shape index: {}]  }
   0x1 LB: > { %s4351_s22 = sadd.s32 4294967295, %s4992_s21   ;;  %p4355_p0 = scmp.ge.s32.totalorder %s4992_s21, 1  ;;  %s4992_s21 = sphi %s5039_s21, %s16_s21  }
   0x2   : > { %p212_p1 = scmp.lt.s32.totalorder %s4992_s21, 3 }
   0x4   : > { %p213_p2 = pnand %p4355_p0, %p212_p1 }
   0x6   : > { %216 = sbr.rel (%p213_p2) target bundleno = 1025 (0x401), region = 44 }
   0xd   : > { %v296_v0 = vld [vmem:[%s7069_s2] sm:$0x3]  ;;  %vm479_vm0 = vcmask 1041408   ;;  %p242_p3 = scmp.lt.s32.totalorder %s4351_s22, 1  ;;  %v7074_v2 = vmov 0   ;;  %v915_v3 = vld [vmem:[%s7068_s1 + $0x48] sm:$0xff] }
   0xe   : > { %4761 = vmatprep.subr.msk.bf16.mxu0 %vm479_vm0, %v296_v0  ;;  %v481_v1 = vsel %vm479_vm0, %v296_v0, 0  ;;  %4783 = vset.pattern.permute.xlu1 %v7074_v2  ;;  %v914_v4 = vld [vmem:[%s7068_s1 + $0x40] sm:$0xff]  ;;  %v916_v5 = vld [vmem:[%s7068_s1 + $0x50] sm:$0xff]  ;;  %v917_v6 = vld [vmem:[%s7068_s1 + $0x58] sm:$0xff]  ;;  %vm412_vm1 = vcmask 31744   ;;  %vm1380_vm2 = vcmask 27648  }
   0xf   : > { %4710 = vmatpush3.bf16.msra.mxu0 %v481_v1  ;;  %s7204_s22 = smov (!%p242_p3, %s4351_s22), 1  ;;  %996 = vperm.xlu1 %4783, %v915_v3   ;;  %v918_v7 = vld [vmem:[%s7068_s1 + $0x60] sm:$0xff]  ;;  %v919_v9 = vld [vmem:[%s7068_s1 + $0x68] sm:$0xff]  ;;  %v920_v12 = vld [vmem:[%s7068_s1 + $0x70] sm:$0xff]  ;;  %vm2069_vm3 = vcmask 1046528   ;;  %s4996_s28 = smov 8  }
  0x10   : > { %4782 = vset.pattern.permute.xlu0 %v7074_v2  ;;  %4083 = vmatprep.mubr.bf16.mxu1 %v7074_v2  ;;  %s4762_s7 = smul.u32 172, %s7204_s22  ;;  %v922_v13 = vld [vmem:[%s7068_s1 + $0x80] sm:$0xff]  ;;  %v921_v14 = vld [vmem:[%s7068_s1 + $0x78] sm:$0xff]  ;;  %v923_v17 = vld [vmem:[%s7068_s1 + $0x88] sm:$0xff]  ;;  %vm1717_vm4 = vsmask.f32 7424 }
  0x11   : > { %991 = vperm.xlu0 %4782, %v914_v4   ;;  %v924_v18 = vld [vmem:[%s7068_s1 + $0x90] sm:$0xff]  ;;  %v926_v19 = vld [vmem:[%s7068_s1 + $0xa0] sm:$0xff]  ;;  %v925_v20 = vld [vmem:[%s7068_s1 + $0x98] sm:$0xff]  ;;  %vm2924_vm5 = vcmask 1045504   ;;  %s4997_s29 = smov 4   ;;  %s4998_s30 = smov 12  }
  0x12   : > { %s5073_s12 = scalar_lea.vmem %s7067_s0, %s4762_s7  ;;  %v927_v23 = vld [vmem:[%s7068_s1 + $0xa8] sm:$0xff]  ;;  %v928_v24 = vld [vmem:[%s7068_s1 + $0xb0] sm:$0xff]  ;;  %v929_v25 = vld [vmem:[%s7068_s1 + $0xb8] sm:$0xff]  ;;  %s4999_s7 = smov 20   ;;  %vm3779_vm6 = vcmask 1044480   ;;  %vm1920_vm9 = vcmask 64544  }
  0x13   : > { %1001 = vperm.xlu1 %4783, %v916_v5   ;;  %v4784_v8 = vld [vmem:[%s5073_s12] sm:$0xff]   ;;  %v4785_v10 = vld [vmem:[%s5073_s12 + $0x8] sm:$0xff]   ;;  %v4786_v11 = vld [vmem:[%s5073_s12 + $0x10] sm:$0xff]   ;;  %s5000_s8 = smov 24   ;;  %s5001_s9 = smov 32   ;;  %vm2161_vm10 = vcmask 97344  }
  0x14   : > { %4711 = vmatprep.mubr.msk.bf16.mxu0 %vm412_vm1, %v4784_v8  ;;  %v4787_v15 = vld [vmem:[%s5073_s12 + $0x18] sm:$0xff]   ;;  %v4788_v16 = vld [vmem:[%s5073_s12 + $0x20] sm:$0xff]   ;;  %v4789_v21 = vld [vmem:[%s5073_s12 + $0x28] sm:$0xff]   ;;  %vm2550_vm7 = vsmask.f32 6400  ;;  %s5002_s10 = smov 16  }
  0x15   : > { %1006 = vperm.xlu0 %4782, %v917_v6   ;;  %4712 = vmatmul.mubr.msk.bf16.vlgmr.msra.gmra.mrb[0].mxu0 %vm412_vm1, %v4785_v10  ;;  %v4790_v22 = vld [vmem:[%s5073_s12 + $0x30] sm:$0xff]   ;;  %v4791_v26 = vld [vmem:[%s5073_s12 + $0x38] sm:$0xff]   ;;  %v4792_v27 = vld [vmem:[%s5073_s12 + $0x40] sm:$0xff]   ;;  %vm3405_vm8 = vsmask.f32 5376  ;;  %s5003_s11 = smov 28  }
  0x16   : > { %4715 = vmatprep.mubr.msk.bf16.mxu0 %vm412_vm1, %v4786_v11  ;;  %v930_v28 = vld [vmem:[%s7068_s1 + $0xc0] sm:$0xff]  ;;  %v931_v29 = vld [vmem:[%s7068_s1 + $0xc8] sm:$0xff]  ;;  %v932_v30 = vld [vmem:[%s7068_s1 + $0xd0] sm:$0xff]  ;;  %vm2401_vm11 = vcmask 130144   ;;  %vm2775_vm12 = vcmask 162944   ;;  %vm3016_vm13 = vcmask 195744  }
  0x17   : > { %1011 = vperm.xlu1 %4783, %v918_v7   ;;  %v933_v31 = vld [vmem:[%s7068_s1 + $0xd8] sm:$0xff]  ;;  %v4793_v32 = vld [vmem:[%s5073_s12 + $0x48] sm:$0xff]   ;;  %v4794_v33 = vld [vmem:[%s5073_s12 + $0x50] sm:$0xff]   ;;  %vm3256_vm14 = vcmask 228544   ;;  %vm3630_vm15 = vcmask 261344  }
  0x18   : > { %v934_v34 = vld [vmem:[%s7068_s1 + $0xe0] sm:$0xff]  ;;  %v935_v35 = vld [vmem:[%s7068_s1 + $0xe8] sm:$0xff]  ;;  %v936_v36 = vld [vmem:[%s7068_s1 + $0xf0] sm:$0xff] }
  0x19   : > { %1016 = vperm.xlu0 %4782, %v919_v9   ;;  %v937_v37 = vld [vmem:[%s7068_s1 + $0xf8] sm:$0xff]  ;;  %v4796_v39 = vld [vmem:[%s5073_s12 + $0x60] sm:$0xff]   ;;  %v939_v41 = vld [vmem:[%s7068_s1 + $0x108] sm:$0xff] }
  0x1a   : > { %v4795_v38 = vld [vmem:[%s5073_s12 + $0x58] sm:$0xff]   ;;  %v938_v40 = vld [vmem:[%s7068_s1 + $0x100] sm:$0xff]  ;;  %v907_v43 = vld [vmem:[%s7068_s1 + $0x8] sm:$0xff] }
  0x1b   : > { %1021 = vperm.xlu1 %4783, %v920_v12   ;;  %v906_v42 = vld [vmem:[%s7068_s1] sm:$0xff]  ;;  %v4797_v44 = vld [vmem:[%s5073_s12 + $0x68] sm:$0xff]   ;;  %v4798_v45 = vld [vmem:[%s5073_s12 + $0x70] sm:$0xff]  }
  0x1c   : > { %v908_v46 = vld [vmem:[%s7068_s1 + $0x10] sm:$0xff]  ;;  %v909_v47 = vld [vmem:[%s7068_s1 + $0x18] sm:$0xff]  ;;  %v910_v48 = vld [vmem:[%s7068_s1 + $0x20] sm:$0xff] }
  0x1d   : > { %1026 = vperm.xlu0 %4782, %v921_v14   ;;  %4716 = vmatmul.mubr.msk.bf16.gmra.mrb[4].mxu0 %vm412_vm1, %v4787_v15  ;;  %v911_v49 = vld [vmem:[%s7068_s1 + $0x28] sm:$0xff]  ;;  %v4799_v50 = vld [vmem:[%s5073_s12 + $0x78] sm:$0xff]   ;;  %v4800_v51 = vld [vmem:[%s5073_s12 + $0x80] sm:$0xff]  }
  0x1e   : > { %4719 = vmatprep.mubr.msk.bf16.mxu0 %vm412_vm1, %v4788_v16  ;;  %v912_v52 = vld [vmem:[%s7068_s1 + $0x30] sm:$0xff]  ;;  %v913_v53 = vld [vmem:[%s7068_s1 + $0x38] sm:$0xff]  ;;  %v4801_v56 = vld [vmem:[%s5073_s12 + $0x88] sm:$0xff]  }
  0x1f   : > { %1031 = vperm.xlu1 %4783, %v922_v13   ;;  %v940_v54 = vld [vmem:[%s7068_s1 + $0x110] sm:$0xff]  ;;  %v941_v55 = vld [vmem:[%s7068_s1 + $0x118] sm:$0xff]  ;;  %v942_v58 = vld [vmem:[%s7068_s1 + $0x120] sm:$0xff] }
  0x20   : > { %v4802_v57 = vld [vmem:[%s5073_s12 + $0x90] sm:$0xff]   ;;  %v943_v59 = vld [vmem:[%s7068_s1 + $0x128] sm:$0xff]  ;;  %v945_v61 = vld [vmem:[%s7068_s1 + $0x138] sm:$0xff] }
  0x21   : > { %1036 = vperm.xlu0 %4782, %v923_v17   ;;  %v944_v60 = vld [vmem:[%s7068_s1 + $0x130] sm:$0xff]  ;;  %v4803_v62 = vld [vmem:[%s5073_s12 + $0x98] sm:$0xff]   ;;  %v4804_v63 = vld [vmem:[%s5073_s12 + $0xa0] sm:$0xff]  }
  0x22   : > { %v946_v0 = vld [vmem:[%s7068_s1 + $0x140] sm:$0xff]  ;;  %v4805_v1 = vld [vmem:[%s5073_s12 + $0xa8] ss:$0 sps:$4 sm:$0x77]   ;;  %s4995_s12 = smov 124  }
  0x23   : > { %1041 = vperm.xlu1 %4783, %v924_v18   ;;  %v5236_v4 = vld [vmem:[%s7070_s3] ss:$0 sm:$0xff] }
  0x25   : > { %1046 = vperm.xlu0 %4782, %v925_v20   ;;  %4720 = vmatmul.mubr.msk.bf16.gmra.mrb[8].mxu0 %vm412_vm1, %v4789_v21 }
  0x26   : > { %4723 = vmatprep.mubr.msk.bf16.mxu0 %vm412_vm1, %v4790_v22 }
  0x27   : > { %1051 = vperm.xlu1 %4783, %v926_v19  }
  0x29   : > { %1056 = vperm.xlu0 %4782, %v927_v23  }
  0x2b   : > { %1061 = vperm.xlu1 %4783, %v928_v24  }
  0x2d   : > { %1066 = vperm.xlu0 %4782, %v929_v25   ;;  %4724 = vmatmul.mubr.msk.bf16.gmra.mrb[12].mxu0 %vm412_vm1, %v4791_v26 }
  0x2e   : > { %4727 = vmatprep.mubr.msk.bf16.mxu0 %vm412_vm1, %v4792_v27 }
  0x2f   : > { %1071 = vperm.xlu1 %4783, %v930_v28  }
  0x31   : > { %1076 = vperm.xlu0 %4782, %v931_v29  }
  0x33   : > { %1081 = vperm.xlu1 %4783, %v932_v30  }
  0x35   : > { %1086 = vperm.xlu0 %4782, %v933_v31   ;;  %4728 = vmatmul.mubr.msk.bf16.gmra.mrb[16].mxu0 %vm412_vm1, %v4793_v32 }
  0x36   : > { %4731 = vmatprep.mubr.msk.bf16.mxu0 %vm412_vm1, %v4794_v33 }
  0x37   : > { %1091 = vperm.xlu1 %4783, %v934_v34  }
  0x39   : > { %1096 = vperm.xlu0 %4782, %v935_v35  }
  0x3b   : > { %1101 = vperm.xlu1 %4783, %v936_v36  }
  0x3d   : > { %1106 = vperm.xlu0 %4782, %v937_v37   ;;  %4732 = vmatmul.mubr.msk.bf16.gmra.mrb[20].mxu0 %vm412_vm1, %v4795_v38 }
  0x3e   : > { %4735 = vmatprep.mubr.msk.bf16.mxu0 %vm412_vm1, %v4796_v39 }
  0x3f   : > { %1111 = vperm.xlu1 %4783, %v938_v40  }
  0x41   : > { %1116 = vperm.xlu0 %4782, %v939_v41  }
  0x43   : > { %951 = vperm.xlu1 %4783, %v906_v42  }
  0x45   : > { %956 = vperm.xlu0 %4782, %v907_v43   ;;  %4736 = vmatmul.mubr.msk.bf16.gmra.mrb[24].mxu0 %vm412_vm1, %v4797_v44 }
  0x46   : > { %4739 = vmatprep.mubr.msk.bf16.mxu0 %vm412_vm1, %v4798_v45 }
  0x47   : > { %961 = vperm.xlu1 %4783, %v908_v46  }
  0x49   : > { %966 = vperm.xlu0 %4782, %v909_v47  }
  0x4b   : > { %971 = vperm.xlu1 %4783, %v910_v48  }
  0x4d   : > { %976 = vperm.xlu0 %4782, %v911_v49   ;;  %4740 = vmatmul.mubr.msk.bf16.gmra.mrb[28].mxu0 %vm412_vm1, %v4799_v50 }
  0x4e   : > { %4743 = vmatprep.mubr.msk.bf16.mxu0 %vm412_vm1, %v4800_v51 }
  0x4f   : > { %981 = vperm.xlu1 %4783, %v912_v52  }
  0x51   : > { %986 = vperm.xlu0 %4782, %v913_v53  }
  0x53   : > { %1121 = vperm.xlu1 %4783, %v940_v54  }
  0x55   : > { %1126 = vperm.xlu0 %4782, %v941_v55   ;;  %4744 = vmatmul.mubr.msk.bf16.gmra.mrb[32].mxu0 %vm412_vm1, %v4801_v56 }
  0x56   : > { %4747 = vmatprep.mubr.msk.bf16.mxu0 %vm412_vm1, %v4802_v57 }
  0x57   : > { %1131 = vperm.xlu1 %4783, %v942_v58  }
  0x59   : > { %1136 = vperm.xlu0 %4782, %v943_v59  }
  0x5b   : > { %1141 = vperm.xlu1 %4783, %v944_v60  }
  0x5d   : > { %1146 = vperm.xlu0 %4782, %v945_v61   ;;  %4748 = vmatmul.mubr.msk.bf16.gmra.mrb[36].mxu0 %vm412_vm1, %v4803_v62 }
  0x5e   : > { %4751 = vmatprep.mubr.msk.bf16.mxu0 %vm412_vm1, %v4804_v63 }
  0x5f   : > { %1151 = vperm.xlu1 %4783, %v946_v0  }
  0x65   : > { %4752 = vmatmul.mubr.msk.bf16.gmra.mrb[40].mxu0 %vm412_vm1, %v4805_v1 }
  0x66   : > { %4043 = vmatprep.mubr.bf16.mxu0 %v7074_v2 }
  0x8e   : > { %v5231_v3 = vpop.permute.xlu1 %996 }
  0x90   : > { %v5240_v6 = vpop.permute.xlu0 %991 }
  0x92   : > { %v5238_v5 = vpop.permute.xlu1 %1001 }
  0x94   : > { %v5257_v15 = vpop.permute.xlu0 %1006 }
  0x96   : > { %v5252_v13 = vpop.permute.xlu1 %1011 }
  0x98   : > { %v5274_v24 = vpop.permute.xlu0 %1016 }
  0x9a   : > { %v5269_v21 = vpop.permute.xlu1 %1021 }
  0x9c   : > { %v5295_v31 = vpop.permute.xlu0 %1026 }
  0x9e   : > { %v5288_v28 = vpop.permute.xlu1 %1031 }
  0xa0   : > { %v5312_v38 = vpop.permute.xlu0 %1036 }
  0xa2   : > { %v5307_v36 = vpop.permute.xlu1 %1041 }
  0xa4   : > { %v5330_v46 = vpop.permute.xlu0 %1046 }
  0xa6   : > { %v5326_v45 = vpop.permute.xlu1 %1051 }
  0xa8   : > { %v5350_v56 = vpop.permute.xlu0 %1056 }
  0xaa   : > { %v5345_v53 = vpop.permute.xlu1 %1061 }
  0xac   : > { %v5371_v63 = vpop.permute.xlu0 %1066 }
  0xae   : > { %v5364_v60 = vpop.permute.xlu1 %1071 }
  0xaf   : > { %7108 = vst [vmem:[#allocation4_spill] sm:$0xff] %v5364_v60 }
  0xe8   : > { %v4713_v7 = vpop.f32.mrb[0].mxu0 }
  0xe9   : > { %v5243_v8 = vadd.f32 %v4713_v7, %v5236_v4  ;;  %v517_v9 = vpop.f32.mrb[1].mxu0 }
  0xea   : > { %v5246_v10 = vadd.f32 %v5236_v4, %v517_v9  ;;  %v4714_v11 = vpop.f32.mrb[2].mxu0 }
  0xeb   : > { %738 = vrot.lane.b32.xlu1 %v5243_v8, %s4995_s12  ;;  %v520_v12 = vpop.f32.mrb[3].mxu0  ;;  %v5255_v14 = vadd.f32 %v4714_v11, %v5236_v4 }
  0xec   : > { %734 = vrot.lane.b32.xlu0 %v5246_v10, %s4995_s12  ;;  %v5260_v16 = vadd.f32 %v5236_v4, %v520_v12  ;;  %v5386_v12 = vpop.permute.xlu1 %1081 }
  0xed   : > { %7109 = vst [vmem:[#allocation5_spill] sm:$0xff] %v5386_v12 }
  0xef   : > { %740 = vrot.lane.b32.xlu1 %v5255_v14, %s4995_s12 }
  0xf0   : > { %v4717_v17 = vpop.f32.mrb[4].mxu0  ;;  %736 = vrot.lane.b32.xlu0 %v5260_v16, %s4995_s12 }
  0xf1   : > { %v5267_v18 = vadd.f32 %v4717_v17, %v5236_v4  ;;  %v533_v19 = vpop.f32.mrb[5].mxu0  ;;  %v5388_v17 = vpop.permute.xlu0 %1076 }
  0xf2   : > { %v4718_v20 = vpop.f32.mrb[6].mxu0  ;;  %v5281_v25 = vadd.f32 %v5236_v4, %v533_v19  ;;  %7110 = vst [vmem:[#allocation6_spill] sm:$0xff] %v5388_v17 }
  0xf3   : > { %v5272_v22 = vadd.f32 %v4718_v20, %v5236_v4  ;;  %v536_v23 = vpop.f32.mrb[7].mxu0 }
  0xf4   : > { %746 = vrot.lane.b32.xlu0 %v5267_v18, %s4995_s12  ;;  %v5284_v26 = vadd.f32 %v5236_v4, %v536_v23 }
  0xf5   : > { %748 = vrot.lane.b32.xlu1 %v5272_v22, %s4995_s12 }
  0xf8   : > { %v4721_v27 = vpop.f32.mrb[8].mxu0  ;;  %742 = vrot.lane.b32.xlu0 %v5281_v25, %s4995_s12 }
  0xf9   : > { %v5291_v29 = vadd.f32 %v4721_v27, %v5236_v4  ;;  %v549_v30 = vpop.f32.mrb[9].mxu0  ;;  %744 = vrot.lane.b32.xlu1 %v5284_v26, %s4995_s12 }
  0xfa   : > { %v4722_v32 = vpop.f32.mrb[10].mxu0  ;;  %v5305_v35 = vadd.f32 %v5236_v4, %v549_v30 }
  0xfb   : > { %v5298_v33 = vadd.f32 %v4722_v32, %v5236_v4  ;;  %v552_v34 = vpop.f32.mrb[11].mxu0 }
  0xfc   : > { %754 = vrot.lane.b32.xlu0 %v5291_v29, %s4995_s12  ;;  %v5310_v37 = vadd.f32 %v5236_v4, %v552_v34 }
  0xfd   : > { %756 = vrot.lane.b32.xlu1 %v5298_v33, %s4995_s12 }
 0x100   : > { %v4725_v39 = vpop.f32.mrb[12].mxu0  ;;  %750 = vrot.lane.b32.xlu0 %v5305_v35, %s4995_s12 }
 0x101   : > { %v5317_v40 = vadd.f32 %v4725_v39, %v5236_v4  ;;  %v565_v41 = vpop.f32.mrb[13].mxu0  ;;  %752 = vrot.lane.b32.xlu1 %v5310_v37, %s4995_s12  ;;  %v5405_v39 = vpop.permute.xlu1 %1091 }
 0x102   : > { %v4726_v42 = vpop.f32.mrb[14].mxu0  ;;  %v5333_v47 = vadd.f32 %v5236_v4, %v565_v41  ;;  %7112 = vst [vmem:[#allocation8_spill] sm:$0xff] %v5405_v39 }
 0x103   : > { %v5322_v43 = vadd.f32 %v4726_v42, %v5236_v4  ;;  %v568_v44 = vpop.f32.mrb[15].mxu0  ;;  %v5412_v42 = vpop.permute.xlu0 %1086 }
 0x104   : > { %762 = vrot.lane.b32.xlu0 %v5317_v40, %s4995_s12  ;;  %v5336_v48 = vadd.f32 %v5236_v4, %v568_v44  ;;  %7114 = vst [vmem:[#allocation10_spill] sm:$0xff] %v5412_v42 }
 0x105   : > { %764 = vrot.lane.b32.xlu1 %v5322_v43, %s4995_s12 }
 0x108   : > { %v4729_v49 = vpop.f32.mrb[16].mxu0  ;;  %758 = vrot.lane.b32.xlu0 %v5333_v47, %s4995_s12 }
 0x109   : > { %v5341_v50 = vadd.f32 %v4729_v49, %v5236_v4  ;;  %v581_v51 = vpop.f32.mrb[17].mxu0  ;;  %760 = vrot.lane.b32.xlu1 %v5336_v48, %s4995_s12 }
 0x10a   : > { %v4730_v52 = vpop.f32.mrb[18].mxu0  ;;  %v5353_v57 = vadd.f32 %v5236_v4, %v581_v51 }
 0x10b   : > { %v5348_v54 = vadd.f32 %v4730_v52, %v5236_v4  ;;  %v584_v55 = vpop.f32.mrb[19].mxu0 }
 0x10c   : > { %770 = vrot.lane.b32.xlu0 %v5341_v50, %s4995_s12  ;;  %v5360_v58 = vadd.f32 %v5236_v4, %v584_v55  ;;  %v5421_v55 = vpop.permute.xlu1 %1101 }
 0x10d   : > { %772 = vrot.lane.b32.xlu1 %v5348_v54, %s4995_s12  ;;  %7116 = vst [vmem:[#allocation12_spill] sm:$0xff] %v5421_v55 }
 0x110   : > { %v4733_v59 = vpop.f32.mrb[20].mxu0  ;;  %766 = vrot.lane.b32.xlu0 %v5353_v57, %s4995_s12 }
 0x111   : > { %v5367_v61 = vadd.f32 %v4733_v59, %v5236_v4  ;;  %v597_v62 = vpop.f32.mrb[21].mxu0  ;;  %768 = vrot.lane.b32.xlu1 %v5360_v58, %s4995_s12 }
 0x112   : > { %v4734_v0 = vpop.f32.mrb[22].mxu0  ;;  %v5377_v9 = vadd.f32 %v5236_v4, %v597_v62 }
 0x113   : > { %v5374_v1 = vadd.f32 %v4734_v0, %v5236_v4  ;;  %v600_v7 = vpop.f32.mrb[23].mxu0  ;;  %v5426_v0 = vpop.permute.xlu0 %1096 }
 0x114   : > { %778 = vrot.lane.b32.xlu0 %v5367_v61, %s4995_s12  ;;  %v5384_v11 = vadd.f32 %v5236_v4, %v600_v7  ;;  %7118 = vst [vmem:[#allocation14_spill] sm:$0xff] %v5426_v0 }
 0x115   : > { %780 = vrot.lane.b32.xlu1 %v5374_v1, %s4995_s12 }
 0x118   : > { %v4737_v19 = vpop.f32.mrb[24].mxu0  ;;  %774 = vrot.lane.b32.xlu0 %v5377_v9, %s4995_s12 }
 0x119   : > { %v5393_v20 = vadd.f32 %v4737_v19, %v5236_v4  ;;  %v613_v23 = vpop.f32.mrb[25].mxu0  ;;  %776 = vrot.lane.b32.xlu1 %v5384_v11, %s4995_s12 }
 0x11a   : > { %v4738_v27 = vpop.f32.mrb[26].mxu0  ;;  %v5401_v34 = vadd.f32 %v5236_v4, %v613_v23 }
 0x11b   : > { %v5398_v30 = vadd.f32 %v4738_v27, %v5236_v4  ;;  %v616_v32 = vpop.f32.mrb[27].mxu0  ;;  %v5440_v27 = vpop.permute.xlu1 %1111 }
 0x11c   : > { %7111 = vst [vmem:[#allocation7_spill] sm:$0xff] %v5401_v34  ;;  %786 = vrot.lane.b32.xlu0 %v5393_v20, %s4995_s12  ;;  %v5410_v41 = vadd.f32 %v5236_v4, %v616_v32  ;;  %7121 = vst [vmem:[#allocation17_spill] sm:$0xff] %v5440_v27 }
 0x11d   : > { %788 = vrot.lane.b32.xlu1 %v5398_v30, %s4995_s12 }
 0x11e   : > { %7113 = vst [vmem:[#allocation9_spill] sm:$0xff] %v5410_v41 }
 0x11f   : > { %v952_v27 = vpop.permute.xlu1 %951 }
 0x120   : > { %v4741_v44 = vpop.f32.mrb[28].mxu0  ;;  %782 = vrot.lane.b32.xlu0 %v5401_v34, %s4995_s12 }
 0x121   : > { %v5417_v49 = vadd.f32 %v4741_v44, %v5236_v4  ;;  %v629_v51 = vpop.f32.mrb[29].mxu0  ;;  %784 = vrot.lane.b32.xlu1 %v5410_v41, %s4995_s12 }
 0x122   : > { %v4742_v52 = vpop.f32.mrb[30].mxu0  ;;  %v5429_v7 = vadd.f32 %v5236_v4, %v629_v51  ;;  %v5447_v51 = vpop.permute.xlu0 %1106 }
 0x123   : > { %7115 = vst [vmem:[#allocation11_spill] sm:$0xff] %v5417_v49  ;;  %v5424_v59 = vadd.f32 %v4742_v52, %v5236_v4  ;;  %v632_v62 = vpop.f32.mrb[31].mxu0  ;;  %7123 = vst [vmem:[#allocation19_spill] sm:$0xff] %v5447_v51 }
 0x124   : > { %7119 = vst [vmem:[#allocation15_spill] sm:$0xff] %v5429_v7  ;;  %794 = vrot.lane.b32.xlu0 %v5417_v49, %s4995_s12  ;;  %v5436_v19 = vadd.f32 %v5236_v4, %v632_v62 }
 0x125   : > { %7117 = vst [vmem:[#allocation13_spill] sm:$0xff] %v5424_v59  ;;  %796 = vrot.lane.b32.xlu1 %v5424_v59, %s4995_s12 }
 0x126   : > { %7120 = vst [vmem:[#allocation16_spill] sm:$0xff] %v5436_v19  ;;  %v5462_v39 = vpop.permute.xlu0 %1116 }
 0x127   : > { %7127 = vst [vmem:[#allocation23_spill] sm:$0xff] %v5462_v39  ;;  %v962_v39 = vpop.permute.xlu1 %961 }
 0x128   : > { %790 = vrot.lane.b32.xlu0 %v5429_v7, %s4995_s12  ;;  %v4745_v23 = vpop.f32.mrb[32].mxu0 }
 0x129   : > { %v5443_v32 = vadd.f32 %v4745_v23, %v5236_v4  ;;  %792 = vrot.lane.b32.xlu1 %v5436_v19, %s4995_s12  ;;  %v645_v44 = vpop.f32.mrb[33].mxu0 }
 0x12a   : > { %v5450_v52 = vadd.f32 %v5236_v4, %v645_v44  ;;  %v4746_v62 = vpop.f32.mrb[34].mxu0 }
 0x12b   : > { %7122 = vst [vmem:[#allocation18_spill] sm:$0xff] %v5443_v32  ;;  %v648_v2 = vpop.f32.mrb[35].mxu0  ;;  %v5458_v23 = vadd.f32 %v4746_v62, %v5236_v4  ;;  %v972_v51 = vpop.permute.xlu1 %971 }
 0x12c   : > { %7124 = vst [vmem:[#allocation20_spill] sm:$0xff] %v5450_v52  ;;  %802 = vrot.lane.b32.xlu0 %v5443_v32, %s4995_s12  ;;  %v5455_v0 = vadd.f32 %v5236_v4, %v648_v2 }
 0x12d   : > { %7126 = vst [vmem:[#allocation22_spill] sm:$0xff] %v5458_v23  ;;  %798 = vrot.lane.b32.xlu1 %v5450_v52, %s4995_s12 }
 0x12e   : > { %7125 = vst [vmem:[#allocation21_spill] sm:$0xff] %v5455_v0 }
 0x130   : > { %v4749_v19 = vpop.f32.mrb[36].mxu0  ;;  %800 = vrot.lane.b32.xlu0 %v5455_v0, %s4995_s12  ;;  %v957_v0 = vpop.permute.xlu0 %956 }
 0x131   : > { %v5467_v44 = vadd.f32 %v4749_v19, %v5236_v4  ;;  %v661_v32 = vpop.f32.mrb[37].mxu0  ;;  %804 = vrot.lane.b32.xlu1 %v5458_v23, %s4995_s12 }
 0x132   : > { %v4750_v2 = vpop.f32.mrb[38].mxu0  ;;  %v5475_v52 = vadd.f32 %v5236_v4, %v661_v32 }
 0x133   : > { %7128 = vst [vmem:[#allocation24_spill] sm:$0xff] %v5467_v44  ;;  %v5472_v62 = vadd.f32 %v4750_v2, %v5236_v4  ;;  %v664_v7 = vpop.f32.mrb[39].mxu0 }
 0x134   : > { %7130 = vst [vmem:[#allocation26_spill] sm:$0xff] %v5475_v52  ;;  %810 = vrot.lane.b32.xlu0 %v5467_v44, %s4995_s12  ;;  %v5482_v19 = vadd.f32 %v5236_v4, %v664_v7  ;;  %v982_v7 = vpop.permute.xlu1 %981 }
 0x135   : > { %7129 = vst [vmem:[#allocation25_spill] sm:$0xff] %v5472_v62  ;;  %812 = vrot.lane.b32.xlu1 %v5472_v62, %s4995_s12  ;;  %v967_v62 = vpop.permute.xlu0 %966 }
 0x136   : > { %7131 = vst [vmem:[#allocation27_spill] sm:$0xff] %v5482_v19 }
 0x138   : > { %806 = vrot.lane.b32.xlu0 %v5475_v52, %s4995_s12  ;;  %v5486_v2 = vpop.f32.mrb[40].mxu0  ;;  %v5497_v52 = vpop.permute.xlu1 %1121 }
 0x139   : > { %7132 = vst [vmem:[#allocation28_spill] sm:$0xff] %v5486_v2  ;;  %808 = vrot.lane.b32.xlu1 %v5482_v19, %s4995_s12  ;;  %v677_v32 = vpop.f32.mrb[41].mxu0  ;;  %v977_v59 = vpop.permute.xlu0 %976  ;;  %7135 = vst [vmem:[#allocation31_spill] sm:$0xff] %v5497_v52 }
 0x13a   : > { %v5491_v23 = vadd.f32 %v5236_v4, %v677_v32  ;;  %v4754_v44 = vpop.f32.mrb[42].mxu0 }
 0x13b   : > { %v5493_v55 = vpop.f32.mrb[43].mxu0 }
 0x13c   : > { %7133 = vst [vmem:[#allocation29_spill] sm:$0xff] %v5491_v23  ;;  %7134 = vst [vmem:[#allocation30_spill] sm:$0xff] %v5493_v55  ;;  %v5499_v49 = vpop.permute.xlu1 %1131 }
 0x13d   : > { %814 = vrot.lane.b32.xlu1 %v5491_v23, %s4995_s12  ;;  %v987_v2 = vpop.permute.xlu0 %986  ;;  %7136 = vst [vmem:[#allocation32_spill] sm:$0xff] %v5499_v49 }
 0x140   : > { %v5503_v17 = vpop.permute.xlu1 %1141 }
 0x141   : > { %v5501_v19 = vpop.permute.xlu0 %1126  ;;  %7138 = vst [vmem:[#allocation34_spill] sm:$0xff] %v5503_v17 }
 0x142   : > { %7137 = vst [vmem:[#allocation33_spill] sm:$0xff] %v5501_v19 }
 0x144   : > { %v5507_v44 = vpop.permute.xlu1 %1151 }
 0x145   : > { %v5505_v4 = vpop.permute.xlu0 %1136  ;;  %7140 = vst [vmem:[#allocation36_spill] sm:$0xff] %v5507_v44 }
 0x146   : > { %7139 = vst [vmem:[#allocation35_spill] sm:$0xff] %v5505_v4 }
 0x149   : > { %v5509_v32 = vpop.permute.xlu0 %1146 }
 0x14a   : > { %7141 = vst [vmem:[#allocation37_spill] sm:$0xff] %v5509_v32 }
 0x15d   : > { %v739_v55 = vpop.permute.xlu1 %738 }
 0x15e   : > { %v865_v23 = vmax.f32 %v5243_v8, %v739_v55  ;;  %v735_v60 = vpop.permute.xlu0 %734 }
 0x15f   : > { %v863_v41 = vmax.f32 %v5246_v10, %v735_v60 }
 0x160   : > { %v1166_v52 = vmul.f32 %v962_v39, %v865_v23 }
 0x161   : > { %v1164_v34 = vmul.f32 %v952_v27, %v863_v41  ;;  %v741_v49 = vpop.permute.xlu1 %740 }
 0x162   : > { %v4645_v42 = vpack.c.bf16 %v1166_v52, %v1166_v52  ;;  %v866_v19 = vmax.f32 %v5255_v14, %v741_v49  ;;  %v737_v17 = vpop.permute.xlu0 %736 }
 0x163   : > { %v4643_v12 = vpack.c.bf16 %v1164_v34, %v1164_v34  ;;  %v864_v4 = vmax.f32 %v5260_v16, %v737_v17 }
 0x164   : > { %1383 = vst.msk [vmem:[#allocation2 + $0x8] sm:$0xf] %vm1380_vm2, %v4645_v42  ;;  %v1167_v44 = vmul.f32 %v967_v62, %v866_v19 }
 0x165   : > { %1381 = vst.msk [vmem:[#allocation2] sm:$0xf] %vm1380_vm2, %v4643_v12  ;;  %v1165_v8 = vmul.f32 %v957_v0, %v864_v4 }
 0x166   : > { %v4646_v55 = vpack.c.bf16 %v1167_v44, %v1167_v44  ;;  %v747_v32 = vpop.permute.xlu0 %746 }
 0x167   : > { %v4644_v10 = vpack.c.bf16 %v1165_v8, %v1165_v8  ;;  %v869_v60 = vmax.f32 %v5267_v18, %v747_v32  ;;  %v749_v39 = vpop.permute.xlu1 %748 }
 0x168   : > { %1384 = vst.msk [vmem:[#allocation2 + $0xc] sm:$0xf] %vm1380_vm2, %v4646_v55  ;;  %v870_v14 = vmax.f32 %v5272_v22, %v749_v39 }
 0x169   : > { %1382 = vst.msk [vmem:[#allocation2 + $0x4] sm:$0xf] %vm1380_vm2, %v4644_v10  ;;  %v1170_v34 = vmul.f32 %v982_v7, %v869_v60 }
 0x16a   : > { %v1171_v16 = vmul.f32 %v987_v2, %v870_v14  ;;  %v743_v17 = vpop.permute.xlu0 %742 }
 0x16b   : > { %v4649_v41 = vpack.c.bf16 %v1170_v34, %v1170_v34  ;;  %v867_v42 = vmax.f32 %v5281_v25, %v743_v17  ;;  %v745_v12 = vpop.permute.xlu1 %744 }
 0x16c   : > { %v4650_v49 = vpack.c.bf16 %v1171_v16, %v1171_v16  ;;  %v868_v0 = vmax.f32 %v5284_v26, %v745_v12 }
 0x16d   : > { %1387 = vst.msk [vmem:[#allocation2 + $0x18] sm:$0xf] %vm1380_vm2, %v4649_v41  ;;  %v1168_v18 = vmul.f32 %v972_v51, %v867_v42 }
 0x16e   : > { %1388 = vst.msk [vmem:[#allocation2 + $0x1c] sm:$0xf] %vm1380_vm2, %v4650_v49  ;;  %v1169_v27 = vmul.f32 %v977_v59, %v868_v0  ;;  %v755_v52 = vpop.permute.xlu0 %754 }
 0x16f   : > { %v4647_v22 = vpack.c.bf16 %v1168_v18, %v1168_v18  ;;  %v873_v23 = vmax.f32 %v5291_v29, %v755_v52  ;;  %v757_v62 = vpop.permute.xlu1 %756  ;;  %v5526_v19 = vld [vmem:[#allocation2 + $0x8] sm:$0xff]  }
 0x170   : > { %v4648_v2 = vpack.c.bf16 %v1169_v27, %v1169_v27  ;;  %v874_v25 = vmax.f32 %v5298_v33, %v757_v62  ;;  %v4806_v7 = vld [vmem:[#allocation2] sm:$0xfe]   ;;  %v2071_v51 = vrot.slane %v5526_v19, 1  ;;  %v5532_v59 = vld [vmem:[#allocation2 + $0x8] sm:$0xff]  }
 0x171   : > { %1385 = vst.msk [vmem:[#allocation2 + $0x10] sm:$0xf] %vm1380_vm2, %v4647_v22  ;;  %v1174_v26 = vmul.f32 %v5238_v5, %v873_v23  ;;  %v4808_v4 = vld [vmem:[#allocation2] sm:$0xff]   ;;  %v2070_v32 = vrot.slane %v4806_v7, 1  ;;  %v1726_v34 = vshll.u32 %v5532_v59, 16 }
 0x172   : > { %1386 = vst.msk [vmem:[#allocation2 + $0x14] sm:$0xf] %vm1380_vm2, %v4648_v2  ;;  %v1175_v29 = vmul.f32 %v5257_v15, %v874_v25  ;;  %v751_v44 = vpop.permute.xlu0 %750  ;;  %v4880_v8 = vld [vmem:[#allocation2] sm:$0xff]   ;;  %v1721_v60 = vshll.u32 %v4808_v4, 16  ;;  %v4896_v15 = vld [vmem:[#allocation2 + $0x8] sm:$0xff]  }
 0x173   : > { %v4653_v55 = vpack.c.bf16 %v1174_v26, %v1174_v26  ;;  %v871_v33 = vmax.f32 %v5305_v35, %v751_v44  ;;  %v753_v10 = vpop.permute.xlu1 %752  ;;  %v2072_v14 = vsel %vm2069_vm3, %v2070_v32, %v2071_v51  ;;  %1569 = vst.msk [vmem:[#allocation3] sm:$0xff] %vm412_vm1, %v4880_v8  ;;  %v1719_v35 = vshrl.u32 %v4808_v4, 16  ;;  %v4810_v42 = vld [vmem:[#allocation2 + $0x8] sm:$0xfe]   ;;  %1570 = vst.msk [vmem:[#allocation3 + $0x8] sm:$0xff] %vm412_vm1, %v4896_v15 }
 0x174   : > { %v4654_v39 = vpack.c.bf16 %v1175_v29, %v1175_v29  ;;  %v872_v5 = vmax.f32 %v5310_v37, %v753_v10  ;;  %2107 = vrot.lane.b32.xlu1 %v2072_v14, %s4996_s28  ;;  %v1723_v17 = vrot.slane %v1721_v60, 1  ;;  %v4812_v2 = vld [vmem:[#allocation2 + $0x8] sm:$0xfc]   ;;  %v2310_v26 = vrot.slane %v4810_v42, 1 }
 0x175   : > { %1391 = vst.msk [vmem:[#allocation2 + $0x28] sm:$0xf] %vm1380_vm2, %v4653_v55  ;;  %v1172_v16 = vmul.f32 %v5240_v6, %v871_v33  ;;  %v5550_v6 = vrot.slane %v1726_v34, 1  ;;  %v5573_v33 = vld [vmem:[#allocation2 + $0x18] sm:$0xff]  }
 0x176   : > { %1392 = vst.msk [vmem:[#allocation2 + $0x2c] sm:$0xf] %vm1380_vm2, %v4654_v39  ;;  %v1173_v37 = vmul.f32 %v5231_v3, %v872_v5  ;;  %v763_v41 = vpop.permute.xlu0 %762  ;;  %v1724_v18 = vor.u32 %v1723_v17, %v1719_v35  ;;  %v5582_v35 = vld [vmem:[#allocation2 + $0x18] sm:$0xff]  }
 0x177   : > { %v4651_v12 = vpack.c.bf16 %v1172_v16, %v1172_v16  ;;  %v877_v49 = vmax.f32 %v5317_v40, %v763_v41  ;;  %v765_v0 = vpop.permute.xlu1 %764  ;;  %v5584_v17 = vld [vmem:[#allocation2 + $0x18] sm:$0xff]   ;;  %v3166_v41 = vrot.slane %v5573_v33, 2 }
 0x178   : > { %v4652_v27 = vpack.c.bf16 %v1173_v37, %v1173_v37  ;;  %v878_v52 = vmax.f32 %v5322_v43, %v765_v0  ;;  %v1729_v3 = vsel %vm1717_vm4, %v1724_v18, %v5550_v6  ;;  %v5602_v0 = vld [vmem:[#allocation2 + $0x18] sm:$0xff]  }
 0x179   : > { %1389 = vst.msk [vmem:[#allocation2 + $0x20] sm:$0xf] %vm1380_vm2, %v4651_v12  ;;  %v1178_v22 = vmul.f32 %v5269_v21, %v877_v49  ;;  %v5557_v23 = vld [vmem:[#allocation2 + $0x10] sm:$0xff]   ;;  %1866 = vrot.lane.b32.xlu1 %v1729_v3, %s4997_s29  ;;  %v5606_v3 = vld [vmem:[#allocation2 + $0x18] sm:$0xff]  }
 0x17a   : > { %1390 = vst.msk [vmem:[#allocation2 + $0x24] sm:$0xf] %vm1380_vm2, %v4652_v27  ;;  %v1179_v40 = vmul.f32 %v5295_v31, %v878_v52  ;;  %v759_v62 = vpop.permute.xlu0 %758  ;;  %v5562_v43 = vld [vmem:[#allocation2 + $0x10] sm:$0xff]   ;;  %v2311_v4 = vrot.slane %v5557_v23, 1 }
 0x17b   : > { %v4657_v25 = vpack.c.bf16 %v1178_v22, %v1178_v22  ;;  %v875_v21 = vmax.f32 %v5333_v47, %v759_v62  ;;  %v761_v7 = vpop.permute.xlu1 %760  ;;  %v4814_v32 = vld [vmem:[#allocation2 + $0x10] sm:$0xfc]   ;;  %v2926_v55 = vrot.slane %v5562_v43, 2 }
 0x17c   : > { %v4658_v29 = vpack.c.bf16 %v1179_v40, %v1179_v40  ;;  %v876_v44 = vmax.f32 %v5336_v48, %v761_v7  ;;  %v2312_v8 = vsel %vm2069_vm3, %v2310_v26, %v2311_v4  ;;  %v2925_v48 = vrot.slane %v4812_v2, 2  ;;  %v4818_v14 = vld [vmem:[#allocation2 + $0x10] sm:$0xf8]  }
 0x17d   : > { %1395 = vst.msk [vmem:[#allocation2 + $0x38] sm:$0xf] %vm1380_vm2, %v4657_v25  ;;  %v1176_v31 = vmul.f32 %v5252_v13, %v875_v21  ;;  %2347 = vrot.lane.b32.xlu1 %v2312_v8, %s4998_s30  ;;  %v5578_v60 = vld [vmem:[#allocation2 + $0x28] sm:$0xff]   ;;  %v3165_v16 = vrot.slane %v4814_v32, 2  ;;  %v3780_v25 = vrot.slane %v4818_v14, 3  ;;  %v2313_v26 = vrot.slane %v5584_v17, 1 }
 0x17e   : > { %1396 = vst.msk [vmem:[#allocation2 + $0x3c] sm:$0xf] %vm1380_vm2, %v4658_v29  ;;  %v1177_v47 = vmul.f32 %v5274_v24, %v876_v44  ;;  %v771_v10 = vpop.permute.xlu0 %770  ;;  %v5586_v24 = vld [vmem:[#allocation2 + $0x10] sm:$0xff]   ;;  %v5626_v29 = vld [vmem:[#allocation2 + $0x28] sm:$0xff]  }
 0x17f   : > { %v4655_v13 = vpack.c.bf16 %v1176_v31, %v1176_v31  ;;  %v881_v39 = vmax.f32 %v5341_v50, %v771_v10  ;;  %v773_v5 = vpop.permute.xlu1 %772  ;;  %v2927_v50 = vsel %vm2924_vm5, %v2925_v48, %v2926_v55  ;;  %v1734_v21 = vshll.u32 %v5586_v24, 16 }
 0x180   : > { %v4656_v34 = vpack.c.bf16 %v1177_v47, %v1177_v47  ;;  %v882_v15 = vmax.f32 %v5348_v54, %v773_v5  ;;  %v5596_v54 = vld [vmem:[#allocation2 + $0x10] sm:$0xff]   ;;  %v2928_v47 = vrot.slane %v5602_v0, 2 }
 0x181   : > { %1393 = vst.msk [vmem:[#allocation2 + $0x30] sm:$0xf] %vm1380_vm2, %v4655_v13  ;;  %v1182_v37 = vmul.f32 %v5307_v36, %v881_v39  ;;  %v5594_v42 = vld [vmem:[#allocation2 + $0x20] sm:$0xff]   ;;  %2962 = vrot.lane.b32.xlu1 %v2927_v50, %s4999_s7  ;;  %v2079_v36 = vrot.slane %v5578_v60, 1  ;;  %v2073_v8 = vrot.slane %v5596_v54, 1  ;;  %v2075_v13 = vrot.slane %v5606_v3, 1 }
 0x182   : > { %1394 = vst.msk [vmem:[#allocation2 + $0x34] sm:$0xf] %vm1380_vm2, %v4656_v34  ;;  %v1183_v12 = vmul.f32 %v5330_v46, %v882_v15  ;;  %v767_v49 = vpop.permute.xlu0 %766  ;;  %v2077_v22 = vrot.slane %v5594_v42, 1  ;;  %v3167_v46 = vsel %vm2924_vm5, %v3165_v16, %v3166_v41  ;;  %v1730_v39 = vshrl.u32 %v5532_v59, 16 }
 0x183   : > { %v4661_v18 = vpack.c.bf16 %v1182_v37, %v1182_v37  ;;  %v879_v27 = vmax.f32 %v5353_v57, %v767_v49  ;;  %v769_v52 = vpop.permute.xlu1 %768  ;;  %v5645_v15 = vrot.slane %v1734_v21, 1  ;;  %v5688_v19 = vsel %vm2069_vm3, %v2073_v8, %v2075_v13 }
 0x184   : > { %v4662_v40 = vpack.c.bf16 %v1183_v12, %v1183_v12  ;;  %v880_v62 = vmax.f32 %v5360_v58, %v769_v52  ;;  %v2080_v57 = vsel %vm2069_vm3, %v2077_v22, %v2079_v36  ;;  %v5933_v0 = vsel %vm2069_vm3, %v2075_v13, %v2077_v22 }
 0x185   : > { %1399 = vst.msk [vmem:[#allocation2 + $0x48] sm:$0xf] %vm1380_vm2, %v4661_v18  ;;  %v1180_v2 = vmul.f32 %v5288_v28, %v879_v27  ;;  %3202 = vrot.lane.b32.xlu1 %v3167_v46, %s5000_s8  ;;  %2115 = vrot.lane.b32.xlu0 %v2080_v57, %s4996_s28  ;;  %v3781_v28 = vrot.slane %v5582_v35, 3  ;;  %v5643_v34 = vld [vmem:[#allocation2 + $0x38] sm:$0xff]   ;;  %v2074_v46 = vsel %vm2069_vm3, %v2071_v51, %v2073_v8  ;;  %v7143_v8 = vld [vmem:[#allocation5_spill] sm:$0xff] }
 0x186   : > { %1400 = vst.msk [vmem:[#allocation2 + $0x4c] sm:$0xf] %vm1380_vm2, %v4662_v40  ;;  %v1181_v58 = vmul.f32 %v5312_v38, %v880_v62  ;;  %v779_v7 = vpop.permute.xlu0 %778  ;;  %v5630_v38 = vld [vmem:[#allocation2 + $0x38] sm:$0xff]   ;;  %v2590_v40 = vshll.u32 %v5626_v29, 16  ;;  %v5663_v62 = vld [vmem:[#allocation2 + $0x8] sm:$0xfe]  }
 0x187   : > { %v4659_v44 = vpack.c.bf16 %v1180_v2, %v1180_v2  ;;  %v885_v32 = vmax.f32 %v5367_v61, %v779_v7  ;;  %v781_v31 = vpop.permute.xlu1 %780  ;;  %v3782_v61 = vsel %vm3779_vm6, %v3780_v25, %v3781_v28  ;;  %v3174_v49 = vrot.slane %v5630_v38, 2  ;;  %v5690_v51 = vld [vmem:[#allocation2 + $0x38] sm:$0xff]  }
 0x188   : > { %v4660_v10 = vpack.c.bf16 %v1181_v58, %v1181_v58  ;;  %v886_v48 = vmax.f32 %v5374_v1, %v781_v31  ;;  %v3789_v7 = vrot.slane %v5643_v34, 3  ;;  %v4834_v31 = vld [vmem:[#allocation2 + $0x10] sm:$0xff]  }
 0x189   : > { %1397 = vst.msk [vmem:[#allocation2 + $0x40] sm:$0xf] %vm1380_vm2, %v4659_v44  ;;  %v1186_v5 = vmul.f32 %v5345_v53, %v885_v32  ;;  %v5641_v14 = vld [vmem:[#allocation2 + $0x30] sm:$0xff]   ;;  %3817 = vrot.lane.b32.xlu1 %v3782_v61, %s5001_s9  ;;  %v2587_v53 = vshrl.u32 %v5626_v29, 16  ;;  %v4835_v61 = vld [vmem:[#allocation2 + $0x38] sm:$0xff]  }
 0x18a   : > { %1398 = vst.msk [vmem:[#allocation2 + $0x44] sm:$0xf] %vm1380_vm2, %v4660_v10  ;;  %v1187_v1 = vmul.f32 %v5371_v63, %v886_v48  ;;  %v775_v16 = vpop.permute.xlu0 %774  ;;  %v5650_v59 = vld [vmem:[#allocation2 + $0x30] sm:$0xff]   ;;  %v7092_v12 = vrot.slane %v5641_v14, 2  ;;  %v2314_v63 = vsel %vm2069_vm3, %v2311_v4, %v2313_v26 }
 0x18b   : > { %7142 = vst [vmem:[#allocation38_spill] sm:$0xff] %v5650_v59  ;;  %v4665_v37 = vpack.c.bf16 %v1186_v5, %v1186_v5  ;;  %v883_v50 = vmax.f32 %v5377_v9, %v775_v16  ;;  %v777_v54 = vpop.permute.xlu1 %776  ;;  %v4832_v52 = vld [vmem:[#allocation2 + $0x30] sm:$0xff]   ;;  %v7091_v23 = vrot.slane %v5650_v59, 3  ;;  %v2589_v32 = vrot.slane %v2587_v53, 1 }
 0x18c   : > { %v4666_v18 = vpack.c.bf16 %v1187_v1, %v1187_v1  ;;  %v884_v27 = vmax.f32 %v5384_v11, %v777_v54  ;;  %v3175_v11 = vsel %vm2924_vm5, %v7092_v12, %v3174_v49  ;;  %v4827_v4 = vld [vmem:[#allocation2 + $0x30] sm:$0xff]   ;;  %v2596_v25 = vshrl.u32 %v4832_v52, 16 }
 0x18d   : > { %1403 = vst.msk [vmem:[#allocation2 + $0x58] sm:$0xf] %vm1380_vm2, %v4665_v37  ;;  %v1184_v9 = vmul.f32 %v5326_v45, %v883_v50  ;;  %2109 = vrot.lane.b32.xlu1 %v2074_v46, %s4996_s28  ;;  %3210 = vrot.lane.b32.xlu0 %v3175_v11, %s5000_s8  ;;  %v2929_v45 = vsel %vm2924_vm5, %v2926_v55, %v2928_v47  ;;  %v2599_v29 = vshll.u32 %v4832_v52, 16  ;;  %v2081_v48 = vrot.slane %v4827_v4, 1  ;;  %v7145_v50 = vld [vmem:[#allocation7_spill] sm:$0xff]  ;;  %v7147_v4 = vld [vmem:[#allocation4_spill] sm:$0xff] }
 0x18e   : > { %1404 = vst.msk [vmem:[#allocation2 + $0x5c] sm:$0xf] %vm1380_vm2, %v4666_v18  ;;  %v1185_v2 = vmul.f32 %v5350_v56, %v884_v27  ;;  %v787_v57 = vpop.permute.xlu0 %786  ;;  %v5696_v55 = vor.u32 %v1730_v39, %v5550_v6  ;;  %v2592_v5 = vrot.slane %v2590_v40, 2  ;;  %v7097_v1 = vrot.slane %v5690_v51, 1 }
 0x18f   : > { %v4663_v56 = vpack.c.bf16 %v1184_v9, %v1184_v9  ;;  %v889_v21 = vmax.f32 %v5393_v20, %v787_v57  ;;  %v789_v58 = vpop.permute.xlu1 %788  ;;  %v3790_v20 = vsel %vm3779_vm6, %v7091_v23, %v3789_v7  ;;  %v2598_v16 = vrot.slane %v2596_v25, 1  ;;  %v7146_v9 = vld [vmem:[#allocation9_spill] sm:$0xff] }
 0x190   : > { %v4664_v44 = vpack.c.bf16 %v1185_v2, %v1185_v2  ;;  %v890_v43 = vmax.f32 %v5398_v30, %v789_v58  ;;  %v7144_v30 = vld [vmem:[#allocation10_spill] sm:$0xff]  ;;  %v2552_v53 = vshrl.u32 %v5663_v62, 16  ;;  %v2601_v27 = vrot.slane %v2599_v29, 2  ;;  %v4837_v58 = vld [vmem:[#allocation2 + $0x18] sm:$0xff]  }
 0x191   : > { %1401 = vst.msk [vmem:[#allocation2 + $0x50] sm:$0xf] %vm1380_vm2, %v4663_v56  ;;  %v1190_v10 = vmul.f32 %v7143_v8, %v889_v21  ;;  %2349 = vrot.lane.b32.xlu1 %v2314_v63, %s4998_s30  ;;  %3825 = vrot.lane.b32.xlu0 %v3790_v20, %s5001_s9  ;;  %v2555_v52 = vshll.u32 %v5663_v62, 16  ;;  %v2560_v11 = vshrl.u32 %v4834_v31, 16  ;;  %v2563_v63 = vshll.u32 %v4834_v31, 16  ;;  %v7148_v62 = vld [vmem:[#allocation6_spill] sm:$0xff] }
 0x192   : > { %1402 = vst.msk [vmem:[#allocation2 + $0x54] sm:$0xf] %vm1380_vm2, %v4664_v44  ;;  %v1191_v6 = vmul.f32 %v7144_v30, %v890_v43  ;;  %v783_v39 = vpop.permute.xlu0 %782  ;;  %v2082_v57 = vsel %vm2069_vm3, %v2079_v36, %v2081_v48  ;;  %v5719_v25 = vor.u32 %v2592_v5, %v2589_v32  ;;  %v2605_v56 = vshrl.u32 %v4835_v61, 16  ;;  %v4836_v21 = vld [vmem:[#allocation2 + $0x10] sm:$0xfc]  }
 0x193   : > { %v4669_v37 = vpack.c.bf16 %v1190_v10, %v1190_v10  ;;  %v887_v54 = vmax.f32 %v7145_v50, %v783_v39  ;;  %v785_v18 = vpop.permute.xlu1 %784  ;;  %v2084_v60 = vsel %vm2069_vm3, %v2081_v48, %v7097_v1  ;;  %v2554_v43 = vrot.slane %v2552_v53, 1  ;;  %v7149_v31 = vld [vmem:[#allocation11_spill] sm:$0xff] }
 0x194   : > { %v4670_v40 = vpack.c.bf16 %v1191_v6, %v1191_v6  ;;  %v888_v46 = vmax.f32 %v7146_v9, %v785_v18  ;;  %v2608_v36 = vshll.u32 %v4835_v61, 16  ;;  %v2602_v20 = vor.u32 %v2601_v27, %v2598_v16  ;;  %v7150_v6 = vld [vmem:[#allocation13_spill] sm:$0xff]  ;;  %v7152_v61 = vld [vmem:[#allocation19_spill] sm:$0xff] }
 0x195   : > { %1407 = vst.msk [vmem:[#allocation2 + $0x68] sm:$0xf] %vm1380_vm2, %v4669_v37  ;;  %v1188_v2 = vmul.f32 %v7147_v4, %v887_v54  ;;  %2964 = vrot.lane.b32.xlu1 %v2929_v45, %s4999_s7  ;;  %2117 = vrot.lane.b32.xlu0 %v2082_v57, %s4996_s28  ;;  %v2557_v5 = vrot.slane %v2555_v52, 2  ;;  %v2562_v37 = vrot.slane %v2560_v11, 1  ;;  %v2565_v50 = vrot.slane %v2563_v63, 2  ;;  %v7151_v45 = vld [vmem:[#allocation12_spill] sm:$0xff] }
 0x196   : > { %1408 = vst.msk [vmem:[#allocation2 + $0x6c] sm:$0xf] %vm1380_vm2, %v4670_v40  ;;  %v1189_v29 = vmul.f32 %v7148_v62, %v888_v46  ;;  %v795_v44 = vpop.permute.xlu0 %794  ;;  %v2607_v18 = vrot.slane %v2605_v56, 1  ;;  %v3407_v40 = vshrl.u32 %v4836_v21, 16  ;;  %v3410_v48 = vshll.u32 %v4836_v21, 16  ;;  %v4839_v46 = vld [vmem:[#allocation2 + $0x18] sm:$0xff]  }
 0x197   : > { %v4667_v32 = vpack.c.bf16 %v1188_v2, %v1188_v2  ;;  %v893_v8 = vmax.f32 %v7149_v31, %v795_v44  ;;  %v797_v10 = vpop.permute.xlu1 %796  ;;  %v2610_v16 = vrot.slane %v2608_v36, 2  ;;  %v3415_v27 = vshrl.u32 %v4837_v58, 16  ;;  %v7153_v63 = vld [vmem:[#allocation15_spill] sm:$0xff]  ;;  %v7154_v21 = vld [vmem:[#allocation16_spill] sm:$0xff] }
 0x198   : > { %v4668_v30 = vpack.c.bf16 %v1189_v29, %v1189_v29  ;;  %v894_v39 = vmax.f32 %v7150_v6, %v797_v10  ;;  %v3418_v52 = vshll.u32 %v4837_v58, 16  ;;  %v1737_v57 = vsel %vm1717_vm4, %v5696_v55, %v5645_v15  ;;  %v7155_v58 = vld [vmem:[#allocation8_spill] sm:$0xff]  ;;  %v7156_v55 = vld [vmem:[#allocation14_spill] sm:$0xff] }
 0x199   : > { %1405 = vst.msk [vmem:[#allocation2 + $0x60] sm:$0xf] %vm1380_vm2, %v4667_v32  ;;  %v1194_v54 = vmul.f32 %v7151_v45, %v893_v8  ;;  %2111 = vrot.lane.b32.xlu1 %v5688_v19, %s4996_s28  ;;  %2119 = vrot.lane.b32.xlu0 %v2084_v60, %s4996_s28  ;;  %v2603_v19 = vsel %vm2550_vm7, %v5719_v25, %v2602_v20  ;;  %v3409_v36 = vrot.slane %v3407_v40, 2  ;;  %v3412_v32 = vrot.slane %v3410_v48, 3  ;;  %v5748_v31 = vld [vmem:[#allocation2 + $0x40] sm:$0xff]  }
 0x19a   : > { %1406 = vst.msk [vmem:[#allocation2 + $0x64] sm:$0xf] %vm1380_vm2, %v4668_v30  ;;  %v1195_v53 = vmul.f32 %v7152_v61, %v894_v39  ;;  %v791_v9 = vpop.permute.xlu0 %790  ;;  %v5744_v29 = vor.u32 %v2565_v50, %v2562_v37  ;;  %v2558_v60 = vor.u32 %v2557_v5, %v2554_v43  ;;  %v5754_v30 = vor.u32 %v2610_v16, %v2607_v18  ;;  %v7157_v43 = vld [vmem:[#allocation18_spill] sm:$0xff]  ;;  %v7158_v48 = vld [vmem:[#allocation20_spill] sm:$0xff] }
 0x19b   : > { %v4673_v11 = vpack.c.bf16 %v1194_v54, %v1194_v54  ;;  %v891_v4 = vmax.f32 %v7153_v63, %v791_v9  ;;  %v793_v2 = vpop.permute.xlu1 %792  ;;  %v2569_v6 = vshrl.u32 %v4839_v46, 16  ;;  %v2572_v39 = vshll.u32 %v4839_v46, 16  ;;  %v7159_v9 = vld [vmem:[#allocation31_spill] sm:$0xff]  ;;  %v5765_v63 = vld [vmem:[#allocation2 + $0x40] sm:$0xff]  }
 0x19c   : > { %v4674_v56 = vpack.c.bf16 %v1195_v53, %v1195_v53  ;;  %v892_v62 = vmax.f32 %v7154_v21, %v793_v2  ;;  %v3417_v45 = vrot.slane %v3415_v27, 2  ;;  %v3420_v54 = vrot.slane %v3418_v52, 3  ;;  %v7160_v27 = vld [vmem:[#allocation17_spill] sm:$0xff] }
 0x19d   : > { %1411 = vst.msk [vmem:[#allocation2 + $0x78] sm:$0xf] %vm1380_vm2, %v4673_v11  ;;  %v1192_v44 = vmul.f32 %v7155_v58, %v891_v4  ;;  %1868 = vrot.lane.b32.xlu1 %v1737_v57, %s4997_s29  ;;  %2729 = vrot.lane.b32.xlu0 %v2603_v19, %s5002_s10  ;;  %v2567_v53 = vsel %vm2550_vm7, %v2558_v60, %v5744_v29  ;;  %v3176_v46 = vrot.slane %v5748_v31, 2  ;;  %v2571_v2 = vrot.slane %v2569_v6, 1  ;;  %v7162_v60 = vld [vmem:[#allocation22_spill] sm:$0xff] }
 0x19e   : > { %1412 = vst.msk [vmem:[#allocation2 + $0x7c] sm:$0xf] %vm1380_vm2, %v4674_v56  ;;  %v1193_v8 = vmul.f32 %v7156_v55, %v892_v62  ;;  %v803_v10 = vpop.permute.xlu0 %802  ;;  %v2612_v18 = vsel %vm2550_vm7, %v2602_v20, %v5754_v30  ;;  %v3413_v16 = vor.u32 %v3412_v32, %v3409_v36  ;;  %v2574_v57 = vrot.slane %v2572_v39, 2  ;;  %v4841_v56 = vld [vmem:[#allocation2 + $0x18] sm:$0xff]   ;;  %v7161_v20 = vld [vmem:[#allocation21_spill] sm:$0xff] }
 0x19f   : > { %v4671_v37 = vpack.c.bf16 %v1192_v44, %v1192_v44  ;;  %v897_v5 = vmax.f32 %v7157_v43, %v803_v10  ;;  %v799_v50 = vpop.permute.xlu1 %798  ;;  %v5772_v58 = vor.u32 %v3420_v54, %v3417_v45  ;;  %v7163_v32 = vld [vmem:[#allocation23_spill] sm:$0xff]  ;;  %v3177_v10 = vsel %vm2924_vm5, %v3174_v49, %v3176_v46  ;;  %v7164_v39 = vld [vmem:[#allocation33_spill] sm:$0xff]  ;;  %v7165_v45 = vld [vmem:[#allocation24_spill] sm:$0xff] }
 0x1a0   : > { %v4672_v40 = vpack.c.bf16 %v1193_v8, %v1193_v8  ;;  %v895_v61 = vmax.f32 %v7158_v48, %v799_v50  ;;  %v3791_v6 = vrot.slane %v5765_v63, 3  ;;  %v1742_v49 = vshll.u32 %v4841_v56, 16  ;;  %v5793_v48 = vld [vmem:[#allocation2 + $0x48] sm:$0xff]  }
 0x1a1   : > { %1409 = vst.msk [vmem:[#allocation2 + $0x70] sm:$0xf] %vm1380_vm2, %v4671_v37  ;;  %v1198_v11 = vmul.f32 %v7159_v9, %v897_v5  ;;  %2721 = vrot.lane.b32.xlu1 %v2567_v53, %s5002_s10  ;;  %2731 = vrot.lane.b32.xlu0 %v2612_v18, %s5002_s10  ;;  %v3422_v8 = vsel %vm3405_vm8, %v3413_v16, %v5772_v58  ;;  %v1738_v5 = vshrl.u32 %v5586_v24, 16  ;;  %v7166_v53 = vld [vmem:[#allocation25_spill] sm:$0xff]  ;;  %v7167_v18 = vld [vmem:[#allocation34_spill] sm:$0xff] }
 0x1a2   : > { %1410 = vst.msk [vmem:[#allocation2 + $0x74] sm:$0xf] %vm1380_vm2, %v4672_v40  ;;  %v1196_v52 = vmul.f32 %v7160_v27, %v895_v61  ;;  %v801_v4 = vpop.permute.xlu0 %800  ;;  %v5791_v40 = vor.u32 %v2574_v57, %v2571_v2  ;;  %v3792_v27 = vsel %vm3779_vm6, %v3789_v7, %v3791_v6  ;;  %v5813_v56 = vld [vmem:[#allocation2 + $0x48] sm:$0xff]   ;;  %v5818_v7 = vrot.slane %v1742_v49, 1  ;;  %v7172_v49 = vld [vmem:[#allocation35_spill] sm:$0xff] }
 0x1a3   : > { %v4677_v21 = vpack.c.bf16 %v1198_v11, %v1198_v11  ;;  %v896_v62 = vmax.f32 %v7161_v20, %v801_v4  ;;  %v805_v19 = vpop.permute.xlu1 %804  ;;  %v5796_v11 = vld [vmem:[#allocation2 + $0x20] sm:$0xff]   ;;  %v7169_v20 = vld [vmem:[#allocation26_spill] sm:$0xff] }
 0x1a4   : > { %v4675_v44 = vpack.c.bf16 %v1196_v52, %v1196_v52  ;;  %v898_v36 = vmax.f32 %v7162_v60, %v805_v19  ;;  %v2576_v24 = vsel %vm2550_vm7, %v5744_v29, %v5791_v40  ;;  %v1740_v52 = vor.u32 %v1738_v5, %v5645_v15  ;;  %v7168_v4 = vld [vmem:[#allocation37_spill] sm:$0xff] }
 0x1a5   : > { %1415 = vst.msk [vmem:[#allocation2 + $0x88] sm:$0xf] %vm1380_vm2, %v4677_v21  ;;  %v1197_v55 = vmul.f32 %v7163_v32, %v896_v62  ;;  %3576 = vrot.lane.b32.xlu1 %v3422_v8, %s5003_s11  ;;  %3212 = vrot.lane.b32.xlu0 %v3177_v10, %s5000_s8  ;;  %v5815_v29 = vld [vmem:[#allocation2 + $0x20] sm:$0xff]   ;;  %v3178_v15 = vrot.slane %v5793_v48, 2  ;;  %v7094_v10 = vrot.slane %v5796_v11, 2 }
 0x1a6   : > { %1413 = vst.msk [vmem:[#allocation2 + $0x80] sm:$0xf] %vm1380_vm2, %v4675_v44  ;;  %v1199_v37 = vmul.f32 %v7164_v39, %v898_v36  ;;  %v811_v43 = vpop.permute.xlu0 %810  ;;  %v5821_v19 = vld [vmem:[#allocation2 + $0x40] sm:$0xff]   ;;  %v5823_v44 = vld [vmem:[#allocation2 + $0x48] sm:$0xff]   ;;  %v1745_v5 = vsel %vm1717_vm4, %v1740_v52, %v5818_v7 }
 0x1a7   : > { %v4676_v50 = vpack.c.bf16 %v1197_v55, %v1197_v55  ;;  %v901_v54 = vmax.f32 %v7165_v45, %v811_v43  ;;  %v813_v38 = vpop.permute.xlu1 %812  ;;  %v5825_v60 = vld [vmem:[#allocation2 + $0x20] sm:$0xff]   ;;  %v7170_v55 = vld [vmem:[#allocation27_spill] sm:$0xff]  ;;  %v5831_v39 = vld [vmem:[#allocation2 + $0x48] sm:$0xff]  }
 0x1a8   : > { %v4678_v61 = vpack.c.bf16 %v1199_v37, %v1199_v37  ;;  %v902_v9 = vmax.f32 %v7166_v53, %v813_v38  ;;  %v5827_v36 = vld [vmem:[#allocation2 + $0x40] sm:$0xff]   ;;  %v5846_v38 = vld [vmem:[#allocation2 + $0x48] sm:$0xff]   ;;  %v3793_v53 = vrot.slane %v5813_v56, 3  ;;  %v2315_v33 = vrot.slane %v5825_v60, 1 }
 0x1a9   : > { %1414 = vst.msk [vmem:[#allocation2 + $0x84] sm:$0xf] %vm1380_vm2, %v4676_v50  ;;  %v1202_v16 = vmul.f32 %v7167_v18, %v901_v54  ;;  %2723 = vrot.lane.b32.xlu1 %v2576_v24, %s5002_s10  ;;  %3827 = vrot.lane.b32.xlu0 %v3792_v27, %s5001_s9  ;;  %v7171_v37 = vld [vmem:[#allocation32_spill] sm:$0xff]  ;;  %v3179_v50 = vsel %vm2924_vm5, %v3176_v46, %v3178_v15  ;;  %v7093_v46 = vrot.slane %v5815_v29, 3  ;;  %v7173_v27 = vld [vmem:[#allocation29_spill] sm:$0xff] }
 0x1aa   : > { %1416 = vst.msk [vmem:[#allocation2 + $0x8c] sm:$0xf] %vm1380_vm2, %v4678_v61  ;;  %v1203_v2 = vmul.f32 %v7168_v4, %v902_v9  ;;  %v807_v57 = vpop.permute.xlu0 %806  ;;  %v5842_v45 = vld [vmem:[#allocation2 + $0x20] sm:$0xff]   ;;  %v3169_v4 = vsel %vm2924_vm5, %v3166_v41, %v7094_v10  ;;  %v2938_v41 = vrot.slane %v5827_v36, 2 }
 0x1ab   : > { %v4681_v21 = vpack.c.bf16 %v1202_v16, %v1202_v16  ;;  %v899_v34 = vmax.f32 %v7169_v20, %v807_v57  ;;  %v809_v62 = vpop.permute.xlu1 %808  ;;  %v5844_v54 = vld [vmem:[#allocation2 + $0x40] sm:$0xff]   ;;  %v5865_v57 = vld [vmem:[#allocation2 + $0x28] sm:$0xff]   ;;  %v2323_v20 = vrot.slane %v5821_v19, 1 }
 0x1ac   : > { %v4682_v32 = vpack.c.bf16 %v1203_v2, %v1203_v2  ;;  %v900_v8 = vmax.f32 %v7170_v55, %v809_v62  ;;  %v4860_v9 = vld [vmem:[#allocation2 + $0x20] sm:$0xff]   ;;  %v3794_v2 = vsel %vm3779_vm6, %v3791_v6, %v3793_v53  ;;  %v7095_v6 = vrot.slane %v5831_v39, 2 }
 0x1ad   : > { %1419 = vst.msk [vmem:[#allocation2 + $0x98] sm:$0xf] %vm1380_vm2, %v4681_v21  ;;  %v1200_v43 = vmul.f32 %v7171_v37, %v899_v34  ;;  %1870 = vrot.lane.b32.xlu1 %v1745_v5, %s4997_s29  ;;  %3214 = vrot.lane.b32.xlu0 %v3179_v50, %s5000_s8  ;;  %v4854_v16 = vld [vmem:[#allocation2 + $0x20] sm:$0xff]   ;;  %v5867_v21 = vld [vmem:[#allocation2 + $0x38] sm:$0xff]   ;;  %v7096_v34 = vrot.slane %v5823_v44, 1  ;;  %v2578_v55 = vshrl.u32 %v4860_v9, 16 }
 0x1ae   : > { %1420 = vst.msk [vmem:[#allocation2 + $0x9c] sm:$0xf] %vm1380_vm2, %v4682_v32  ;;  %v1201_v61 = vmul.f32 %v7172_v49, %v900_v8  ;;  %v7174_v62 = vld [vmem:[#allocation36_spill] sm:$0xff]  ;;  %v2581_v8 = vshll.u32 %v4860_v9, 16  ;;  %v2930_v37 = vrot.slane %v5842_v45, 2  ;;  %v2085_v60 = vrot.slane %v5844_v54, 1 }
 0x1af   : > { %v4679_v31 = vpack.c.bf16 %v1200_v43, %v1200_v43  ;;  %v815_v18 = vpop.permute.xlu1 %814  ;;  %v5879_v32 = vld [vmem:[#allocation2 + $0x40] sm:$0xff]   ;;  %v2087_v43 = vrot.slane %v5846_v38, 1  ;;  %v1750_v49 = vshll.u32 %v4854_v16, 16  ;;  %v2326_v45 = vsel %vm2069_vm3, %v2323_v20, %v7096_v34  ;;  %v4906_v38 = vld [vmem:[%s7071_s4 + $0x14] ss:$8 sps:$4 sm:$0xff]  }
 0x1b0   : > { %v4680_v24 = vpack.c.bf16 %v1201_v61, %v1201_v61  ;;  %v903_v52 = vmax.f32 %v7173_v27, %v815_v18  ;;  %v4858_v5 = vld [vmem:[#allocation2 + $0x20] sm:$0xff]   ;;  %v1754_v61 = vshrl.u32 %v4854_v16, 16  ;;  %v2580_v9 = vrot.slane %v2578_v55, 1  ;;  %v5907_v55 = vld [vmem:[#allocation2 + $0x28] sm:$0xff]  }
 0x1b1   : > { %1417 = vst.msk [vmem:[#allocation2 + $0x90] sm:$0xf] %vm1380_vm2, %v4679_v31  ;;  %3204 = vrot.lane.b32.xlu1 %v3169_v4, %s5000_s8  ;;  %3829 = vrot.lane.b32.xlu0 %v3794_v2, %s5001_s9  ;;  %v1774_v31 = vshll.u32 %v5867_v21, 16  ;;  %v4859_v18 = vld [vmem:[#allocation2 + $0x40] sm:$0xff]   ;;  %v2583_v27 = vrot.slane %v2581_v8, 2  ;;  %v1758_v16 = vshll.u32 %v5865_v57, 16  ;;  %v2316_v4 = vsel %vm2069_vm3, %v2313_v26, %v2315_v33 }
 0x1b2   : > { %1418 = vst.msk [vmem:[#allocation2 + $0x94] sm:$0xf] %vm1380_vm2, %v4680_v24  ;;  %v1204_v63 = vmul.f32 %v7174_v62, %v903_v52  ;;  %v3784_v24 = vsel %vm3779_vm6, %v3781_v28, %v7093_v46  ;;  %v4862_v52 = vld [vmem:[#allocation2 + $0x28] sm:$0xff]   ;;  %v1782_v35 = vshll.u32 %v5879_v32, 16  ;;  %v3424_v28 = vshrl.u32 %v4858_v5, 16  ;;  %v4886_v36 = vld [vmem:[#allocation2 + $0x60] sm:$0xff]  }
 0x1b3   : > { %v5903_v2 = vrot.slane %v1750_v49, 1  ;;  %v5905_v62 = vrot.slane %v1774_v31, 1  ;;  %v2941_v8 = vsel %vm2924_vm5, %v2938_v41, %v7095_v6  ;;  %v1778_v17 = vshrl.u32 %v5867_v21, 16 }
 0x1b4   : > { %v4683_v50 = vpack.c.bf16 %v1204_v63, %v1204_v63  ;;  %v3427_v63 = vshll.u32 %v4858_v5, 16  ;;  %v2317_v26 = vrot.slane %v4862_v52, 1  ;;  %v2931_v5 = vsel %vm2924_vm5, %v2928_v47, %v2930_v37 }
 0x1b5   : > { %3819 = vrot.lane.b32.xlu1 %v3784_v24, %s5001_s9  ;;  %2361 = vrot.lane.b32.xlu0 %v2326_v45, %s4998_s30  ;;  %v2617_v24 = vshll.u32 %v4859_v18, 16  ;;  %v2584_v45 = vor.u32 %v2583_v27, %v2580_v9  ;;  %v2088_v49 = vsel %vm2069_vm3, %v2085_v60, %v2087_v43  ;;  %v5925_v31 = vrot.slane %v1782_v35, 1 }
 0x1b6   : > { %1421 = vst.msk [vmem:[#allocation2 + $0xa0] sm:$0xf] %vm1380_vm2, %v4683_v50  ;;  %v2614_v50 = vshrl.u32 %v4859_v18, 16  ;;  %v3426_v18 = vrot.slane %v3424_v28, 2  ;;  %v3429_v9 = vrot.slane %v3427_v63, 3  ;;  %v2932_v27 = vrot.slane %v5907_v55, 2 }
 0x1b7   : > { %v5936_v47 = vsel %vm2069_vm3, %v2315_v33, %v2317_v26  ;;  %v1756_v21 = vor.u32 %v1754_v61, %v5903_v2  ;;  %v5941_v35 = vsel %vm2550_vm7, %v2584_v45, %v5719_v25  ;;  %v5948_v22 = vrot.slane %v1758_v16, 1  ;;  %v4861_v28 = vld [vmem:[#allocation2 + $0x50] sm:$0xff]  }
 0x1b8   : > { %v2616_v52 = vrot.slane %v2614_v50, 1  ;;  %v5946_v42 = vsel %vm2924_vm5, %v2930_v37, %v2932_v27  ;;  %v1780_v3 = vor.u32 %v1778_v17, %v5905_v62  ;;  %v5955_v61 = vor.u32 %v3429_v9, %v3426_v18  ;;  %v4863_v37 = vld [vmem:[#allocation2 + $0x30] sm:$0xff]   ;;  %v5980_v18 = vld [vmem:[#allocation2 + $0x38] sm:$0xff]  }
 0x1b9   : > { %2351 = vrot.lane.b32.xlu1 %v2316_v4, %s4998_s30  ;;  %2976 = vrot.lane.b32.xlu0 %v2941_v8, %s4999_s7  ;;  %v2619_v4 = vrot.slane %v2617_v24, 2  ;;  %v1761_v13 = vsel %vm1717_vm4, %v1756_v21, %v5948_v22  ;;  %v3180_v55 = vrot.slane %v4861_v28, 2  ;;  %v4864_v8 = vld [vmem:[#allocation2 + $0x50] sm:$0xff]   ;;  %v2585_v50 = vsel %vm2550_vm7, %v5791_v40, %v2584_v45  ;;  %v5982_v9 = vld [vmem:[#allocation2 + $0x58] sm:$0xff]  }
 0x1ba   : > { %v1785_v33 = vsel %vm1717_vm4, %v1780_v3, %v5925_v31  ;;  %v3431_v16 = vsel %vm3405_vm8, %v5772_v58, %v5955_v61  ;;  %v2319_v17 = vrot.slane %v4863_v37, 1  ;;  %v4866_v58 = vld [vmem:[#allocation2 + $0x30] sm:$0xff]   ;;  %v5984_v40 = vld [vmem:[#allocation2 + $0x38] sm:$0xff]   ;;  %v3797_v28 = vrot.slane %v5982_v9, 3 }
 0x1bb   : > { %v5957_v25 = vor.u32 %v2619_v4, %v2616_v52  ;;  %v3181_v24 = vsel %vm2924_vm5, %v3178_v15, %v3180_v55  ;;  %v2934_v45 = vrot.slane %v4866_v58, 2  ;;  %v4871_v21 = vld [vmem:[#allocation2 + $0x50] sm:$0xff]   ;;  %v5991_v4 = vld [vmem:[#allocation2 + $0x58] sm:$0xff]   ;;  %v2936_v37 = vrot.slane %v5984_v40, 2  ;;  %v4876_v58 = vld [vmem:[#allocation2 + $0x48] sm:$0xff]  }
 0x1bc   : > { %v2320_v48 = vsel %vm2069_vm3, %v2317_v26, %v2319_v17  ;;  %v4875_v26 = vld [vmem:[#allocation2 + $0x38] sm:$0xff]   ;;  %v2626_v12 = vshll.u32 %v4876_v58, 16  ;;  %v7175_v9 = vrot.slane %v5690_v51, 1  ;;  %v2093_v54 = vrot.slane %v4886_v36, 1 }
 0x1bd   : > { %2966 = vrot.lane.b32.xlu1 %v2931_v5, %s4999_s7  ;;  %2123 = vrot.lane.b32.xlu0 %v2088_v49, %s4996_s28  ;;  %v2621_v63 = vsel %vm2550_vm7, %v5754_v30, %v5957_v25  ;;  %v3795_v5 = vrot.slane %v4864_v8, 3  ;;  %v5974_v49 = vld [vmem:[#allocation2 + $0x30] sm:$0xff]   ;;  %v5978_v30 = vld [vmem:[#allocation2 + $0x58] sm:$0xff]   ;;  %v2935_v56 = vsel %vm2924_vm5, %v2932_v27, %v2934_v45  ;;  %v1762_v8 = vshrl.u32 %v5865_v57, 16 }
 0x1be   : > { %v1766_v52 = vshll.u32 %v5974_v49, 16  ;;  %v3182_v3 = vrot.slane %v5978_v30, 2  ;;  %v3454_v57 = vshll.u32 %v4875_v26, 16  ;;  %v2628_v1 = vrot.slane %v2626_v12, 2 }
 0x1bf   : > { %v3796_v15 = vsel %vm3779_vm6, %v3793_v53, %v3795_v5  ;;  %vm3950_vm2 = vcmask 293888  }
 0x1c0   : > { %v3183_v53 = vsel %vm2924_vm5, %v3180_v55, %v3182_v3  ;;  %v3456_v6 = vrot.slane %v3454_v57, 3 }
 0x1c1   : > { %1874 = vrot.lane.b32.xlu1 %v1761_v13, %s4997_s29  ;;  %1880 = vrot.lane.b32.xlu0 %v1785_v33, %s4997_s29  ;;  %v4874_v13 = vld [vmem:[#allocation2 + $0x30] sm:$0xff]   ;;  %v2321_v33 = vrot.slane %v5980_v18, 1 }
 0x1c2   : > { %v3442_v27 = vshrl.u32 %v4874_v13, 16 }
 0x1c3   : > { %v2322_v55 = vsel %vm2069_vm3, %v2319_v17, %v2321_v33  ;;  %v4899_v17 = vld [vmem:[%s7071_s4] ss:$8 sps:$4 sm:$0xff]  }
 0x1c5   : > { %3578 = vrot.lane.b32.xlu1 %v3431_v16, %s5003_s11  ;;  %2733 = vrot.lane.b32.xlu0 %v2621_v63, %s5002_s10  ;;  %v4877_v16 = vld [vmem:[#allocation2 + $0x50] sm:$0xff]   ;;  %v2089_v63 = vrot.slane %v4871_v21, 1  ;;  %v4878_v21 = vld [vmem:[#allocation2 + $0x58] sm:$0xff]  }
 0x1c6   : > { %v2632_v23 = vshrl.u32 %v4877_v16, 16 }
 0x1c9   : > { %2725 = vrot.lane.b32.xlu1 %v2585_v50, %s5002_s10  ;;  %3216 = vrot.lane.b32.xlu0 %v3181_v24, %s5000_s8  ;;  %v1768_v50 = vrot.slane %v1766_v52, 1  ;;  %v2091_v24 = vrot.slane %v5991_v4, 1  ;;  %v2623_v52 = vshrl.u32 %v4876_v58, 16 }
 0x1cb   : > { %v2625_v34 = vrot.slane %v2623_v52, 1 }
 0x1cd   : > { %2355 = vrot.lane.b32.xlu1 %v2320_v48, %s4998_s30  ;;  %3831 = vrot.lane.b32.xlu0 %v3796_v15, %s5001_s9  ;;  %v3445_v48 = vshll.u32 %v4874_v13, 16  ;;  %v3451_v15 = vshrl.u32 %v4875_v26, 16  ;;  %v3444_v13 = vrot.slane %v3442_v27, 2  ;;  %v2090_v26 = vsel %vm2069_vm3, %v2087_v43, %v2089_v63  ;;  %v4904_v43 = vld [vmem:[%s7071_s4 + $0x10] ss:$8 sps:$4 sm:$0xff]  }
 0x1ce   : > { %v1764_v27 = vor.u32 %v1762_v8, %v5948_v22  ;;  %v1770_v8 = vshrl.u32 %v5974_v49, 16 }
 0x1cf   : > { %v3447_v46 = vrot.slane %v3445_v48, 3  ;;  %v2641_v48 = vshrl.u32 %v4878_v21, 16  ;;  %v3453_v10 = vrot.slane %v3451_v15, 2 }
 0x1d0   : > { %v1769_v22 = vsel %vm1717_vm4, %v1764_v27, %v1768_v50 }
 0x1d1   : > { %2970 = vrot.lane.b32.xlu1 %v2935_v56, %s4999_s7  ;;  %3218 = vrot.lane.b32.xlu0 %v3183_v53, %s5000_s8  ;;  %v3798_v56 = vsel %vm3779_vm6, %v3795_v5, %v3797_v28  ;;  %v2635_v53 = vshll.u32 %v4877_v16, 16  ;;  %v4901_v5 = vld [vmem:[%s7071_s4 + $0x4] ss:$8 sps:$4 sm:$0xff]   ;;  %v2937_v16 = vsel %vm2924_vm5, %v2934_v45, %v2936_v37  ;;  %v6040_v45 = vor.u32 %v3447_v46, %v3444_v13 }
 0x1d2   : > { %4011 = vmatprep.subr.bf16.mxu0 %v4901_v5  ;;  %4755 = vmatprep.subr.bf16.mxu1 %v4901_v5  ;;  %v6048_v57 = vor.u32 %v3456_v6, %v3453_v10  ;;  %v4879_v5 = vld [vmem:[#allocation2 + $0x60] sm:$0xff]   ;;  %v4913_v6 = vld [vmem:[#allocation2 + $0x10] sm:$0xff]  }
 0x1d3   : > { %v2637_v58 = vrot.slane %v2635_v53, 2  ;;  %4012 = vmatpush1.bf16.msra.mxu0 %v4899_v17  ;;  %4758 = vmatpush1.bf16.msra.mxu1 %v4899_v17  ;;  %v3912_v53 = vld [vmem:[%s7071_s4 + $0x20] sm:$0x33]  ;;  %v1772_v17 = vor.u32 %v1770_v8, %v1768_v50  ;;  %1571 = vst.msk [vmem:[#allocation3 + $0x10] sm:$0xff] %vm412_vm1, %v4913_v6  ;;  %v4891_v6 = vld [vmem:[#allocation2 + $0x68] sm:$0xff]  }
 0x1d4   : > { %4013 = vmatprep.subr.bf16.mxu0 %v4906_v38  ;;  %4756 = vmatprep.subr.bf16.mxu1 %v4906_v38  ;;  %v4621_v46 = vcombine.high %v3912_v53, %v3912_v53  ;;  %v4620_v52 = vcombine.low %v3912_v53, %v3912_v53  ;;  %v3458_v13 = vsel %vm3405_vm8, %v6040_v45, %v6048_v57  ;;  %v4889_v8 = vld [vmem:[#allocation2 + $0x60] sm:$0xff]  }
 0x1d5   : > { %2357 = vrot.lane.b32.xlu1 %v2322_v55, %s4998_s30  ;;  %3833 = vrot.lane.b32.xlu0 %v3798_v56, %s5001_s9  ;;  %v2634_v55 = vrot.slane %v2632_v23, 1  ;;  %v2644_v56 = vshll.u32 %v4878_v21, 16  ;;  %v2092_v23 = vsel %vm2069_vm3, %v2089_v63, %v2091_v24  ;;  %v2643_v63 = vrot.slane %v2641_v48, 1 }
 0x1d6   : > { %v6050_v21 = vor.u32 %v2628_v1, %v2625_v34  ;;  %v4006_v10 = vsel %vm479_vm0, %v4620_v52, 0  ;;  %v4881_v34 = vld [vmem:[#allocation2 + $0x60] sm:$0xff]   ;;  %v1777_v50 = vsel %vm1717_vm4, %v1772_v17, %v5905_v62  ;;  %v2324_v48 = vsel %vm2069_vm3, %v2321_v33, %v2323_v20 }
 0x1d7   : > { %v2638_v12 = vor.u32 %v2637_v58, %v2634_v55  ;;  %v2646_v15 = vrot.slane %v2644_v56, 2  ;;  %4014 = vmatpush1.bf16.msra.mxu0 %v4904_v43  ;;  %4759 = vmatpush1.bf16.msra.mxu1 %v4904_v43  ;;  %v4883_v55 = vld [vmem:[#allocation2 + $0x40] sm:$0xff]   ;;  %v3799_v27 = vrot.slane %v4881_v34, 3  ;;  %v6081_v43 = vld [vmem:[#allocation2 + $0x68] sm:$0xff]   ;;  %v2939_v20 = vsel %vm2924_vm5, %v2936_v37, %v2938_v41 }
 0x1d8   : > { %4622 = vmatprep.subr.msk.bf16.mxu0 %vm479_vm0, %v4621_v46  ;;  %4757 = vmatprep.subr.msk.bf16.mxu1 %vm479_vm0, %v4621_v46  ;;  %v3460_v56 = vshrl.u32 %v4883_v55, 16  ;;  %v3463_v38 = vshll.u32 %v4883_v55, 16  ;;  %v3186_v40 = vrot.slane %v6081_v43, 2  ;;  %v4925_v37 = vld [vmem:[#allocation2 + $0x20] sm:$0xff]   ;;  %v4926_v46 = vld [vmem:[#allocation2 + $0x38] sm:$0xff]   ;;  %vm3871_vm0 = vcmask 294144  }
 0x1d9   : > { %2972 = vrot.lane.b32.xlu1 %v2937_v16, %s4999_s7  ;;  %2125 = vrot.lane.b32.xlu0 %v2090_v26, %s4996_s28  ;;  %v2639_v49 = vsel %vm2550_vm7, %v6050_v21, %v2638_v12  ;;  %v6062_v1 = vor.u32 %v2646_v15, %v2643_v63  ;;  %v3184_v26 = vrot.slane %v4879_v5, 2  ;;  %v3800_v30 = vsel %vm3779_vm6, %v3797_v28, %v3799_v27 }
 0x1da   : > { %v3462_v18 = vrot.slane %v3460_v56, 2  ;;  %v2086_v28 = vsel %vm2069_vm3, %v7175_v9, %v2085_v60  ;;  %1573 = vst.msk [vmem:[#allocation3 + $0x20] sm:$0xff] %vm412_vm1, %v4925_v37  ;;  %1576 = vst.msk [vmem:[#allocation3 + $0x38] sm:$0xff] %vm412_vm1, %v4926_v46  ;;  %v6114_v60 = vld [vmem:[#allocation2 + $0x48] sm:$0xff]   ;;  %v2650_v5 = vshrl.u32 %v4889_v8, 16  ;;  %v7176_v46 = vrot.slane %v5823_v44, 1 }
 0x1db   : > { %4016 = vmatpush1.bf16.msra.mxu0 %v4006_v10  ;;  %4760 = vmatpush1.bf16.msra.mxu1 %v4006_v10  ;;  %v2648_v16 = vsel %vm2550_vm7, %v2638_v12, %v6062_v1  ;;  %v3185_v62 = vsel %vm2924_vm5, %v3182_v3, %v3184_v26  ;;  %v3465_v3 = vrot.slane %v3463_v38, 3  ;;  %v3187_v63 = vsel %vm2924_vm5, %v3184_v26, %v3186_v40  ;;  %v4942_v9 = vld [vmem:[#allocation2 + $0x28] sm:$0xff]  }
 0x1dc   : > { %v2653_v10 = vshll.u32 %v4889_v8, 16  ;;  %v1790_v55 = vshll.u32 %v6114_v60, 16  ;;  %v1786_v38 = vshrl.u32 %v5879_v32, 16  ;;  %1574 = vst.msk [vmem:[#allocation3 + $0x28] sm:$0xff] %vm412_vm1, %v4942_v9 }
 0x1dd   : > { %1876 = vrot.lane.b32.xlu1 %v1769_v22, %s4997_s29  ;;  %2127 = vrot.lane.b32.xlu0 %v2092_v23, %s4996_s28  ;;  %v4885_v23 = vld [vmem:[#allocation2 + $0x48] sm:$0xff]   ;;  %v3466_v15 = vor.u32 %v3465_v3, %v3462_v18  ;;  %v4890_v18 = vld [vmem:[#allocation2 + $0x50] sm:$0xff]  }
 0x1de   : > { %v6083_v22 = vld [vmem:[#allocation2 + $0x68] sm:$0xff]   ;;  %v3469_v33 = vshrl.u32 %v4885_v23, 16  ;;  %v3472_v12 = vshll.u32 %v4885_v23, 16  ;;  %v2630_v23 = vsel %vm2550_vm7, %v5957_v25, %v6050_v21  ;;  %v6152_v32 = vrot.slane %v1790_v55, 1  ;;  %v4892_v25 = vld [vmem:[#allocation2 + $0x50] sm:$0xff]  }
 0x1df   : > { %v3801_v53 = vrot.slane %v6083_v22, 3  ;;  %v2327_v8 = vrot.slane %v4890_v18, 1 }
 0x1e0   : > { %v3471_v52 = vrot.slane %v3469_v33, 2 }
 0x1e1   : > { %3584 = vrot.lane.b32.xlu1 %v3458_v13, %s5003_s11  ;;  %2737 = vrot.lane.b32.xlu0 %v2639_v49, %s5002_s10  ;;  %v3474_v13 = vrot.slane %v3472_v12, 3  ;;  %v3467_v49 = vsel %vm3405_vm8, %v6048_v57, %v3466_v15  ;;  %v3802_v17 = vsel %vm3779_vm6, %v3799_v27, %v3801_v53  ;;  %v2094_v57 = vsel %vm2069_vm3, %v2091_v24, %v2093_v54 }
 0x1e2   : > { %v2655_v27 = vrot.slane %v2653_v10, 2  ;;  %v6182_v10 = vld [vmem:[#allocation2 + $0x50] sm:$0xff]  }
 0x1e3   : > { %v6123_v34 = vor.u32 %v3474_v13, %v3471_v52  ;;  %v2328_v52 = vsel %vm2069_vm3, %v7176_v46, %v2327_v8  ;;  %v1798_v43 = vshll.u32 %v6182_v10, 16 }
 0x1e5   : > { %1878 = vrot.lane.b32.xlu1 %v1777_v50, %s4997_s29  ;;  %2739 = vrot.lane.b32.xlu0 %v2648_v16, %s5002_s10  ;;  %v6125_v50 = vld [vmem:[#allocation2 + $0x68] sm:$0xff]   ;;  %v3476_v26 = vsel %vm3405_vm8, %v3466_v15, %v6123_v34  ;;  %v2942_v15 = vrot.slane %v4892_v25, 2  ;;  %v1800_v9 = vrot.slane %v1798_v43, 1 }
 0x1e6   : > { %v2108_v58 = vpop.permute.xlu1 %2107  ;;  %v2095_v56 = vrot.slane %v6125_v50, 1 }
 0x1e9   : > { %2359 = vrot.lane.b32.xlu1 %v2324_v48, %s4998_s30  ;;  %3220 = vrot.lane.b32.xlu0 %v3185_v62, %s5000_s8  ;;  %v2659_v48 = vshrl.u32 %v4891_v6, 16  ;;  %v2662_v62 = vshll.u32 %v4891_v6, 16  ;;  %v7177_v6 = vrot.slane %v5831_v39, 2 }
 0x1eb   : > { %v1867_v19 = vpop.permute.xlu1 %1866  ;;  %v2661_v3 = vrot.slane %v2659_v48, 1  ;;  %v2664_v33 = vrot.slane %v2662_v62, 2  ;;  %v6197_v62 = vld [vmem:[#allocation2 + $0x78] sm:$0xff]  }
 0x1ec   : > { %1921 = vst.msk [vmem:[#allocation3] sm:$0xff] %vm1920_vm9, %v1867_v19  ;;  %v2096_v19 = vsel %vm2069_vm3, %v2093_v54, %v2095_v56  ;;  %v6171_v54 = vld [vmem:[#allocation2 + $0x70] sm:$0xff]  }
 0x1ed   : > { %2974 = vrot.lane.b32.xlu1 %v2939_v20, %s4999_s7  ;;  %3835 = vrot.lane.b32.xlu0 %v3800_v30, %s5001_s9  ;;  %2162 = vst.msk [vmem:[#allocation3] sm:$0xff] %vm2161_vm10, %v2108_v58  ;;  %v2652_v58 = vrot.slane %v2650_v5, 1  ;;  %v1788_v20 = vor.u32 %v1786_v38, %v5925_v31  ;;  %v6162_v37 = vor.u32 %v2664_v33, %v2661_v3  ;;  %v3803_v55 = vrot.slane %v6171_v54, 3  ;;  %v6214_v33 = vld [vmem:[#allocation2 + $0x78] sm:$0xff]  }
 0x1ee   : > { %v3190_v3 = vrot.slane %v6197_v62, 2 }
 0x1ef   : > { %v2348_v41 = vpop.permute.xlu1 %2347  ;;  %v2656_v30 = vor.u32 %v2655_v27, %v2652_v58  ;;  %v1793_v21 = vsel %vm1717_vm4, %v1788_v20, %v6152_v32  ;;  %v4907_v58 = vld [vmem:[#allocation2 + $0x50] sm:$0xff]   ;;  %v6194_v27 = vld [vmem:[#allocation2 + $0x58] sm:$0xff]  }
 0x1f0   : > { %2402 = vst.msk [vmem:[#allocation3] sm:$0xff] %vm2401_vm11, %v2348_v41  ;;  %v4893_v41 = vld [vmem:[#allocation2 + $0x70] sm:$0xff]   ;;  %v3478_v20 = vshrl.u32 %v4907_v58, 16  ;;  %v2944_v18 = vrot.slane %v6194_v27, 2 }
 0x1f1   : > { %2121 = vrot.lane.b32.xlu1 %v2086_v28, %s4996_s28  ;;  %3222 = vrot.lane.b32.xlu0 %v3187_v63, %s5000_s8  ;;  %v2657_v31 = vsel %vm2550_vm7, %v6062_v1, %v2656_v30  ;;  %v2666_v1 = vsel %vm2550_vm7, %v2656_v30, %v6162_v37  ;;  %v3188_v13 = vrot.slane %v4893_v41, 2  ;;  %v3481_v30 = vshll.u32 %v4907_v58, 16  ;;  %v6244_v58 = vld [vmem:[#allocation2 + $0x58] sm:$0xff]  }
 0x1f2   : > { %v2945_v22 = vsel %vm2924_vm5, %v2942_v15, %v2944_v18  ;;  %v3480_v46 = vrot.slane %v3478_v20, 2  ;;  %v4959_v20 = vld [vmem:[#allocation2 + $0x40] sm:$0xff]   ;;  %v1806_v50 = vshll.u32 %v6244_v58, 16 }
 0x1f3   : > { %v6112_v51 = vpop.permute.xlu1 %2962  ;;  %v3191_v41 = vsel %vm2924_vm5, %v3188_v13, %v3190_v3  ;;  %1577 = vst.msk [vmem:[#allocation3 + $0x40] sm:$0xff] %vm412_vm1, %v4959_v20 }
 0x1f5   : > { %3586 = vrot.lane.b32.xlu1 %v3467_v49, %s5003_s11  ;;  %3837 = vrot.lane.b32.xlu0 %v3802_v17, %s5001_s9  ;;  %v4945_v49 = vld [vmem:[#allocation2 + $0x30] sm:$0xff]   ;;  %v6176_v17 = vld [vmem:[#allocation2 + $0x58] sm:$0xff]  }
 0x1f6   : > { %1575 = vst.msk [vmem:[#allocation3 + $0x30] sm:$0xff] %vm412_vm1, %v4945_v49  ;;  %v2329_v48 = vrot.slane %v6176_v17, 1  ;;  %v4972_v17 = vld [vmem:[#allocation2 + $0x70] sm:$0xff]  }
 0x1f7   : > { %v6127_v16 = vpop.permute.xlu1 %3202  ;;  %v6139_v4 = vpop.permute.xlu0 %2115  ;;  %1583 = vst.msk [vmem:[#allocation3 + $0x70] sm:$0xff] %vm412_vm1, %v4972_v17  ;;  %v4980_v17 = vld [vmem:[#allocation2 + $0x78] sm:$0xff]  }
 0x1f8   : > { %1584 = vst.msk [vmem:[#allocation3 + $0x78] sm:$0xff] %vm412_vm1, %v4980_v17 }
 0x1f9   : > { %3588 = vrot.lane.b32.xlu1 %v3476_v26, %s5003_s11  ;;  %2129 = vrot.lane.b32.xlu0 %v2094_v57, %s4996_s28  ;;  %v2943_v57 = vsel %vm2924_vm5, %v7177_v6, %v2942_v15  ;;  %v3189_v26 = vsel %vm2924_vm5, %v3186_v40, %v3188_v13  ;;  %v4910_v40 = vld [vmem:[#allocation2 + $0x58] sm:$0xff]   ;;  %v3805_v15 = vrot.slane %v6214_v33, 3 }
 0x1fa   : > { %v3490_v13 = vshll.u32 %v4910_v40, 16 }
 0x1fb   : > { %v6141_v24 = vpop.permute.xlu1 %3817 }
 0x1fd   : > { %2735 = vrot.lane.b32.xlu1 %v2630_v23, %s5002_s10  ;;  %2131 = vrot.lane.b32.xlu0 %v2096_v19, %s4996_s28  ;;  %v2330_v23 = vsel %vm2069_vm3, %v2327_v8, %v2329_v48  ;;  %v3804_v19 = vsel %vm3779_vm6, %v3801_v53, %v3803_v55  ;;  %v1794_v53 = vshrl.u32 %v6114_v60, 16  ;;  %v3487_v8 = vshrl.u32 %v4910_v40, 16 }
 0x1ff   : > { %v2110_v12 = vpop.permute.xlu1 %2109  ;;  %v6154_v36 = vpop.permute.xlu0 %3210  ;;  %v1796_v60 = vor.u32 %v1794_v53, %v6152_v32  ;;  %v3489_v6 = vrot.slane %v3487_v8, 2  ;;  %v3806_v32 = vsel %vm3779_vm6, %v3803_v55, %v3805_v15 }
 0x201   : > { %1882 = vrot.lane.b32.xlu1 %v1793_v21, %s4997_s29  ;;  %2741 = vrot.lane.b32.xlu0 %v2657_v31, %s5002_s10  ;;  %v6222_v31 = vld [vmem:[#allocation2 + $0x70] sm:$0xff]  }
 0x203   : > { %v2350_v28 = vpop.permute.xlu1 %2349  ;;  %v6164_v63 = vpop.permute.xlu0 %3825 }
 0x205   : > { %2363 = vrot.lane.b32.xlu1 %v2328_v52, %s4998_s30  ;;  %2743 = vrot.lane.b32.xlu0 %v2666_v1, %s5002_s10  ;;  %v3483_v52 = vrot.slane %v3481_v30, 3  ;;  %v4915_v1 = vld [vmem:[#allocation2 + $0x70] sm:$0xff]  }
 0x206   : > { %v2668_v43 = vshrl.u32 %v4915_v1, 16  ;;  %v2671_v40 = vshll.u32 %v4915_v1, 16 }
 0x207   : > { %v6178_v5 = vpop.permute.xlu1 %2964  ;;  %v6180_v44 = vpop.permute.xlu0 %2117 }
 0x208   : > { %v2670_v53 = vrot.slane %v2668_v43, 1  ;;  %v6288_v43 = vld [vmem:[#allocation2 + $0x78] sm:$0xff]  }
 0x209   : > { %2978 = vrot.lane.b32.xlu1 %v2943_v57, %s4999_s7  ;;  %3224 = vrot.lane.b32.xlu0 %v3189_v26, %s5000_s8  ;;  %v6237_v57 = vld [vmem:[#allocation2 + $0x78] sm:$0xff]   ;;  %v3484_v26 = vor.u32 %v3483_v52, %v3480_v46 }
 0x20b   : > { %v6199_v39 = vpop.permute.xlu1 %2111  ;;  %v6201_v38 = vpop.permute.xlu0 %2119 }
 0x20d   : > { %2365 = vrot.lane.b32.xlu1 %v2330_v23, %s4998_s30  ;;  %3839 = vrot.lane.b32.xlu0 %v3804_v19, %s5001_s9  ;;  %v4917_v23 = vld [vmem:[#allocation2 + $0x78] sm:$0xff]   ;;  %v3492_v19 = vrot.slane %v3490_v13, 3  ;;  %v6278_v13 = vld [vmem:[#allocation2 + $0x60] sm:$0xff]  }
 0x20e   : > { %v2677_v46 = vshrl.u32 %v4917_v23, 16  ;;  %v2680_v52 = vshll.u32 %v4917_v23, 16  ;;  %v2331_v23 = vrot.slane %v6278_v13, 1 }
 0x20f   : > { %v1869_v25 = vpop.permute.xlu1 %1868  ;;  %v6216_v21 = vpop.permute.xlu0 %2729  ;;  %v6266_v8 = vor.u32 %v3492_v19, %v3489_v6  ;;  %v4965_v6 = vld [vmem:[#allocation2 + $0x48] sm:$0xff]   ;;  %v6295_v19 = vld [vmem:[#allocation2 + $0x60] sm:$0xff]  }
 0x210   : > { %1922 = vst.msk [vmem:[#allocation3 + $0x8] sm:$0xff] %vm1920_vm9, %v1869_v25  ;;  %v3485_v25 = vsel %vm3405_vm8, %v6123_v34, %v3484_v26  ;;  %v1802_v34 = vshrl.u32 %v6182_v10, 16 }
 0x211   : > { %2163 = vst.msk [vmem:[#allocation3 + $0x8] sm:$0xff] %vm2161_vm10, %v2110_v12  ;;  %2980 = vrot.lane.b32.xlu1 %v2945_v22, %s4999_s7  ;;  %3226 = vrot.lane.b32.xlu0 %v3191_v41, %s5000_s8  ;;  %v2097_v12 = vrot.slane %v6222_v31, 1  ;;  %v7098_v22 = vrot.slane %v6237_v57, 1  ;;  %v4919_v31 = vld [vmem:[#allocation2 + $0x70] sm:$0xff]  }
 0x212   : > { %2403 = vst.msk [vmem:[#allocation3 + $0x8] sm:$0xff] %vm2401_vm11, %v2350_v28  ;;  %v1801_v28 = vsel %vm1717_vm4, %v1796_v60, %v1800_v9  ;;  %v1804_v60 = vor.u32 %v1802_v34, %v1800_v9  ;;  %v2682_v9 = vrot.slane %v2680_v52, 2  ;;  %v6319_v52 = vld [vmem:[#allocation2 + $0x80] sm:$0xff]  }
 0x213   : > { %v2722_v54 = vpop.permute.xlu1 %2721  ;;  %v6234_v49 = vpop.permute.xlu0 %2731  ;;  %v2100_v1 = vsel %vm2069_vm3, %v2097_v12, %v7098_v22  ;;  %1578 = vst.msk [vmem:[#allocation3 + $0x48] sm:$0xff] %vm412_vm1, %v4965_v6  ;;  %v6335_v6 = vld [vmem:[#allocation2 + $0x68] sm:$0xff]   ;;  %v6376_v22 = vld [vmem:[#allocation2 + $0x80] sm:$0xff]  }
 0x214   : > { %2776 = vst.msk [vmem:[#allocation3] sm:$0xff] %vm2775_vm12, %v2722_v54  ;;  %v1830_v54 = vshll.u32 %v4919_v31, 16 }
 0x215   : > { %3017 = vst.msk [vmem:[#allocation3] sm:$0xff] %vm3016_vm13, %v6112_v51  ;;  %1884 = vrot.lane.b32.xlu1 %v1801_v28, %s4997_s29  ;;  %3841 = vrot.lane.b32.xlu0 %v3806_v32, %s5001_s9  ;;  %v2098_v51 = vsel %vm2069_vm3, %v2095_v56, %v2097_v12  ;;  %v6284_v28 = vrot.slane %v1806_v50, 1  ;;  %v2679_v12 = vrot.slane %v2677_v46, 1  ;;  %v1838_v50 = vshll.u32 %v6288_v43, 16  ;;  %v6317_v46 = vld [vmem:[#allocation2 + $0x68] sm:$0xff]  }
 0x216   : > { %3257 = vst.msk [vmem:[#allocation3] sm:$0xff] %vm3256_vm14, %v6127_v16  ;;  %v2673_v16 = vrot.slane %v2671_v40, 2  ;;  %v7100_v27 = vrot.slane %v6317_v46, 1 }
 0x217   : > { %v3577_v30 = vpop.permute.xlu1 %3576  ;;  %v6252_v55 = vpop.permute.xlu0 %3212  ;;  %v1809_v40 = vsel %vm1717_vm4, %v1804_v60, %v6284_v28  ;;  %v6309_v34 = vor.u32 %v2682_v9, %v2679_v12  ;;  %v6341_v12 = vld [vmem:[#allocation2 + $0x80] sm:$0xff]  }
 0x218   : > { %3631 = vst.msk [vmem:[#allocation3] sm:$0xff] %vm3630_vm15, %v3577_v30  ;;  %v2674_v10 = vor.u32 %v2673_v16, %v2670_v53  ;;  %v6303_v30 = vrot.slane %v1830_v54, 1  ;;  %v6333_v54 = vrot.slane %v1838_v50, 1  ;;  %v4978_v9 = vld [vmem:[#allocation2 + $0x60] sm:$0xff]   ;;  %v2334_v50 = vsel %vm2069_vm3, %v2331_v23, %v7100_v27  ;;  %v6392_v27 = vld [vmem:[#allocation2 + $0x78] sm:$0xff]  }
 0x219   : > { %3872 = vst.msk [vmem:[#allocation3] sm:$0xff] %vm3871_vm0, %v6141_v24  ;;  %3590 = vrot.lane.b32.xlu1 %v3485_v25, %s5003_s11  ;;  %2133 = vrot.lane.b32.xlu0 %v2098_v51, %s4996_s28  ;;  %v3494_v24 = vsel %vm3405_vm8, %v3484_v26, %v6266_v8  ;;  %v7178_v25 = vmov 0   ;;  %v4969_v51 = vld [vmem:[#allocation2 + $0x50] sm:$0xff]  }
 0x21a   : > { %v2675_v20 = vsel %vm2550_vm7, %v6162_v37, %v2674_v10  ;;  %v2332_v37 = vsel %vm2069_vm3, %v2329_v48, %v2331_v23  ;;  %1579 = vst.msk [vmem:[#allocation3 + $0x50] sm:$0xff] %vm412_vm1, %v4969_v51  ;;  %v4930_v48 = vld [vmem:[#allocation2 + $0x60] sm:$0xff]   ;;  %1581 = vst.msk [vmem:[#allocation3 + $0x60] sm:$0xff] %vm412_vm1, %v4978_v9 }
 0x21b   : > { %v2724_v56 = vpop.permute.xlu1 %2723  ;;  %v6270_v41 = vpop.permute.xlu0 %3827  ;;  %v3499_v51 = vshll.u32 %v4930_v48, 16  ;;  %v6370_v9 = vld [vmem:[#allocation2 + $0x80] sm:$0xff]  }
 0x21c   : > { %2777 = vst.msk [vmem:[#allocation3 + $0x8] sm:$0xff] %vm2775_vm12, %v2724_v56  ;;  %v2946_v56 = vrot.slane %v6295_v19, 2 }
 0x21d   : > { %3018 = vst.msk [vmem:[#allocation3 + $0x8] sm:$0xff] %vm3016_vm13, %v6178_v5  ;;  %3592 = vrot.lane.b32.xlu1 %v3494_v24, %s5003_s11  ;;  %2135 = vrot.lane.b32.xlu0 %v2100_v1, %s4996_s28  ;;  %v6326_v1 = vld [vmem:[#allocation2 + $0x60] sm:$0xff]  }
 0x21e   : > { %v1814_v19 = vshll.u32 %v6326_v1, 16 }
 0x21f   : > { %v1871_v32 = vpop.permute.xlu1 %1870  ;;  %v6286_v26 = vpop.permute.xlu0 %3214 }
 0x220   : > { %1923 = vst.msk [vmem:[#allocation3 + $0x10] sm:$0xff] %vm1920_vm9, %v1871_v32  ;;  %v3890_v5 = vld [vmem:[#allocation3] sm:$0xff]  ;;  %v4976_v32 = vld [vmem:[#allocation2 + $0x58] sm:$0xff]  }
 0x221   : > { %2164 = vst.msk [vmem:[#allocation3 + $0x10] sm:$0xff] %vm2161_vm10, %v6199_v39  ;;  %4623 = vmatmul.mubr.msk.bf16.vlgmr.msra.gmra.mrb[44].mxu0 %vm3950_vm2, %v3890_v5  ;;  %1886 = vrot.lane.b32.xlu1 %v1809_v40, %s4997_s29  ;;  %v1834_v39 = vshrl.u32 %v4919_v31, 16  ;;  %v2684_v31 = vsel %vm2550_vm7, %v2674_v10, %v6309_v34  ;;  %v2947_v10 = vsel %vm2924_vm5, %v2944_v18, %v2946_v56  ;;  %v3192_v40 = vrot.slane %v6319_v52, 2 }
 0x222   : > { %2745 = vrot.lane.b32.xlu0 %v2675_v20, %s5002_s10  ;;  %4053 = vmatprep.mubr.bf16.mxu0 %v7178_v25  ;;  %1580 = vst.msk [vmem:[#allocation3 + $0x58] sm:$0xff] %vm412_vm1, %v4976_v32  ;;  %v4979_v20 = vld [vmem:[#allocation2 + $0x68] sm:$0xff]   ;;  %v3496_v18 = vshrl.u32 %v4930_v48, 16  ;;  %v1816_v32 = vrot.slane %v1814_v19, 1  ;;  %v2339_v19 = vrot.slane %v6370_v9, 1  ;;  %v1842_v9 = vshrl.u32 %v6288_v43, 16 }
 0x223   : > { %v3205_v53 = vpop.permute.xlu1 %3204  ;;  %v6307_v16 = vpop.permute.xlu0 %3829  ;;  %v1836_v24 = vor.u32 %v1834_v39, %v6303_v30  ;;  %1582 = vst.msk [vmem:[#allocation3 + $0x68] sm:$0xff] %vm412_vm1, %v4979_v20  ;;  %v3193_v48 = vsel %vm2924_vm5, %v3190_v3, %v3192_v40  ;;  %v4933_v20 = vld [vmem:[#allocation2 + $0x68] sm:$0xff]  }
 0x224   : > { %3258 = vst.msk [vmem:[#allocation3 + $0x8] sm:$0xff] %vm3256_vm14, %v3205_v53  ;;  %v3498_v23 = vrot.slane %v3496_v18, 2  ;;  %v4982_v18 = vld [vmem:[#allocation2 + $0x18] sm:$0xff]   ;;  %v3505_v17 = vshrl.u32 %v4933_v20, 16  ;;  %v1844_v43 = vor.u32 %v1842_v9, %v6333_v54  ;;  %v6549_v9 = vld [vmem:[#allocation2 + $0x28] sm:$0xff]  }
 0x225   : > { %2367 = vrot.lane.b32.xlu1 %v2332_v37, %s4998_s30  ;;  %v1841_v5 = vsel %vm1717_vm4, %v1836_v24, %v6333_v54  ;;  %v7099_v37 = vrot.slane %v6335_v6, 2  ;;  %v1810_v24 = vshrl.u32 %v6244_v58, 16  ;;  %v4981_v58 = vld [vmem:[#allocation2 + $0x80] sm:$0xff]   ;;  %1572 = vst.msk [vmem:[#allocation3 + $0x18] sm:$0xff] %vm412_vm1, %v4982_v18  ;;  %v7101_v18 = vrot.slane %v6392_v27, 2 }
 0x226   : > { %2747 = vrot.lane.b32.xlu0 %v2684_v31, %s5002_s10  ;;  %v3807_v31 = vrot.slane %v6341_v12, 3  ;;  %1585 = vst.msk [vmem:[#allocation3 + $0x80] sm:$0xff] %vm412_vm1, %v4981_v58 }
 0x227   : > { %v6329_v60 = vpop.permute.xlu1 %3819  ;;  %v6331_v13 = vpop.permute.xlu0 %2361  ;;  %v2949_v62 = vsel %vm2924_vm5, %v2946_v56, %v7099_v37  ;;  %v4983_v56 = vld [vmem:[#allocation2 + $0x88] sm:$0xff]  }
 0x228   : > { %v3808_v3 = vsel %vm3779_vm6, %v3805_v15, %v3807_v31  ;;  %1586 = vst.msk [vmem:[#allocation3 + $0x88] sm:$0xff] %vm412_vm1, %v4983_v56  ;;  %v6428_v56 = vld [vmem:[#allocation2 + $0x88] sm:$0xff]  }
 0x229   : > { %2982 = vrot.lane.b32.xlu1 %v2947_v10, %s4999_s7  ;;  %v6368_v10 = vld [vmem:[#allocation2 + $0x78] sm:$0xff]  }
 0x22a   : > { %1894 = vrot.lane.b32.xlu0 %v1841_v5, %s4997_s29  ;;  %v3501_v5 = vrot.slane %v3499_v51, 3  ;;  %v1812_v51 = vor.u32 %v1810_v24, %v6284_v28  ;;  %v6408_v24 = vld [vmem:[#allocation2 + $0x88] sm:$0xff]  }
 0x22b   : > { %v2352_v53 = vpop.permute.xlu1 %2351  ;;  %v6352_v39 = vpop.permute.xlu0 %2976 }
 0x22c   : > { %2404 = vst.msk [vmem:[#allocation3 + $0x10] sm:$0xff] %vm2401_vm11, %v2352_v53  ;;  %v1817_v33 = vsel %vm1717_vm4, %v1812_v51, %v1816_v32  ;;  %v3502_v15 = vor.u32 %v3501_v5, %v3498_v23  ;;  %v3507_v23 = vrot.slane %v3505_v17, 2 }
 0x22d   : > { %2369 = vrot.lane.b32.xlu1 %v2334_v50, %s4998_s30 }
 0x22e   : > { %3228 = vrot.lane.b32.xlu0 %v3193_v48, %s5000_s8  ;;  %v3508_v48 = vshll.u32 %v4933_v20, 16  ;;  %v6411_v20 = vld [vmem:[#allocation2 + $0x68] sm:$0xff]   ;;  %v3503_v51 = vsel %vm3405_vm8, %v6266_v8, %v3502_v15  ;;  %v1818_v8 = vshrl.u32 %v6326_v1, 16 }
 0x22f   : > { %v2967_v53 = vpop.permute.xlu1 %2966  ;;  %v6374_v50 = vpop.permute.xlu0 %2123 }
 0x230   : > { %v3510_v5 = vrot.slane %v3508_v48, 3  ;;  %v7103_v48 = vrot.slane %v6408_v24, 2 }
 0x231   : > { %2984 = vrot.lane.b32.xlu1 %v2949_v62, %s4999_s7  ;;  %v2337_v62 = vrot.slane %v6368_v10, 1  ;;  %v1826_v10 = vshrl.u32 %v6411_v20, 16 }
 0x232   : > { %3843 = vrot.lane.b32.xlu0 %v3808_v3, %s5001_s9  ;;  %v3195_v1 = vsel %vm2924_vm5, %v3192_v40, %v7103_v48 }
 0x233   : > { %v1875_v37 = vpop.permute.xlu1 %1874  ;;  %v1881_v58 = vpop.permute.xlu0 %1880  ;;  %v2340_v28 = vsel %vm2069_vm3, %v2337_v62, %v2339_v19 }
 0x234   : > { %1925 = vst.msk [vmem:[#allocation3 + $0x20] sm:$0xff] %vm1920_vm9, %v1875_v37  ;;  %1928 = vst.msk [vmem:[#allocation3 + $0x38] sm:$0xff] %vm1920_vm9, %v1881_v58  ;;  %v7105_v37 = vrot.slane %v6376_v22, 2  ;;  %v6431_v58 = vor.u32 %v3510_v5, %v3507_v23  ;;  %v7102_v23 = vrot.slane %v6428_v56, 3  ;;  %v6448_v5 = vld [vmem:[#allocation2 + $0x80] sm:$0xff]  }
 0x235   : > { %2166 = vst.msk [vmem:[#allocation3 + $0x20] sm:$0xff] %vm2161_vm10, %v6139_v4  ;;  %1888 = vrot.lane.b32.xlu1 %v1817_v33, %s4997_s29 }
 0x236   : > { %2375 = vrot.lane.b32.xlu0 %v2340_v28, %s4998_s30  ;;  %v2955_v17 = vsel %vm2924_vm5, %v7101_v18, %v7105_v37  ;;  %v4937_v18 = vld [vmem:[#allocation2 + $0x70] sm:$0xff]   ;;  %v3810_v40 = vsel %vm3779_vm6, %v3807_v31, %v7102_v23  ;;  %v7181_v31 = vrot.slane %v6237_v57, 1  ;;  %v4949_v37 = vld [vmem:[#allocation2 + $0x80] sm:$0xff]  }
 0x237   : > { %v3579_v3 = vpop.permute.xlu1 %3578  ;;  %v6413_v4 = vpop.permute.xlu0 %2733  ;;  %v2335_v52 = vrot.slane %v4937_v18, 1 }
 0x238   : > { %3632 = vst.msk [vmem:[#allocation3 + $0x8] sm:$0xff] %vm3630_vm15, %v3579_v3  ;;  %v3512_v3 = vsel %vm3405_vm8, %v3502_v15, %v6431_v58 }
 0x239   : > { %3873 = vst.msk [vmem:[#allocation3 + $0x8] sm:$0xff] %vm3871_vm0, %v6329_v60  ;;  %3594 = vrot.lane.b32.xlu1 %v3503_v51, %s5003_s11  ;;  %v1822_v60 = vshll.u32 %v6411_v20, 16  ;;  %v1820_v51 = vor.u32 %v1818_v8, %v1816_v32 }
 0x23a   : > { %2990 = vrot.lane.b32.xlu0 %v2955_v17, %s4999_s7 }
 0x23b   : > { %v2726_v33 = vpop.permute.xlu1 %2725  ;;  %v6435_v28 = vpop.permute.xlu0 %3216  ;;  %v6451_v17 = vrot.slane %v1822_v60, 1  ;;  %v2101_v60 = vrot.slane %v6448_v5, 1 }
 0x23c   : > { %2778 = vst.msk [vmem:[#allocation3 + $0x10] sm:$0xff] %vm2775_vm12, %v2726_v33  ;;  %v4939_v33 = vld [vmem:[#allocation2 + $0x70] sm:$0xff]  }
 0x23d   : > { %3019 = vst.msk [vmem:[#allocation3 + $0x10] sm:$0xff] %vm3016_vm13, %v2967_v53  ;;  %3596 = vrot.lane.b32.xlu1 %v3512_v3, %s5003_s11  ;;  %v1825_v8 = vsel %vm1717_vm4, %v1820_v51, %v6451_v17  ;;  %v6468_v3 = vld [vmem:[#allocation2 + $0x88] sm:$0xff]   ;;  %v7180_v51 = vrot.slane %v6317_v46, 1  ;;  %v2950_v12 = vrot.slane %v4939_v33, 2  ;;  %v2102_v5 = vsel %vm2069_vm3, %v7181_v31, %v2101_v60  ;;  %v4946_v33 = vld [vmem:[#allocation2 + $0x70] sm:$0xff]  }
 0x23e   : > { %3230 = vrot.lane.b32.xlu0 %v3195_v1, %s5000_s8  ;;  %v6502_v31 = vld [vmem:[#allocation2 + $0x88] sm:$0xff]   ;;  %v3517_v48 = vshll.u32 %v4946_v33, 16  ;;  %v1828_v20 = vor.u32 %v1826_v10, %v6451_v17 }
 0x23f   : > { %v2356_v32 = vpop.permute.xlu1 %2355  ;;  %v6453_v15 = vpop.permute.xlu0 %3831  ;;  %v2336_v1 = vsel %vm2069_vm3, %v7180_v51, %v2335_v52  ;;  %v4947_v51 = vld [vmem:[#allocation2 + $0x80] sm:$0xff]   ;;  %v7187_v54 = vrot.slane %v6502_v31, 1 }
 0x240   : > { %7179 = vst [vmem:[#allocation5_spill] sm:$0xff] %v6453_v15  ;;  %2406 = vst.msk [vmem:[#allocation3 + $0x20] sm:$0xff] %vm2401_vm11, %v2356_v32  ;;  %v3891_v53 = vld [vmem:[#allocation3 + $0x8] sm:$0xff]  ;;  %v7104_v32 = vrot.slane %v6468_v3, 1 }
 0x241   : > { %2780 = vst.msk [vmem:[#allocation3 + $0x20] sm:$0xff] %vm2775_vm12, %v6216_v21  ;;  %4624 = vmatmul.mubr.msk.bf16.gmra.mrb[48].mxu0 %vm3950_vm2, %v3891_v53  ;;  %1890 = vrot.lane.b32.xlu1 %v1825_v8, %s4997_s29  ;;  %v6485_v53 = vld [vmem:[#allocation2 + $0x88] sm:$0xff]  }
 0x242   : > { %3845 = vrot.lane.b32.xlu0 %v3810_v40, %s5001_s9  ;;  %4063 = vmatprep.mubr.bf16.mxu0 %v7178_v25  ;;  %v6490_v40 = vld [vmem:[#allocation2 + $0x80] sm:$0xff]   ;;  %v2342_v57 = vsel %vm2069_vm3, %v2339_v19, %v7104_v32  ;;  %v2686_v19 = vshrl.u32 %v4947_v51, 16  ;;  %v2689_v32 = vshll.u32 %v4947_v51, 16  ;;  %v7186_v51 = vrot.slane %v6392_v27, 2 }
 0x243   : > { %v2971_v18 = vpop.permute.xlu1 %2970  ;;  %v6472_v21 = vpop.permute.xlu0 %3218  ;;  %v2104_v27 = vsel %vm2069_vm3, %v2101_v60, %v7187_v54  ;;  %v6570_v54 = vld [vmem:[#allocation2 + $0x88] sm:$0xff]  }
 0x244   : > { %3021 = vst.msk [vmem:[#allocation3 + $0x20] sm:$0xff] %vm3016_vm13, %v2971_v18  ;;  %v2691_v15 = vrot.slane %v2689_v32, 2  ;;  %v4951_v32 = vld [vmem:[#allocation2 + $0x78] sm:$0xff]  }
 0x245   : > { %3261 = vst.msk [vmem:[#allocation3 + $0x20] sm:$0xff] %vm3256_vm14, %v6154_v36  ;;  %2371 = vrot.lane.b32.xlu1 %v2336_v1, %s4998_s30  ;;  %v7183_v36 = vrot.slane %v6335_v6, 2  ;;  %v7107_v1 = vrot.slane %v6485_v53, 2  ;;  %v1846_v6 = vshll.u32 %v6490_v40, 16 }
 0x246   : > { %2137 = vrot.lane.b32.xlu0 %v2102_v5, %s4996_s28 }
 0x247   : > { %v2358_v8 = vpop.permute.xlu1 %2357  ;;  %v6488_v46 = vpop.permute.xlu0 %3833  ;;  %v2951_v18 = vsel %vm2924_vm5, %v7183_v36, %v2950_v12  ;;  %v3514_v36 = vshrl.u32 %v4946_v33, 16  ;;  %v4950_v33 = vld [vmem:[#allocation2 + $0x88] sm:$0xff]   ;;  %v6527_v59 = vrot.slane %v1846_v6, 1 }
 0x248   : > { %7182 = vst [vmem:[#allocation10_spill] sm:$0xff] %v6488_v46  ;;  %v3544_v6 = vshll.u32 %v4950_v33, 16 }
 0x249   : > { %2986 = vrot.lane.b32.xlu1 %v2951_v18, %s4999_s7  ;;  %v2338_v18 = vsel %vm2069_vm3, %v2335_v52, %v2337_v62  ;;  %v1849_v17 = vsel %vm1717_vm4, %v1844_v43, %v6527_v59  ;;  %v3523_v43 = vshrl.u32 %v4951_v32, 16 }
 0x24a   : > { %2377 = vrot.lane.b32.xlu0 %v2342_v57, %s4998_s30  ;;  %v7185_v57 = vrot.slane %v6376_v22, 2  ;;  %v3516_v22 = vrot.slane %v3514_v36, 2  ;;  %v1833_v36 = vsel %vm1717_vm4, %v1828_v20, %v6303_v30  ;;  %v3546_v30 = vrot.slane %v3544_v6, 3 }
 0x24b   : > { %v2973_v5 = vpop.permute.xlu1 %2972  ;;  %v6505_v23 = vpop.permute.xlu0 %2125 }
 0x24c   : > { %7184 = vst [vmem:[#allocation7_spill] sm:$0xff] %v6505_v23  ;;  %v2957_v46 = vsel %vm2924_vm5, %v7185_v57, %v7107_v1  ;;  %v3519_v57 = vrot.slane %v3517_v48, 3  ;;  %v2688_v1 = vrot.slane %v2686_v19, 1  ;;  %v3535_v23 = vshll.u32 %v4949_v37, 16  ;;  %v4952_v48 = vld [vmem:[#allocation2 + $0x88] sm:$0xff]  }
 0x24d   : > { %2373 = vrot.lane.b32.xlu1 %v2338_v18, %s4998_s30  ;;  %v2953_v18 = vsel %vm2924_vm5, %v2950_v12, %v7186_v51  ;;  %v3541_v12 = vshrl.u32 %v4950_v33, 16  ;;  %v2695_v10 = vshrl.u32 %v4952_v48, 16 }
 0x24e   : > { %2992 = vrot.lane.b32.xlu0 %v2957_v46, %s4999_s7  ;;  %v3532_v46 = vshrl.u32 %v4949_v37, 16  ;;  %v3520_v60 = vor.u32 %v3519_v57, %v3516_v22  ;;  %v3537_v33 = vrot.slane %v3535_v23, 3  ;;  %v3170_v23 = vrot.slane %v6549_v9, 2 }
 0x24f   : > { %v1877_v62 = vpop.permute.xlu1 %1876  ;;  %v6522_v52 = vpop.permute.xlu0 %2127  ;;  %v2697_v57 = vrot.slane %v2695_v10, 1 }
 0x250   : > { %1926 = vst.msk [vmem:[#allocation3 + $0x28] sm:$0xff] %vm1920_vm9, %v1877_v62  ;;  %v3534_v19 = vrot.slane %v3532_v46, 2 }
 0x251   : > { %2167 = vst.msk [vmem:[#allocation3 + $0x28] sm:$0xff] %vm2161_vm10, %v6180_v44  ;;  %2988 = vrot.lane.b32.xlu1 %v2953_v18, %s4999_s7 }
 0x252   : > { %2407 = vst.msk [vmem:[#allocation3 + $0x28] sm:$0xff] %vm2401_vm11, %v2358_v8  ;;  %2139 = vrot.lane.b32.xlu0 %v2104_v27, %s4996_s28  ;;  %v2692_v8 = vor.u32 %v2691_v15, %v2688_v1  ;;  %v3526_v15 = vshll.u32 %v4951_v32, 16  ;;  %v4953_v1 = vld [vmem:[#allocation2 + $0x28] sm:$0xff]   ;;  %v3538_v18 = vor.u32 %v3537_v33, %v3534_v19 }
 0x253   : > { %2781 = vst.msk [vmem:[#allocation3 + $0x28] sm:$0xff] %vm2775_vm12, %v6234_v49  ;;  %v3585_v44 = vpop.permute.xlu1 %3584  ;;  %v6541_v37 = vpop.permute.xlu0 %2737  ;;  %v3543_v49 = vrot.slane %v3541_v12, 2  ;;  %v3433_v20 = vshrl.u32 %v4953_v1, 16  ;;  %v7196_v9 = vld [vmem:[#allocation7_spill] sm:$0xff] }
 0x254   : > { %3022 = vst.msk [vmem:[#allocation3 + $0x28] sm:$0xff] %vm3016_vm13, %v2973_v5  ;;  %v2698_v5 = vshll.u32 %v4952_v48, 16  ;;  %v3528_v27 = vrot.slane %v3526_v15, 3 }
 0x255   : > { %3635 = vst.msk [vmem:[#allocation3 + $0x20] sm:$0xff] %vm3630_vm15, %v3585_v44  ;;  %1892 = vrot.lane.b32.xlu1 %v1833_v36, %s4997_s29  ;;  %v6568_v22 = vor.u32 %v3546_v30, %v3543_v49  ;;  %v3435_v19 = vrot.slane %v3433_v20, 2  ;;  %v1850_v30 = vshrl.u32 %v6490_v40, 16  ;;  %v6635_v20 = vld [vmem:[#allocation2 + $0x90] sm:$0xff]  }
 0x256   : > { %3262 = vst.msk [vmem:[#allocation3 + $0x28] sm:$0xff] %vm3256_vm14, %v6252_v55  ;;  %1896 = vrot.lane.b32.xlu0 %v1849_v17, %s4997_s29  ;;  %v3521_v55 = vsel %vm3405_vm8, %v6431_v58, %v3520_v60  ;;  %v2700_v46 = vrot.slane %v2698_v5, 2  ;;  %v3525_v58 = vrot.slane %v3523_v43, 2  ;;  %v1854_v17 = vshll.u32 %v6570_v54, 16 }
 0x257   : > { %3876 = vst.msk [vmem:[#allocation3 + $0x20] sm:$0xff] %vm3871_vm0, %v6164_v63  ;;  %v1879_v62 = vpop.permute.xlu1 %1878  ;;  %v6557_v51 = vpop.permute.xlu0 %2739  ;;  %v2693_v63 = vsel %vm2550_vm7, %v6309_v34, %v2692_v8  ;;  %v3436_v34 = vshll.u32 %v4953_v1, 16  ;;  %v3548_v44 = vsel %vm3405_vm8, %v3538_v18, %v6568_v22  ;;  %v1852_v43 = vor.u32 %v1850_v30, %v6527_v59  ;;  %v4955_v1 = vld [vmem:[#allocation2 + $0x90] ss:$0 sps:$4 sm:$0x11]  }
 0x258   : > { %1927 = vst.msk [vmem:[#allocation3 + $0x30] sm:$0xff] %vm1920_vm9, %v1879_v62  ;;  %v6587_v36 = vor.u32 %v2700_v46, %v2697_v57  ;;  %v6603_v15 = vrot.slane %v1854_v17, 1  ;;  %v3811_v17 = vrot.slane %v6635_v20, 3  ;;  %v1858_v20 = vshrl.u32 %v6570_v54, 16 }
 0x259   : > { %2168 = vst.msk [vmem:[#allocation3 + $0x30] sm:$0xff] %vm2161_vm10, %v6201_v38  ;;  %3598 = vrot.lane.b32.xlu1 %v3521_v55, %s5003_s11  ;;  %v7188_v38 = vrot.slane %v5796_v11, 2  ;;  %v3529_v11 = vor.u32 %v3528_v27, %v3525_v58  ;;  %v3438_v33 = vrot.slane %v3436_v34, 3  ;;  %v7195_v54 = vrot.slane %v5641_v14, 2 }
 0x25a   : > { %2749 = vrot.lane.b32.xlu0 %v2693_v63, %s5002_s10  ;;  %v2702_v5 = vsel %vm2550_vm7, %v2692_v8, %v6587_v36  ;;  %v1857_v59 = vsel %vm1717_vm4, %v1852_v43, %v6603_v15  ;;  %v6619_v8 = vld [vmem:[#allocation2 + $0x90] sm:$0xff]   ;;  %v6622_v63 = vld [vmem:[#allocation2 + $0x28] sm:$0xff]  }
 0x25b   : > { %v2360_v12 = vpop.permute.xlu1 %2359  ;;  %v6573_v6 = vpop.permute.xlu0 %3220  ;;  %v3171_v48 = vsel %vm2924_vm5, %v7188_v38, %v3170_v23  ;;  %v3530_v10 = vsel %vm3405_vm8, %v3520_v60, %v3529_v11  ;;  %v6606_v40 = vor.u32 %v3438_v33, %v3435_v19  ;;  %v2105_v60 = vrot.slane %v4955_v1, 1 }
 0x25c   : > { %2408 = vst.msk [vmem:[#allocation3 + $0x30] sm:$0xff] %vm2401_vm11, %v2360_v12  ;;  %v3196_v27 = vrot.slane %v6619_v8, 2  ;;  %v3785_v34 = vrot.slane %v6622_v63, 3  ;;  %v6711_v8 = vld [vmem:[#allocation2 + $0x98] sm:$0xff]   ;;  %v947_v63 = vld [vmem:[%s7068_s1 + $0x148] sm:$0xff] }
 0x25d   : > { %2782 = vst.msk [vmem:[#allocation3 + $0x30] sm:$0xff] %vm2775_vm12, %v6413_v4  ;;  %3206 = vrot.lane.b32.xlu1 %v3171_v48, %s5000_s8  ;;  %v3449_v14 = vsel %vm3405_vm8, %v6606_v40, %v6040_v45 }
 0x25e   : > { %v3894_v32 = vld [vmem:[#allocation3 + $0x20] sm:$0xff]  ;;  %3604 = vrot.lane.b32.xlu0 %v3548_v44, %s5003_s11 }
 0x25f   : > { %4627 = vmatmul.mubr.msk.bf16.vlgmr.msra.gmra.mrb[0].mxu1 %vm3950_vm2, %v3894_v32  ;;  %v2975_v49 = vpop.permute.xlu1 %2974  ;;  %v6592_v4 = vpop.permute.xlu0 %3835  ;;  %v7191_v32 = vrot.slane %v6408_v24, 2  ;;  %v7192_v24 = vrot.slane %v6428_v56, 3  ;;  %v7193_v56 = vrot.slane %v6468_v3, 1 }
 0x260   : > { %4093 = vmatprep.mubr.bf16.mxu1 %v7178_v25  ;;  %3023 = vst.msk [vmem:[#allocation3 + $0x30] sm:$0xff] %vm3016_vm13, %v2975_v49 }
 0x261   : > { %3263 = vst.msk [vmem:[#allocation3 + $0x30] sm:$0xff] %vm3256_vm14, %v6286_v26  ;;  %3600 = vrot.lane.b32.xlu1 %v3530_v10, %s5003_s11  ;;  %v3440_v26 = vsel %vm3405_vm8, %v5955_v61, %v6606_v40  ;;  %v3539_v61 = vsel %vm3405_vm8, %v3529_v11, %v3538_v18  ;;  %v4984_v18 = vld [vmem:[#allocation2 + $0x18] sm:$0xff]   ;;  %v3197_v44 = vsel %vm2924_vm5, %v7191_v32, %v3196_v27  ;;  %v6654_v11 = vld [vmem:[#allocation2 + $0x90] sm:$0xff]  }
 0x262   : > { %2751 = vrot.lane.b32.xlu0 %v2702_v5, %s5002_s10  ;;  %v1746_v48 = vshrl.u32 %v4984_v18, 16  ;;  %v2343_v30 = vrot.slane %v6654_v11, 1  ;;  %v6671_v10 = vld [vmem:[#allocation2 + $0x90] sm:$0xff]   ;;  %v4966_v32 = vld [vmem:[#allocation2 + $0x98] ss:$0 sps:$4 sm:$0x11]  }
 0x263   : > { %v2122_v62 = vpop.permute.xlu1 %2121  ;;  %v6608_v55 = vpop.permute.xlu0 %3222  ;;  %v2958_v5 = vrot.slane %v6671_v10, 2  ;;  %v7197_v11 = vld [vmem:[#allocation38_spill] sm:$0xff] }
 0x264   : > { %2169 = vst.msk [vmem:[#allocation3 + $0x38] sm:$0xff] %vm2161_vm10, %v2122_v62  ;;  %v6693_v62 = vld [vmem:[#allocation2 + $0x98] sm:$0xff]  }
 0x265   : > { %2409 = vst.msk [vmem:[#allocation3 + $0x38] sm:$0xff] %vm2401_vm11, %v6331_v13  ;;  %3580 = vrot.lane.b32.xlu1 %v3440_v26, %s5003_s11  ;;  %v7189_v13 = vrot.slane %v6502_v31, 1  ;;  %v4964_v26 = vld [vmem:[#allocation2 + $0x90] ss:$0 sps:$4 sm:$0x11]  }
 0x266   : > { %1898 = vrot.lane.b32.xlu0 %v1857_v59, %s4997_s29 }
 0x267   : > { %v3587_v57 = vpop.permute.xlu1 %3586  ;;  %v6624_v46 = vpop.permute.xlu0 %3837  ;;  %v2106_v58 = vsel %vm2069_vm3, %v7189_v13, %v2105_v60 }
 0x268   : > { %3636 = vst.msk [vmem:[#allocation3 + $0x28] sm:$0xff] %vm3630_vm15, %v3587_v57  ;;  %v4967_v57 = vld [vmem:[#allocation2 + $0x90] sm:$0xff]  }
 0x269   : > { %3877 = vst.msk [vmem:[#allocation3 + $0x28] sm:$0xff] %vm3871_vm0, %v6270_v41  ;;  %3602 = vrot.lane.b32.xlu1 %v3539_v61, %s5003_s11  ;;  %v7190_v41 = vrot.slane %v5815_v29, 3  ;;  %v1748_v29 = vor.u32 %v1746_v48, %v5818_v7  ;;  %v3812_v7 = vsel %vm3779_vm6, %v7192_v24, %v3811_v17  ;;  %v2345_v24 = vrot.slane %v4966_v32, 1 }
 0x26a   : > { %2141 = vrot.lane.b32.xlu0 %v2106_v58, %s4996_s28  ;;  %v3813_v58 = vrot.slane %v6711_v8, 3 }
 0x26b   : > { %v3589_v12 = vpop.permute.xlu1 %3588  ;;  %v6639_v38 = vpop.permute.xlu0 %2129  ;;  %v3786_v31 = vsel %vm3779_vm6, %v7190_v41, %v3785_v34  ;;  %v4968_v41 = vld [vmem:[#allocation2 + $0x90] sm:$0xff]  }
 0x26c   : > { %3637 = vst.msk [vmem:[#allocation3 + $0x30] sm:$0xff] %vm3630_vm15, %v3589_v12 }
 0x26d   : > { %3878 = vst.msk [vmem:[#allocation3 + $0x30] sm:$0xff] %vm3871_vm0, %v6307_v16  ;;  %3821 = vrot.lane.b32.xlu1 %v3786_v31, %s5001_s9  ;;  %v1753_v16 = vsel %vm1717_vm4, %v1748_v29, %v5903_v2  ;;  %v1860_v31 = vor.u32 %v1858_v20, %v6603_v15  ;;  %v7200_v20 = vld [vmem:[#allocation10_spill] sm:$0xff] }
 0x26e   : > { %3232 = vrot.lane.b32.xlu0 %v3197_v44, %s5000_s8 }
 0x26f   : > { %v2736_v19 = vpop.permute.xlu1 %2735  ;;  %v6658_v33 = vpop.permute.xlu0 %2131 }
 0x270   : > { %2783 = vst.msk [vmem:[#allocation3 + $0x38] sm:$0xff] %vm2775_vm12, %v2736_v19  ;;  %v3895_v49 = vld [vmem:[#allocation3 + $0x28] sm:$0xff]  ;;  %v2704_v19 = vshrl.u32 %v4968_v41, 16 }
 0x271   : > { %3024 = vst.msk [vmem:[#allocation3 + $0x38] sm:$0xff] %vm3016_vm13, %v6352_v39  ;;  %1872 = vrot.lane.b32.xlu1 %v1753_v16, %s4997_s29  ;;  %4628 = vmatmul.mubr.msk.bf16.gmra.mrb[4].mxu1 %vm3950_vm2, %v3895_v49  ;;  %v2707_v16 = vshll.u32 %v4968_v41, 16 }
 0x272   : > { %3264 = vst.msk [vmem:[#allocation3 + $0x38] sm:$0xff] %vm3256_vm14, %v6435_v28  ;;  %3847 = vrot.lane.b32.xlu0 %v3812_v7, %s5001_s9  ;;  %4103 = vmatprep.mubr.bf16.mxu1 %v7178_v25  ;;  %v2344_v28 = vsel %vm2069_vm3, %v7193_v56, %v2343_v30  ;;  %v4970_v7 = vld [vmem:[#allocation2 + $0x98] sm:$0xff]   ;;  %v2706_v56 = vrot.slane %v2704_v19, 1 }
 0x273   : > { %v1883_v2 = vpop.permute.xlu1 %1882  ;;  %v6677_v39 = vpop.permute.xlu0 %2741 }
 0x274   : > { %1929 = vst.msk [vmem:[#allocation3 + $0x40] sm:$0xff] %vm1920_vm9, %v1883_v2 }
 0x275   : > { %2170 = vst.msk [vmem:[#allocation3 + $0x40] sm:$0xff] %vm2161_vm10, %v6374_v50  ;;  %2113 = vrot.lane.b32.xlu1 %v5933_v0, %s4996_s28  ;;  %v3896_v50 = vld [vmem:[#allocation3 + $0x30] sm:$0xff]  ;;  %v7194_v0 = vrot.slane %v6485_v53, 2 }
 0x276   : > { %2379 = vrot.lane.b32.xlu0 %v2344_v28, %s4998_s30  ;;  %v2709_v28 = vrot.slane %v2707_v16, 2  ;;  %v4974_v16 = vld [vmem:[#allocation2 + $0xa0] ss:$0 sps:$4 sm:$0x33]  }
 0x277   : > { %v2364_v43 = vpop.permute.xlu1 %2363  ;;  %v6691_v1 = vpop.permute.xlu0 %2743  ;;  %v2959_v3 = vsel %vm2924_vm5, %v7194_v0, %v2958_v5 }
 0x278   : > { %2410 = vst.msk [vmem:[#allocation3 + $0x40] sm:$0xff] %vm2401_vm11, %v2364_v43  ;;  %v3559_v43 = vshrl.u32 %v4970_v7, 16 }
 0x279   : > { %2784 = vst.msk [vmem:[#allocation3 + $0x40] sm:$0xff] %vm2775_vm12, %v6541_v37  ;;  %2353 = vrot.lane.b32.xlu1 %v5936_v47, %s4998_s30  ;;  %4629 = vmatmul.mubr.msk.bf16.gmra.mrb[8].mxu1 %vm3950_vm2, %v3896_v50  ;;  %v3198_v37 = vrot.slane %v6693_v62, 2  ;;  %v1862_v47 = vshll.u32 %v4964_v26, 16  ;;  %v3562_v50 = vshll.u32 %v4970_v7, 16 }
 0x27a   : > { %2994 = vrot.lane.b32.xlu0 %v2959_v3, %s4999_s7  ;;  %4113 = vmatprep.mubr.bf16.mxu1 %v7178_v25  ;;  %v4971_v26 = vld [vmem:[#allocation2 + $0x98] ss:$0 sps:$4 sm:$0x33]  }
 0x27b   : > { %v2979_v59 = vpop.permute.xlu1 %2978  ;;  %v6708_v60 = vpop.permute.xlu0 %3224  ;;  %v3199_v53 = vsel %vm2924_vm5, %v3196_v27, %v3198_v37  ;;  %v1864_v12 = vrot.slane %v1862_v47, 1  ;;  %v3553_v27 = vshll.u32 %v4967_v57, 16 }
 0x27c   : > { %3025 = vst.msk [vmem:[#allocation3 + $0x40] sm:$0xff] %vm3016_vm13, %v2979_v59  ;;  %v2710_v59 = vor.u32 %v2709_v28, %v2706_v56 }
 0x27d   : > { %3265 = vst.msk [vmem:[#allocation3 + $0x40] sm:$0xff] %vm3256_vm14, %v6472_v21  ;;  %2727 = vrot.lane.b32.xlu1 %v5941_v35, %s5002_s10  ;;  %v3814_v35 = vsel %vm3779_vm6, %v3811_v17, %v3813_v58  ;;  %v3550_v21 = vshrl.u32 %v4967_v57, 16  ;;  %v1865_v44 = vsel %vm1717_vm4, %v1860_v31, %v1864_v12  ;;  %v3555_v29 = vrot.slane %v3553_v27, 3  ;;  %v6788_v12 = vld [vmem:[%s7070_s3] ss:$0 sm:$0xff] }
 0x27e   : > { %3234 = vrot.lane.b32.xlu0 %v3199_v53, %s5000_s8  ;;  %v3561_v53 = vrot.slane %v3559_v43, 2  ;;  %v3564_v57 = vrot.slane %v3562_v50, 3 }
 0x27f   : > { %v2366_v61 = vpop.permute.xlu1 %2365  ;;  %v6722_v13 = vpop.permute.xlu0 %3839  ;;  %v3552_v17 = vrot.slane %v3550_v21, 2 }
 0x280   : > { %v3565_v41 = vor.u32 %v3564_v57, %v3561_v53 }
 0x281   : > { %2968 = vrot.lane.b32.xlu1 %v5946_v42, %s4999_s7  ;;  %v3173_v42 = vsel %vm2924_vm5, %v3170_v23, %v7195_v54  ;;  %v2346_v23 = vsel %vm2069_vm3, %v2343_v30, %v2345_v24  ;;  %v3556_v2 = vor.u32 %v3555_v29, %v3552_v17  ;;  %v7198_v30 = vrot.slane %v7197_v11, 3  ;;  %v4973_v29 = vld [vmem:[#allocation2 + $0x98] ss:$0 sps:$4 sm:$0x33]  }
 0x282   : > { %3849 = vrot.lane.b32.xlu0 %v3814_v35, %s5001_s9  ;;  %v7201_v35 = vld [vmem:[#allocation30_spill] sm:$0xff] }
 0x283   : > { %v2981_v18 = vpop.permute.xlu1 %2980  ;;  %v6733_v48 = vpop.permute.xlu0 %3226  ;;  %v3788_v0 = vsel %vm3779_vm6, %v3785_v34, %v7198_v30  ;;  %v3557_v3 = vsel %vm3405_vm8, %v6568_v22, %v3556_v2  ;;  %v2711_v22 = vsel %vm2550_vm7, %v6587_v36, %v2710_v59  ;;  %v681_v21 = vadd.f32 %v6788_v12, %v7201_v35 }
 0x284   : > { %v3566_v36 = vsel %vm3405_vm8, %v3556_v2, %v3565_v41  ;;  %v3200_v2 = vrot.slane %v4974_v16, 2 }
 0x285   : > { %3208 = vrot.lane.b32.xlu1 %v3173_v42, %s5000_s8  ;;  %v4975_v42 = vld [vmem:[#allocation2 + $0xa0] ss:$0 sps:$4 sm:$0x77]  }
 0x286   : > { %1900 = vrot.lane.b32.xlu0 %v1865_v44, %s4997_s29  ;;  %v3571_v24 = vshll.u32 %v4975_v42, 16 }
 0x287   : > { %v1885_v15 = vpop.permute.xlu1 %1884  ;;  %v6743_v49 = vpop.permute.xlu0 %3841 }
 0x288   : > { %1930 = vst.msk [vmem:[#allocation3 + $0x48] sm:$0xff] %vm1920_vm9, %v1885_v15  ;;  %v3568_v15 = vshrl.u32 %v4975_v42, 16  ;;  %v3573_v28 = vrot.slane %v3571_v24, 3 }
 0x289   : > { %2171 = vst.msk [vmem:[#allocation3 + $0x48] sm:$0xff] %vm2161_vm10, %v7196_v9  ;;  %3582 = vrot.lane.b32.xlu1 %v3449_v14, %s5003_s11  ;;  %v2960_v14 = vrot.slane %v4973_v29, 2 }
 0x28a   : > { %2411 = vst.msk [vmem:[#allocation3 + $0x48] sm:$0xff] %vm2401_vm11, %v2366_v61  ;;  %2381 = vrot.lane.b32.xlu0 %v2346_v23, %s4998_s30  ;;  %v2716_v61 = vshll.u32 %v4971_v26, 16  ;;  %v3570_v56 = vrot.slane %v3568_v15, 2 }
 0x28b   : > { %2785 = vst.msk [vmem:[#allocation3 + $0x48] sm:$0xff] %vm2775_vm12, %v6557_v51  ;;  %v3591_v45 = vpop.permute.xlu1 %3590  ;;  %v6759_v40 = vpop.permute.xlu0 %2133  ;;  %v7199_v51 = vld [vmem:[#allocation5_spill] sm:$0xff] }
 0x28c   : > { %3026 = vst.msk [vmem:[#allocation3 + $0x48] sm:$0xff] %vm3016_vm13, %v2981_v18  ;;  %v2718_v18 = vrot.slane %v2716_v61, 2  ;;  %v3574_v10 = vor.u32 %v3573_v28, %v3570_v56 }
 0x28d   : > { %3638 = vst.msk [vmem:[#allocation3 + $0x38] sm:$0xff] %vm3630_vm15, %v3591_v45  ;;  %3823 = vrot.lane.b32.xlu1 %v3788_v0, %s5001_s9 }
 0x28e   : > { %3266 = vst.msk [vmem:[#allocation3 + $0x48] sm:$0xff] %vm3256_vm14, %v6573_v6  ;;  %3606 = vrot.lane.b32.xlu0 %v3557_v3, %s5003_s11  ;;  %v2713_v6 = vshrl.u32 %v4971_v26, 16  ;;  %v3575_v11 = vsel %vm3405_vm8, %v3565_v41, %v3574_v10  ;;  %v948_v3 = vld [vmem:[%s7068_s1 + $0x150] sm:$0x3f] }
 0x28f   : > { %3879 = vst.msk [vmem:[#allocation3 + $0x38] sm:$0xff] %vm3871_vm0, %v7199_v51  ;;  %v3593_v47 = vpop.permute.xlu1 %3592  ;;  %v2136_v34 = vpop.permute.xlu0 %2135 }
 0x290   : > { %3639 = vst.msk [vmem:[#allocation3 + $0x40] sm:$0xff] %vm3630_vm15, %v3593_v47  ;;  %v2715_v31 = vrot.slane %v2713_v6, 1 }
 0x291   : > { %3880 = vst.msk [vmem:[#allocation3 + $0x40] sm:$0xff] %vm3871_vm0, %v7200_v20  ;;  %1156 = vperm.xlu1 %4783, %v947_v63  }
 0x292   : > { %2753 = vrot.lane.b32.xlu0 %v2711_v22, %s5002_s10  ;;  %v2719_v17 = vor.u32 %v2718_v18, %v2715_v31 }
 0x293   : > { %v1887_v27 = vpop.permute.xlu1 %1886 }
 0x294   : > { %1931 = vst.msk [vmem:[#allocation3 + $0x50] sm:$0xff] %vm1920_vm9, %v1887_v27  ;;  %v6793_v32 = vpop.permute.xlu0 %2745 }
 0x295   : > { %2172 = vst.msk [vmem:[#allocation3 + $0x50] sm:$0xff] %vm2161_vm10, %v6522_v52  ;;  %816 = vrot.lane.b32.xlu1 %v681_v21, %s4995_s12  ;;  %v2720_v52 = vsel %vm2550_vm7, %v2710_v59, %v2719_v17 }
 0x296   : > { %v3897_v54 = vld [vmem:[#allocation3 + $0x38] sm:$0xff]  ;;  %3608 = vrot.lane.b32.xlu0 %v3566_v36, %s5003_s11 }
 0x297   : > { %4630 = vmatmul.mubr.msk.bf16.gmra.mrb[12].mxu1 %vm3950_vm2, %v3897_v54  ;;  %v2368_v44 = vpop.permute.xlu1 %2367 }
 0x298   : > { %4123 = vmatprep.mubr.bf16.mxu1 %v7178_v25  ;;  %2412 = vst.msk [vmem:[#allocation3 + $0x50] sm:$0xff] %vm2401_vm11, %v2368_v44  ;;  %v6803_v19 = vpop.permute.xlu0 %2747  ;;  %v3898_v23 = vld [vmem:[#allocation3 + $0x40] sm:$0xff] }
 0x299   : > { %2786 = vst.msk [vmem:[#allocation3 + $0x50] sm:$0xff] %vm2775_vm12, %v6677_v39  ;;  %v2961_v39 = vsel %vm2924_vm5, %v2958_v5, %v2960_v14  ;;  %v4977_v5 = vld [vmem:[#allocation2 + $0xa0] ss:$0 sps:$4 sm:$0x77]  }
 0x29a   : > { %2755 = vrot.lane.b32.xlu0 %v2720_v52, %s5002_s10  ;;  %v3815_v30 = vrot.slane %v4977_v5, 3 }
 0x29b   : > { %v2983_v7 = vpop.permute.xlu1 %2982 }
 0x29c   : > { %3027 = vst.msk [vmem:[#allocation3 + $0x50] sm:$0xff] %vm3016_vm13, %v2983_v7  ;;  %v1895_v9 = vpop.permute.xlu0 %1894  ;;  %v3816_v62 = vsel %vm3779_vm6, %v3813_v58, %v3815_v30  ;;  %v7202_v58 = vld [vmem:[#allocation28_spill] sm:$0xff] }
 0x29d   : > { %3267 = vst.msk [vmem:[#allocation3 + $0x50] sm:$0xff] %vm3256_vm14, %v6608_v55  ;;  %v3201_v55 = vsel %vm2924_vm5, %v3198_v37, %v3200_v2 }
 0x29e   : > { %1935 = vst.msk [vmem:[#allocation3 + $0x70] sm:$0xff] %vm1920_vm9, %v1895_v9  ;;  %2996 = vrot.lane.b32.xlu0 %v2961_v39, %s4999_s7  ;;  %v3913_v39 = vld [vmem:[%s7072_s5] sm:$0x3] }
 0x29f   : > { %4631 = vmatmul.mubr.msk.bf16.gmra.mrb[16].mxu1 %vm3950_vm2, %v3898_v23  ;;  %2176 = vst.msk [vmem:[#allocation3 + $0x70] sm:$0xff] %vm2161_vm10, %v2136_v34  ;;  %v2370_v45 = vpop.permute.xlu1 %2369 }
 0x2a0   : > { %4133 = vmatprep.mubr.bf16.mxu1 %v7178_v25  ;;  %v6820_v43 = vpop.permute.xlu0 %3228 }
 0x2a2   : > { %3236 = vrot.lane.b32.xlu0 %v3201_v55, %s5000_s8  ;;  %s4763_s8 = smul.u32 288, %s7204_s22 }
 0x2a3   : > { %v2985_v50 = vpop.permute.xlu1 %2984 }
 0x2a4   : > { %v6826_v26 = vpop.permute.xlu0 %3843 }
 0x2a6   : > { %3610 = vrot.lane.b32.xlu0 %v3575_v11, %s5003_s11  ;;  %s6932_s11 = scalar_lea.vmem %s7073_s6, %s4763_s8 }
 0x2a7   : > { %v1889_v0 = vpop.permute.xlu1 %1888 }
 0x2a8   : > { %1932 = vst.msk [vmem:[#allocation3 + $0x58] sm:$0xff] %vm1920_vm9, %v1889_v0  ;;  %v2376_v51 = vpop.permute.xlu0 %2375 }
 0x2a9   : > { %2173 = vst.msk [vmem:[#allocation3 + $0x58] sm:$0xff] %vm2161_vm10, %v6639_v38 }
 0x2aa   : > { %2416 = vst.msk [vmem:[#allocation3 + $0x70] sm:$0xff] %vm2401_vm11, %v2376_v51  ;;  %2413 = vst.msk [vmem:[#allocation3 + $0x58] sm:$0xff] %vm2401_vm11, %v2370_v45  ;;  %3851 = vrot.lane.b32.xlu0 %v3816_v62, %s5001_s9 }
 0x2ab   : > { %2787 = vst.msk [vmem:[#allocation3 + $0x58] sm:$0xff] %vm2775_vm12, %v6691_v1  ;;  %v3595_v37 = vpop.permute.xlu1 %3594  ;;  %v686_v1 = vadd.f32 %v6788_v12, %v7202_v58 }
 0x2ac   : > { %3028 = vst.msk [vmem:[#allocation3 + $0x58] sm:$0xff] %vm3016_vm13, %v2985_v50  ;;  %v2991_v38 = vpop.permute.xlu0 %2990 }
 0x2ad   : > { %3640 = vst.msk [vmem:[#allocation3 + $0x48] sm:$0xff] %vm3630_vm15, %v3595_v37 }
 0x2ae   : > { %3268 = vst.msk [vmem:[#allocation3 + $0x58] sm:$0xff] %vm3256_vm14, %v6708_v60  ;;  %1161 = vperm.xlu0 %4782, %v948_v3  }
 0x2af   : > { %3881 = vst.msk [vmem:[#allocation3 + $0x48] sm:$0xff] %vm3871_vm0, %v6592_v4  ;;  %v3597_v8 = vpop.permute.xlu1 %3596 }
 0x2b0   : > { %3641 = vst.msk [vmem:[#allocation3 + $0x50] sm:$0xff] %vm3630_vm15, %v3597_v8  ;;  %v3231_v59 = vpop.permute.xlu0 %3230 }
 0x2b1   : > { %3882 = vst.msk [vmem:[#allocation3 + $0x50] sm:$0xff] %vm3871_vm0, %v6624_v46 }
 0x2b2   : > { %818 = vrot.lane.b32.xlu0 %v686_v1, %s4995_s12 }
 0x2b3   : > { %v1891_v63 = vpop.permute.xlu1 %1890 }
 0x2b4   : > { %1933 = vst.msk [vmem:[#allocation3 + $0x60] sm:$0xff] %vm1920_vm9, %v1891_v63  ;;  %v3846_v60 = vpop.permute.xlu0 %3845 }
 0x2b5   : > { %2174 = vst.msk [vmem:[#allocation3 + $0x60] sm:$0xff] %vm2161_vm10, %v6658_v33 }
 0x2b6   : > { %v3899_v47 = vld [vmem:[#allocation3 + $0x48] sm:$0xff] }
 0x2b7   : > { %4632 = vmatmul.mubr.msk.bf16.gmra.mrb[20].mxu1 %vm3950_vm2, %v3899_v47  ;;  %v2372_v4 = vpop.permute.xlu1 %2371 }
 0x2b8   : > { %4143 = vmatprep.mubr.bf16.mxu1 %v7178_v25  ;;  %2414 = vst.msk [vmem:[#allocation3 + $0x60] sm:$0xff] %vm2401_vm11, %v2372_v4  ;;  %v2138_v34 = vpop.permute.xlu0 %2137  ;;  %v3900_v57 = vld [vmem:[#allocation3 + $0x50] sm:$0xff] }
 0x2b9   : > { %2788 = vst.msk [vmem:[#allocation3 + $0x60] sm:$0xff] %vm2775_vm12, %v6793_v32 }
 0x2bb   : > { %v2987_v46 = vpop.permute.xlu1 %2986 }
 0x2bc   : > { %3029 = vst.msk [vmem:[#allocation3 + $0x60] sm:$0xff] %vm3016_vm13, %v2987_v46  ;;  %v2378_v53 = vpop.permute.xlu0 %2377 }
 0x2bd   : > { %3269 = vst.msk [vmem:[#allocation3 + $0x60] sm:$0xff] %vm3256_vm14, %v6733_v48 }
 0x2bf   : > { %4633 = vmatmul.mubr.msk.bf16.gmra.mrb[24].mxu1 %vm3950_vm2, %v3900_v57  ;;  %v2374_v33 = vpop.permute.xlu1 %2373 }
 0x2c0   : > { %4153 = vmatprep.mubr.bf16.mxu1 %v7178_v25  ;;  %v2993_v6 = vpop.permute.xlu0 %2992 }
 0x2c3   : > { %v2989_v61 = vpop.permute.xlu1 %2988 }
 0x2c4   : > { %v2140_v20 = vpop.permute.xlu0 %2139 }
 0x2c7   : > { %v1893_v22 = vpop.permute.xlu1 %1892 }
 0x2c8   : > { %1934 = vst.msk [vmem:[#allocation3 + $0x68] sm:$0xff] %vm1920_vm9, %v1893_v22  ;;  %v1897_v12 = vpop.permute.xlu0 %1896 }
 0x2c9   : > { %2175 = vst.msk [vmem:[#allocation3 + $0x68] sm:$0xff] %vm2161_vm10, %v6759_v40 }
 0x2ca   : > { %1936 = vst.msk [vmem:[#allocation3 + $0x78] sm:$0xff] %vm1920_vm9, %v1897_v12 }
 0x2cb   : > { %2415 = vst.msk [vmem:[#allocation3 + $0x68] sm:$0xff] %vm2401_vm11, %v2374_v33  ;;  %v3599_v48 = vpop.permute.xlu1 %3598 }
 0x2cc   : > { %2177 = vst.msk [vmem:[#allocation3 + $0x78] sm:$0xff] %vm2161_vm10, %v2138_v34  ;;  %v2750_v35 = vpop.permute.xlu0 %2749 }
 0x2cd   : > { %2789 = vst.msk [vmem:[#allocation3 + $0x68] sm:$0xff] %vm2775_vm12, %v6803_v19  ;;  %2790 = vst.msk [vmem:[#allocation3 + $0x70] sm:$0xff] %vm2775_vm12, %v2750_v35  ;;  %v3915_v19 = vlaneseq }
 0x2ce   : > { %2417 = vst.msk [vmem:[#allocation3 + $0x78] sm:$0xff] %vm2401_vm11, %v2378_v53 }
 0x2cf   : > { %3030 = vst.msk [vmem:[#allocation3 + $0x68] sm:$0xff] %vm3016_vm13, %v2989_v61  ;;  %3031 = vst.msk [vmem:[#allocation3 + $0x70] sm:$0xff] %vm3016_vm13, %v2991_v38  ;;  %v3207_v40 = vpop.permute.xlu1 %3206  ;;  %v3916_v24 = vshrl.u32 %v3915_v19, 7 }
 0x2d0   : > { %3642 = vst.msk [vmem:[#allocation3 + $0x58] sm:$0xff] %vm3630_vm15, %v3599_v48  ;;  %v3605_v21 = vpop.permute.xlu0 %3604 }
 0x2d1   : > { %3883 = vst.msk [vmem:[#allocation3 + $0x58] sm:$0xff] %vm3871_vm0, %v6722_v13  ;;  %v3917_v23 = vsub.s32 0, %v3916_v24  ;;  %v3921_v2 = vsub.s32 1, %v3916_v24 }
 0x2d2   : > { %3270 = vst.msk [vmem:[#allocation3 + $0x68] sm:$0xff] %vm3256_vm14, %v6820_v43  ;;  %3271 = vst.msk [vmem:[#allocation3 + $0x70] sm:$0xff] %vm3256_vm14, %v3231_v59 }
 0x2d3   : > { %3259 = vst.msk [vmem:[#allocation3 + $0x10] sm:$0xff] %vm3256_vm14, %v3207_v40  ;;  %v3601_v27 = vpop.permute.xlu1 %3600  ;;  %v6921_v45 = vrot.slane %v3913_v39, %v3917_v23  ;;  %v6923_v43 = vrot.slane %v3913_v39, %v3921_v2 }
 0x2d4   : > { %3645 = vst.msk [vmem:[#allocation3 + $0x70] sm:$0xff] %vm3630_vm15, %v3605_v21  ;;  %3643 = vst.msk [vmem:[#allocation3 + $0x60] sm:$0xff] %vm3630_vm15, %v3601_v27  ;;  %v2752_v13 = vpop.permute.xlu0 %2751 }
 0x2d5   : > { %3886 = vst.msk [vmem:[#allocation3 + $0x70] sm:$0xff] %vm3871_vm0, %v3846_v60  ;;  %3884 = vst.msk [vmem:[#allocation3 + $0x60] sm:$0xff] %vm3871_vm0, %v6743_v49 }
 0x2d6   : > { %2791 = vst.msk [vmem:[#allocation3 + $0x78] sm:$0xff] %vm2775_vm12, %v2752_v13 }
 0x2d7   : > { %3032 = vst.msk [vmem:[#allocation3 + $0x78] sm:$0xff] %vm3016_vm13, %v2993_v6  ;;  %v3581_v31 = vpop.permute.xlu1 %3580 }
 0x2d8   : > { %v3901_v41 = vld [vmem:[#allocation3 + $0x58] sm:$0xff]  ;;  %3633 = vst.msk [vmem:[#allocation3 + $0x10] sm:$0xff] %vm3630_vm15, %v3581_v31  ;;  %v1899_v18 = vpop.permute.xlu0 %1898 }
 0x2d9   : > { %4634 = vmatmul.mubr.msk.bf16.gmra.mrb[28].mxu1 %vm3950_vm2, %v3901_v41  ;;  %1937 = vst.msk [vmem:[#allocation3 + $0x80] sm:$0xff] %vm1920_vm9, %v1899_v18 }
 0x2da   : > { %4163 = vmatprep.mubr.bf16.mxu1 %v7178_v25  ;;  %2178 = vst.msk [vmem:[#allocation3 + $0x80] sm:$0xff] %vm2161_vm10, %v2140_v20 }
 0x2db   : > { %v3603_v32 = vpop.permute.xlu1 %3602 }
 0x2dc   : > { %3644 = vst.msk [vmem:[#allocation3 + $0x68] sm:$0xff] %vm3630_vm15, %v3603_v32  ;;  %v2142_v49 = vpop.permute.xlu0 %2141  ;;  %v3902_v54 = vld [vmem:[#allocation3 + $0x60] sm:$0xff]  ;;  %v3904_v9 = vld [vmem:[#allocation3 + $0x70] sm:$0xff] }
 0x2dd   : > { %3885 = vst.msk [vmem:[#allocation3 + $0x68] sm:$0xff] %vm3871_vm0, %v6826_v26 }
 0x2df   : > { %v3822_v36 = vpop.permute.xlu1 %3821 }
 0x2e0   : > { %3874 = vst.msk [vmem:[#allocation3 + $0x10] sm:$0xff] %vm3871_vm0, %v3822_v36  ;;  %v3233_v42 = vpop.permute.xlu0 %3232 }
 0x2e1   : > { %4635 = vmatmul.mubr.msk.bf16.gmra.mrb[32].mxu1 %vm3950_vm2, %v3902_v54  ;;  %3272 = vst.msk [vmem:[#allocation3 + $0x78] sm:$0xff] %vm3256_vm14, %v3233_v42 }
 0x2e2   : > { %4173 = vmatprep.mubr.bf16.mxu1 %v7178_v25 }
 0x2e3   : > { %v1873_v44 = vpop.permute.xlu1 %1872 }
 0x2e4   : > { %1924 = vst.msk [vmem:[#allocation3 + $0x18] sm:$0xff] %vm1920_vm9, %v1873_v44  ;;  %v3848_v17 = vpop.permute.xlu0 %3847  ;;  %v3903_v29 = vld [vmem:[#allocation3 + $0x68] sm:$0xff] }
 0x2e7   : > { %v2114_v52 = vpop.permute.xlu1 %2113  ;;  %v3892_v16 = vld [vmem:[#allocation3 + $0x10] sm:$0xff] }
 0x2e8   : > { %2165 = vst.msk [vmem:[#allocation3 + $0x18] sm:$0xff] %vm2161_vm10, %v2114_v52  ;;  %v2380_v15 = vpop.permute.xlu0 %2379  ;;  %4625 = vmatmul.mubr.msk.bf16.gmra.mrb[52].mxu0 %vm3950_vm2, %v3892_v16 }
 0x2e9   : > { %4636 = vmatmul.mubr.msk.bf16.gmra.mrb[36].mxu1 %vm3950_vm2, %v3903_v29  ;;  %2418 = vst.msk [vmem:[#allocation3 + $0x80] sm:$0xff] %vm2401_vm11, %v2380_v15  ;;  %4073 = vmatprep.mubr.bf16.mxu0 %v7178_v25 }
 0x2ea   : > { %4183 = vmatprep.mubr.bf16.mxu1 %v7178_v25 }
 0x2eb   : > { %v2354_v7 = vpop.permute.xlu1 %2353 }
 0x2ec   : > { %2405 = vst.msk [vmem:[#allocation3 + $0x18] sm:$0xff] %vm2401_vm11, %v2354_v7  ;;  %v2995_v14 = vpop.permute.xlu0 %2994 }
 0x2ef   : > { %v2728_v56 = vpop.permute.xlu1 %2727 }
 0x2f0   : > { %2779 = vst.msk [vmem:[#allocation3 + $0x18] sm:$0xff] %vm2775_vm12, %v2728_v56  ;;  %v3235_v28 = vpop.permute.xlu0 %3234 }
 0x2f1   : > { %4637 = vmatmul.mubr.msk.bf16.gmra.mrb[40].mxu1 %vm3950_vm2, %v3904_v9 }
 0x2f2   : > { %4193 = vmatprep.mubr.bf16.mxu1 %v7178_v25 }
 0x2f3   : > { %v2969_v55 = vpop.permute.xlu1 %2968 }
 0x2f4   : > { %3020 = vst.msk [vmem:[#allocation3 + $0x18] sm:$0xff] %vm3016_vm13, %v2969_v55  ;;  %v3850_v10 = vpop.permute.xlu0 %3849  ;;  %v4045_v5 = vpop.f32.mrb[44].mxu0 }
 0x2f5   : > { %v4046_v50 = vadd.f32 %v4045_v5, %v6921_v45  ;;  %v4047_v26 = vpop.f32.mrb[45].mxu0 }
 0x2f6   : > { %v4048_v11 = vadd.f32 %v4047_v26, %v6923_v43  ;;  %v4049_v30 = vpop.f32.mrb[46].mxu0 }
 0x2f7   : > { %v4050_v0 = vadd.f32 %v4049_v30, %v6921_v45  ;;  %v4051_v51 = vpop.f32.mrb[47].mxu0  ;;  %v3209_v62 = vpop.permute.xlu1 %3208 }
 0x2f8   : > { %v4224_v37 = vmax.f32 %v4046_v50, %v4048_v11  ;;  %v4052_v3 = vadd.f32 %v4051_v51, %v6923_v43  ;;  %3260 = vst.msk [vmem:[#allocation3 + $0x18] sm:$0xff] %vm3256_vm14, %v3209_v62  ;;  %v1901_v38 = vpop.permute.xlu0 %1900 }
 0x2f9   : > { %1938 = vst.msk [vmem:[#allocation3 + $0x88] sm:$0xff] %vm1920_vm9, %v1901_v38 }
 0x2fa   : > { %4260 = vst [vmem:[%s6932_s11] sm:$0xff] %v4224_v37  ;;  %v4225_v8 = vmax.f32 %v4050_v0, %v4052_v3  ;;  %2179 = vst.msk [vmem:[#allocation3 + $0x88] sm:$0xff] %vm2161_vm10, %v2142_v49 }
 0x2fb   : > { %v3583_v58 = vpop.permute.xlu1 %3582 }
 0x2fc   : > { %4261 = vst [vmem:[%s6932_s11 + $0x8] sm:$0xff] %v4225_v8  ;;  %3634 = vst.msk [vmem:[#allocation3 + $0x18] sm:$0xff] %vm3630_vm15, %v3583_v58  ;;  %v2382_v1 = vpop.permute.xlu0 %2381 }
 0x2fd   : > { %2419 = vst.msk [vmem:[#allocation3 + $0x88] sm:$0xff] %vm2401_vm11, %v2382_v1 }
 0x2ff   : > { %v3824_v59 = vpop.permute.xlu1 %3823 }
 0x300   : > { %3875 = vst.msk [vmem:[#allocation3 + $0x18] sm:$0xff] %vm3871_vm0, %v3824_v59  ;;  %v3607_v63 = vpop.permute.xlu0 %3606 }
 0x301   : > { %3646 = vst.msk [vmem:[#allocation3 + $0x78] sm:$0xff] %vm3630_vm15, %v3607_v63 }
 0x302   : > { %3887 = vst.msk [vmem:[#allocation3 + $0x78] sm:$0xff] %vm3871_vm0, %v3848_v17 }
 0x304   : > { %v2754_v60 = vpop.permute.xlu0 %2753 }
 0x305   : > { %2792 = vst.msk [vmem:[#allocation3 + $0x80] sm:$0xff] %vm2775_vm12, %v2754_v60 }
 0x306   : > { %3033 = vst.msk [vmem:[#allocation3 + $0x80] sm:$0xff] %vm3016_vm13, %v2995_v14 }
 0x307   : > { %3273 = vst.msk [vmem:[#allocation3 + $0x80] sm:$0xff] %vm3256_vm14, %v3235_v28  ;;  %v3893_v47 = vld [vmem:[#allocation3 + $0x18] sm:$0xff] }
 0x308   : > { %v3609_v4 = vpop.permute.xlu0 %3608  ;;  %4626 = vmatmul.mubr.msk.bf16.gmra.mrb[56].mxu0 %vm3950_vm2, %v3893_v47 }
 0x309   : > { %3647 = vst.msk [vmem:[#allocation3 + $0x80] sm:$0xff] %vm3630_vm15, %v3609_v4  ;;  %v3905_v34 = vld [vmem:[#allocation3 + $0x78] sm:$0xff] }
 0x30a   : > { %3888 = vst.msk [vmem:[#allocation3 + $0x80] sm:$0xff] %vm3871_vm0, %v3850_v10  ;;  %4638 = vmatmul.mubr.msk.bf16.gmra.mrb[44].mxu1 %vm3950_vm2, %v3905_v34 }
 0x30b   : > { %4203 = vmatprep.mubr.bf16.mxu1 %v7178_v25 }
 0x30c   : > { %v2756_v46 = vpop.permute.xlu0 %2755 }
 0x30d   : > { %2793 = vst.msk [vmem:[#allocation3 + $0x88] sm:$0xff] %vm2775_vm12, %v2756_v46 }
 0x310   : > { %v2997_v53 = vpop.permute.xlu0 %2996  ;;  %v1157_v57 = vpop.permute.xlu1 %1156 }
 0x311   : > { %3034 = vst.msk [vmem:[#allocation3 + $0x88] sm:$0xff] %vm3016_vm13, %v2997_v53  ;;  %v3906_v33 = vld [vmem:[#allocation3 + $0x80] sm:$0xff] }
 0x312   : > { %4639 = vmatmul.mubr.msk.bf16.gmra.mrb[48].mxu1 %vm3950_vm2, %v3906_v33 }
 0x313   : > { %4213 = vmatprep.mubr.bf16.mxu1 %v7178_v25 }
 0x314   : > { %v3237_v6 = vpop.permute.xlu0 %3236  ;;  %v4055_v61 = vpop.f32.mrb[48].mxu0 }
 0x315   : > { %3274 = vst.msk [vmem:[#allocation3 + $0x88] sm:$0xff] %vm3256_vm14, %v3237_v6  ;;  %v4056_v20 = vadd.f32 %v4055_v61, %v6921_v45  ;;  %v817_v22 = vpop.permute.xlu1 %816  ;;  %v4057_v12 = vpop.f32.mrb[49].mxu0 }
 0x316   : > { %v4058_v48 = vadd.f32 %v4057_v12, %v6923_v43  ;;  %v4059_v35 = vpop.f32.mrb[50].mxu0 }
 0x317   : > { %v4060_v40 = vadd.f32 %v4059_v35, %v6921_v45  ;;  %v4061_v21 = vpop.f32.mrb[51].mxu0 }
 0x318   : > { %v4226_v27 = vmax.f32 %v4056_v20, %v4058_v48  ;;  %v4062_v13 = vadd.f32 %v4061_v21, %v6923_v43  ;;  %v3611_v41 = vpop.permute.xlu0 %3610 }
 0x319   : > { %3648 = vst.msk [vmem:[#allocation3 + $0x88] sm:$0xff] %vm3630_vm15, %v3611_v41 }
 0x31a   : > { %4262 = vst [vmem:[%s6932_s11 + $0x10] sm:$0xff] %v4226_v27  ;;  %v4227_v25 = vmax.f32 %v4060_v40, %v4062_v13 }
 0x31c   : > { %4263 = vst [vmem:[%s6932_s11 + $0x18] sm:$0xff] %v4227_v25  ;;  %v3852_v31 = vpop.permute.xlu0 %3851 }
 0x31d   : > { %3889 = vst.msk [vmem:[#allocation3 + $0x88] sm:$0xff] %vm3871_vm0, %v3852_v31 }
 0x324   : > { %v3907_v18 = vld [vmem:[#allocation3 + $0x88] sm:$0xff] }
 0x325   : > { %4640 = vmatmul.mubr.msk.bf16.gmra.mrb[52].mxu1 %vm3950_vm2, %v3907_v18 }
 0x32d   : > { %v1162_v32 = vpop.permute.xlu0 %1161 }
 0x331   : > { %v819_v36 = vpop.permute.xlu0 %818 }
 0x332   : > { %v4085_v49 = vpop.f32.mrb[0].mxu1 }
 0x333   : > { %v4086_v54 = vadd.f32 %v4085_v49, %v6921_v45  ;;  %v4087_v42 = vpop.f32.mrb[1].mxu1 }
 0x334   : > { %v4088_v44 = vadd.f32 %v4087_v42, %v6923_v43  ;;  %v4089_v17 = vpop.f32.mrb[2].mxu1 }
 0x335   : > { %v4090_v29 = vadd.f32 %v4089_v17, %v6921_v45  ;;  %v4091_v19 = vpop.f32.mrb[3].mxu1 }
 0x336   : > { %v4232_v52 = vmax.f32 %v4086_v54, %v4088_v44  ;;  %v4092_v16 = vadd.f32 %v4091_v19, %v6923_v43 }
 0x338   : > { %4268 = vst [vmem:[%s6932_s11 + $0x40] sm:$0xff] %v4232_v52  ;;  %v4233_v15 = vmax.f32 %v4090_v29, %v4092_v16 }
 0x33a   : > { %4269 = vst [vmem:[%s6932_s11 + $0x48] sm:$0xff] %v4233_v15 }
 0x344   : > { %v4095_v24 = vpop.f32.mrb[4].mxu1 }
 0x345   : > { %v4096_v7 = vadd.f32 %v4095_v24, %v6921_v45  ;;  %v4097_v14 = vpop.f32.mrb[5].mxu1 }
 0x346   : > { %v4098_v9 = vadd.f32 %v4097_v14, %v6923_v43  ;;  %v4099_v23 = vpop.f32.mrb[6].mxu1 }
 0x347   : > { %v4100_v39 = vadd.f32 %v4099_v23, %v6921_v45  ;;  %v4101_v2 = vpop.f32.mrb[7].mxu1 }
 0x348   : > { %v4234_v56 = vmax.f32 %v4096_v7, %v4098_v9  ;;  %v4102_v28 = vadd.f32 %v4101_v2, %v6923_v43 }
 0x34a   : > { %4270 = vst [vmem:[%s6932_s11 + $0x50] sm:$0xff] %v4234_v56  ;;  %v4235_v55 = vmax.f32 %v4100_v39, %v4102_v28 }
 0x34c   : > { %4271 = vst [vmem:[%s6932_s11 + $0x58] sm:$0xff] %v4235_v55  ;;  %v4105_v10 = vpop.f32.mrb[8].mxu1 }
 0x34d   : > { %v4106_v5 = vadd.f32 %v4105_v10, %v6921_v45  ;;  %v4107_v50 = vpop.f32.mrb[9].mxu1 }
 0x34e   : > { %v4108_v26 = vadd.f32 %v4107_v50, %v6923_v43  ;;  %v4109_v11 = vpop.f32.mrb[10].mxu1 }
 0x34f   : > { %v4110_v30 = vadd.f32 %v4109_v11, %v6921_v45  ;;  %v4111_v0 = vpop.f32.mrb[11].mxu1 }
 0x350   : > { %v4236_v51 = vmax.f32 %v4106_v5, %v4108_v26  ;;  %v4112_v62 = vadd.f32 %v4111_v0, %v6923_v43 }
 0x352   : > { %4272 = vst [vmem:[%s6932_s11 + $0x60] sm:$0xff] %v4236_v51  ;;  %v4237_v37 = vmax.f32 %v4110_v30, %v4112_v62 }
 0x354   : > { %4273 = vst [vmem:[%s6932_s11 + $0x68] sm:$0xff] %v4237_v37 }
 0x36a   : > { %v4115_v3 = vpop.f32.mrb[12].mxu1 }
 0x36b   : > { %v4116_v38 = vadd.f32 %v4115_v3, %v6921_v45  ;;  %v4117_v8 = vpop.f32.mrb[13].mxu1 }
 0x36c   : > { %v4118_v58 = vadd.f32 %v4117_v8, %v6923_v43  ;;  %v4119_v1 = vpop.f32.mrb[14].mxu1 }
 0x36d   : > { %v4120_v59 = vadd.f32 %v4119_v1, %v6921_v45  ;;  %v4121_v63 = vpop.f32.mrb[15].mxu1 }
 0x36e   : > { %v4238_v60 = vmax.f32 %v4116_v38, %v4118_v58  ;;  %v4122_v47 = vadd.f32 %v4121_v63, %v6923_v43 }
 0x370   : > { %4274 = vst [vmem:[%s6932_s11 + $0x70] sm:$0xff] %v4238_v60  ;;  %v4239_v4 = vmax.f32 %v4120_v59, %v4122_v47 }
 0x372   : > { %4275 = vst [vmem:[%s6932_s11 + $0x78] sm:$0xff] %v4239_v4  ;;  %v4125_v34 = vpop.f32.mrb[16].mxu1 }
 0x373   : > { %v4126_v46 = vadd.f32 %v4125_v34, %v6921_v45  ;;  %v4127_v53 = vpop.f32.mrb[17].mxu1 }
 0x374   : > { %v4128_v57 = vadd.f32 %v4127_v53, %v6923_v43  ;;  %v4129_v33 = vpop.f32.mrb[18].mxu1 }
 0x375   : > { %v4130_v6 = vadd.f32 %v4129_v33, %v6921_v45  ;;  %v4131_v61 = vpop.f32.mrb[19].mxu1 }
 0x376   : > { %v4240_v20 = vmax.f32 %v4126_v46, %v4128_v57  ;;  %v4132_v22 = vadd.f32 %v4131_v61, %v6923_v43 }
 0x378   : > { %4276 = vst [vmem:[%s6932_s11 + $0x80] sm:$0xff] %v4240_v20  ;;  %v4241_v12 = vmax.f32 %v4130_v6, %v4132_v22 }
 0x37a   : > { %4277 = vst [vmem:[%s6932_s11 + $0x88] sm:$0xff] %v4241_v12 }
 0x38a   : > { %v4135_v48 = vpop.f32.mrb[20].mxu1 }
 0x38b   : > { %v4136_v35 = vadd.f32 %v4135_v48, %v6921_v45  ;;  %v4137_v40 = vpop.f32.mrb[21].mxu1 }
 0x38c   : > { %v4138_v21 = vadd.f32 %v4137_v40, %v6923_v43  ;;  %v4139_v27 = vpop.f32.mrb[22].mxu1 }
 0x38d   : > { %v4140_v13 = vadd.f32 %v4139_v27, %v6921_v45  ;;  %v4141_v41 = vpop.f32.mrb[23].mxu1 }
 0x38e   : > { %v4242_v25 = vmax.f32 %v4136_v35, %v4138_v21  ;;  %v4142_v31 = vadd.f32 %v4141_v41, %v6923_v43 }
 0x390   : > { %4278 = vst [vmem:[%s6932_s11 + $0x90] sm:$0xff] %v4242_v25  ;;  %v4243_v18 = vmax.f32 %v4140_v13, %v4142_v31 }
 0x392   : > { %4279 = vst [vmem:[%s6932_s11 + $0x98] sm:$0xff] %v4243_v18  ;;  %v4145_v32 = vpop.f32.mrb[24].mxu1 }
 0x393   : > { %v4146_v49 = vadd.f32 %v4145_v32, %v6921_v45  ;;  %v4147_v54 = vpop.f32.mrb[25].mxu1 }
 0x394   : > { %v4148_v36 = vadd.f32 %v4147_v54, %v6923_v43  ;;  %v4149_v42 = vpop.f32.mrb[26].mxu1 }
 0x395   : > { %v4150_v44 = vadd.f32 %v4149_v42, %v6921_v45  ;;  %v4151_v17 = vpop.f32.mrb[27].mxu1 }
 0x396   : > { %v4244_v29 = vmax.f32 %v4146_v49, %v4148_v36  ;;  %v4152_v19 = vadd.f32 %v4151_v17, %v6923_v43 }
 0x398   : > { %4280 = vst [vmem:[%s6932_s11 + $0xa0] sm:$0xff] %v4244_v29  ;;  %v4245_v52 = vmax.f32 %v4150_v44, %v4152_v19 }
 0x39a   : > { %4281 = vst [vmem:[%s6932_s11 + $0xa8] sm:$0xff] %v4245_v52 }
 0x3ac   : > { %v4155_v16 = vpop.f32.mrb[28].mxu1 }
 0x3ad   : > { %v4156_v15 = vadd.f32 %v4155_v16, %v6921_v45  ;;  %v4157_v24 = vpop.f32.mrb[29].mxu1 }
 0x3ae   : > { %v4158_v7 = vadd.f32 %v4157_v24, %v6923_v43  ;;  %v4159_v14 = vpop.f32.mrb[30].mxu1 }
 0x3af   : > { %v4160_v9 = vadd.f32 %v4159_v14, %v6921_v45  ;;  %v4161_v23 = vpop.f32.mrb[31].mxu1 }
 0x3b0   : > { %v4246_v39 = vmax.f32 %v4156_v15, %v4158_v7  ;;  %v4162_v2 = vadd.f32 %v4161_v23, %v6923_v43 }
 0x3b2   : > { %4282 = vst [vmem:[%s6932_s11 + $0xb0] sm:$0xff] %v4246_v39  ;;  %v4247_v56 = vmax.f32 %v4160_v9, %v4162_v2 }
 0x3b4   : > { %4283 = vst [vmem:[%s6932_s11 + $0xb8] sm:$0xff] %v4247_v56  ;;  %v4165_v28 = vpop.f32.mrb[32].mxu1 }
 0x3b5   : > { %v4166_v55 = vadd.f32 %v4165_v28, %v6921_v45  ;;  %v4167_v10 = vpop.f32.mrb[33].mxu1 }
 0x3b6   : > { %v4168_v5 = vadd.f32 %v4167_v10, %v6923_v43  ;;  %v4169_v50 = vpop.f32.mrb[34].mxu1 }
 0x3b7   : > { %v4170_v26 = vadd.f32 %v4169_v50, %v6921_v45  ;;  %v4171_v11 = vpop.f32.mrb[35].mxu1 }
 0x3b8   : > { %v4248_v30 = vmax.f32 %v4166_v55, %v4168_v5  ;;  %v4172_v0 = vadd.f32 %v4171_v11, %v6923_v43 }
 0x3ba   : > { %4284 = vst [vmem:[%s6932_s11 + $0xc0] sm:$0xff] %v4248_v30  ;;  %v4249_v51 = vmax.f32 %v4170_v26, %v4172_v0 }
 0x3bb   : > { %v4065_v1 = vpop.f32.mrb[52].mxu0 }
 0x3bc   : > { %4285 = vst [vmem:[%s6932_s11 + $0xc8] sm:$0xff] %v4249_v51  ;;  %v4175_v62 = vpop.f32.mrb[36].mxu1  ;;  %v4066_v60 = vadd.f32 %v4065_v1, %v6921_v45  ;;  %v4067_v4 = vpop.f32.mrb[53].mxu0 }
 0x3bd   : > { %v4176_v37 = vadd.f32 %v4175_v62, %v6921_v45  ;;  %v4177_v3 = vpop.f32.mrb[37].mxu1  ;;  %v4068_v34 = vadd.f32 %v4067_v4, %v6923_v43  ;;  %v4069_v46 = vpop.f32.mrb[54].mxu0 }
 0x3be   : > { %v4178_v38 = vadd.f32 %v4177_v3, %v6923_v43  ;;  %v4179_v8 = vpop.f32.mrb[38].mxu1  ;;  %v4070_v57 = vadd.f32 %v4069_v46, %v6921_v45  ;;  %v4071_v33 = vpop.f32.mrb[55].mxu0 }
 0x3bf   : > { %v4180_v58 = vadd.f32 %v4179_v8, %v6921_v45  ;;  %v4181_v59 = vpop.f32.mrb[39].mxu1  ;;  %v4228_v6 = vmax.f32 %v4066_v60, %v4068_v34  ;;  %v4072_v61 = vadd.f32 %v4071_v33, %v6923_v43 }
 0x3c0   : > { %v4250_v63 = vmax.f32 %v4176_v37, %v4178_v38  ;;  %v4182_v47 = vadd.f32 %v4181_v59, %v6923_v43 }
 0x3c1   : > { %4264 = vst [vmem:[%s6932_s11 + $0x20] sm:$0xff] %v4228_v6  ;;  %v4229_v22 = vmax.f32 %v4070_v57, %v4072_v61 }
 0x3c2   : > { %4286 = vst [vmem:[%s6932_s11 + $0xd0] sm:$0xff] %v4250_v63  ;;  %v4251_v53 = vmax.f32 %v4180_v58, %v4182_v47 }
 0x3c3   : > { %4265 = vst [vmem:[%s6932_s11 + $0x28] sm:$0xff] %v4229_v22 }
 0x3c4   : > { %4287 = vst [vmem:[%s6932_s11 + $0xd8] sm:$0xff] %v4251_v53  ;;  %v4185_v20 = vpop.f32.mrb[40].mxu1 }
 0x3c5   : > { %v4186_v12 = vadd.f32 %v4185_v20, %v6921_v45  ;;  %v4187_v48 = vpop.f32.mrb[41].mxu1 }
 0x3c6   : > { %v4188_v35 = vadd.f32 %v4187_v48, %v6923_v43  ;;  %v4189_v40 = vpop.f32.mrb[42].mxu1 }
 0x3c7   : > { %v4190_v21 = vadd.f32 %v4189_v40, %v6921_v45  ;;  %v4191_v27 = vpop.f32.mrb[43].mxu1 }
 0x3c8   : > { %v4252_v13 = vmax.f32 %v4186_v12, %v4188_v35  ;;  %v4192_v41 = vadd.f32 %v4191_v27, %v6923_v43 }
 0x3ca   : > { %4288 = vst [vmem:[%s6932_s11 + $0xe0] sm:$0xff] %v4252_v13  ;;  %v4253_v25 = vmax.f32 %v4190_v21, %v4192_v41 }
 0x3cc   : > { %4289 = vst [vmem:[%s6932_s11 + $0xe8] sm:$0xff] %v4253_v25 }
 0x3db   : > { %v4075_v31 = vpop.f32.mrb[56].mxu0 }
 0x3dc   : > { %v4076_v18 = vadd.f32 %v4075_v31, %v6921_v45  ;;  %v4077_v32 = vpop.f32.mrb[57].mxu0 }
 0x3dd   : > { %v4078_v49 = vadd.f32 %v4077_v32, %v6923_v43  ;;  %v4195_v54 = vpop.f32.mrb[44].mxu1  ;;  %v4079_v36 = vpop.f32.mrb[58].mxu0 }
 0x3de   : > { %v4196_v42 = vadd.f32 %v4195_v54, %v6921_v45  ;;  %v4080_v44 = vadd.f32 %v4079_v36, %v6921_v45  ;;  %v4197_v17 = vpop.f32.mrb[45].mxu1  ;;  %v4081_v29 = vpop.f32.mrb[59].mxu0 }
 0x3df   : > { %v4230_v19 = vmax.f32 %v4076_v18, %v4078_v49  ;;  %v4198_v52 = vadd.f32 %v4197_v17, %v6923_v43  ;;  %v4082_v16 = vadd.f32 %v4081_v29, %v6923_v43  ;;  %v4199_v15 = vpop.f32.mrb[46].mxu1 }
 0x3e0   : > { %v4200_v24 = vadd.f32 %v4199_v15, %v6921_v45  ;;  %v4201_v7 = vpop.f32.mrb[47].mxu1 }
 0x3e1   : > { %4266 = vst [vmem:[%s6932_s11 + $0x30] sm:$0xff] %v4230_v19  ;;  %v4254_v14 = vmax.f32 %v4196_v42, %v4198_v52  ;;  %v4231_v9 = vmax.f32 %v4080_v44, %v4082_v16  ;;  %v4202_v23 = vadd.f32 %v4201_v7, %v6923_v43 }
 0x3e3   : > { %4290 = vst [vmem:[%s6932_s11 + $0xf0] sm:$0xff] %v4254_v14  ;;  %4267 = vst [vmem:[%s6932_s11 + $0x38] sm:$0xff] %v4231_v9  ;;  %v4255_v39 = vmax.f32 %v4200_v24, %v4202_v23 }
 0x3e5   : > { %4291 = vst [vmem:[%s6932_s11 + $0xf8] sm:$0xff] %v4255_v39  ;;  %v4205_v2 = vpop.f32.mrb[48].mxu1 }
 0x3e6   : > { %v4206_v56 = vadd.f32 %v4205_v2, %v6921_v45  ;;  %v4207_v28 = vpop.f32.mrb[49].mxu1 }
 0x3e7   : > { %v4208_v55 = vadd.f32 %v4207_v28, %v6923_v43  ;;  %v4209_v10 = vpop.f32.mrb[50].mxu1 }
 0x3e8   : > { %v4210_v5 = vadd.f32 %v4209_v10, %v6921_v45  ;;  %v4211_v50 = vpop.f32.mrb[51].mxu1 }
 0x3e9   : > { %v4256_v26 = vmax.f32 %v4206_v56, %v4208_v55  ;;  %v4212_v11 = vadd.f32 %v4211_v50, %v6923_v43 }
 0x3eb   : > { %4292 = vst [vmem:[%s6932_s11 + $0x100] sm:$0xff] %v4256_v26  ;;  %v4257_v30 = vmax.f32 %v4210_v5, %v4212_v11 }
 0x3ed   : > { %4293 = vst [vmem:[%s6932_s11 + $0x108] sm:$0xff] %v4257_v30 }
 0x3f8   : > { %v4215_v0 = vpop.f32.mrb[52].mxu1 }
 0x3f9   : > { %v4216_v51 = vadd.f32 %v4215_v0, %v6921_v45  ;;  %v4217_v62 = vpop.f32.mrb[53].mxu1 }
 0x3fa   : > { %v4218_v37 = vadd.f32 %v4217_v62, %v6923_v43  ;;  %v4219_v3 = vpop.f32.mrb[54].mxu1 }
 0x3fb   : > { %v4220_v38 = vadd.f32 %v4219_v3, %v6921_v45  ;;  %v4221_v8 = vpop.f32.mrb[55].mxu1 }
 0x3fc   : > { %v4258_v58 = vmax.f32 %v4216_v51, %v4218_v37  ;;  %v4222_v1 = vadd.f32 %v4221_v8, %v6923_v43 }
 0x3fe   : > { %4294 = vst [vmem:[%s6932_s11 + $0x110] sm:$0xff] %v4258_v58  ;;  %v4259_v59 = vmax.f32 %v4220_v38, %v4222_v1 }
 0x400   : > { %4295 = vst [vmem:[%s6932_s11 + $0x118] sm:$0xff] %v4259_v59 }
 0x401 PF: > { %s16_s21 = sadd.s32 1, %s4992_s21  }
 0x402   : > { %p13_p4 = scmp.ge.s32.totalorder %s16_s21, 4  }
 0x404   :  { %15 = sbr.rel (!%p13_p4) target bundleno = 1 (0x1), region = 74 }

</bundles_post_ra>
